<compile_context>
chip_gen: v6e
topology: v6e:2x2x1
jax: 0.10.0
libtpu: 0.0.40
codegen_flags: <defaults>
</compile_context>

<pallas_src>
import math

import jax
import jax.numpy as jnp
from jax.experimental import pallas as pl
from jax.experimental.pallas import tpu as pltpu


# ---------------------------------------------------------------------------
# shared math helpers
# ---------------------------------------------------------------------------
def _layer_norm(x, gamma, beta, eps=1e-5):
    # matches torch.nn.LayerNorm (biased variance, eps inside sqrt)
    mean = jnp.mean(x, axis=-1, keepdims=True)
    var = jnp.mean((x - mean) ** 2, axis=-1, keepdims=True)
    return (x - mean) * jax.lax.rsqrt(var + eps) * gamma + beta


def _gelu_exact(x):
    # matches torch.nn.GELU() default (erf-based); erf kept in f32 on all gens
    return 0.5 * x * (1.0 + jax.lax.erf(x / math.sqrt(2.0)))


# ---------------------------------------------------------------------------
# TPU-generation detection & per-generation kernel configuration
# ---------------------------------------------------------------------------
def _tpu_generation():
    try:
        kind = jax.devices()[0].device_kind.lower()
    except Exception:
        return 0
    if "v7" in kind or "7x" in kind:
        return 7
    if "v6" in kind:
        return 6
    if "v5" in kind:
        return 5
    if "v4" in kind:
        return 4
    return 0


def _kernel_config():
    """(num_cores_to_target, exp_dtype, vmem_limit_bytes) for this chip."""
    gen = _tpu_generation()
    num_cores = 2 if gen == 7 else 1                 # v7x: one group per TC
    exp_dtype = jnp.bfloat16 if gen in (6, 7) else jnp.float32  # bf16 EUP exp
    if gen == 7:
        vmem_limit = 48 << 20                        # headroom under 64 MiB
    elif gen in (5, 6):
        vmem_limit = 100 << 20                       # 128 MiB physical
    else:
        vmem_limit = None
    return num_cores, exp_dtype, vmem_limit


def _pick_group_size(batch, num_cores, max_group=32):
    """Largest per-block batch count G (divisor of batch) such that there are
    at least `num_cores` grid groups; num_groups==1 on single-TC chips avoids
    re-streaming every layer's weights per group.  max_group bounds the
    statically-unrolled per-sequence attention loop."""
    cands = [g for g in range(1, batch + 1)
             if batch % g == 0 and g <= max(1, max_group)]
    if not cands:
        return 1
    pref = [g for g in cands if batch // g >= num_cores]
    return max(pref) if pref else max(cands)


# ---------------------------------------------------------------------------
# Pallas kernel: embed_ln + ONE transformer block per grid step
# ---------------------------------------------------------------------------
def _make_transformer_kernel(n_heads, group, seq_len, h_dim, exp_dtype):
    H, G, S, D = n_heads, group, seq_len, h_dim
    Dh = D // H
    M = G * S
    scale = 1.0 / math.sqrt(Dh)
    bf16, f32 = jnp.bfloat16, jnp.float32

    def kernel(h_ref, eln_ref, wqkv_ref, bqkv_ref, wo_ref,
               w1_ref, b1_ref, w2_ref, vecs_ref, out_ref):
        l = pl.program_id(1)

        # layer 0: initialize the residual stream (embed_ln of the tokens)
        @pl.when(l == 0)
        def _():
            x0 = h_ref[...].reshape(M, D)
            out_ref[...] = _layer_norm(
                x0, eln_ref[0:1], eln_ref[1:2]).reshape(G, S, D)

        x = out_ref[...].reshape(M, D)            # residual state (f32)

        vecs = vecs_ref[0]                        # (6, D)
        bo, ln1_g, ln1_b = vecs[0:1], vecs[1:2], vecs[2:3]
        b2, ln2_g, ln2_b = vecs[3:4], vecs[4:5], vecs[5:6]

        # (S, S) additive causal bias, generated in-kernel (tiny; no (M,M) mask)
        q_idx = jax.lax.broadcasted_iota(jnp.int32, (S, S), 0)
        k_idx = jax.lax.broadcasted_iota(jnp.int32, (S, S), 1)
        causal_bias = jnp.where(k_idx <= q_idx, 0.0, -1e30).astype(f32)

        # ---- fused QKV projection over all G sequences at once -------------
        xb = x.astype(bf16)
        qkv = jnp.dot(xb, wqkv_ref[0],
                      preferred_element_type=f32) + bqkv_ref[0]      # (M, 3D)

        # ---- per-sequence masked causal attention (block-diagonal) ---------
        outs = []
        for g in range(G):                        # static unroll, G is small
            qkv_g = qkv[g * S:(g + 1) * S]                           # (S, 3D)
            hds = qkv_g.reshape(S, 3 * H, Dh).transpose(1, 0, 2)     # (3H,S,Dh)
            q = (hds[0:H] * scale).astype(bf16)   # 1/sqrt(Dh) folded into q
            k = hds[H:2 * H].astype(bf16)
            v = hds[2 * H:3 * H].astype(bf16)

            s = jnp.einsum('hqd,hkd->hqk', q, k,
                           preferred_element_type=f32) + causal_bias  # (H,S,S)
            s_max = jnp.max(s, axis=-1, keepdims=True)
            e = jnp.exp((s - s_max).astype(exp_dtype))   # bf16 EUP on v6e/v7x
            denom = jnp.sum(e.astype(f32), axis=-1, keepdims=True)
            p = (e * pl.reciprocal(denom, approx=True)).astype(bf16)

            o = jnp.einsum('hqk,hkd->hqd', p, v,
                           preferred_element_type=f32)               # (H,S,Dh)
            outs.append(o.transpose(1, 0, 2).reshape(S, D))          # concat heads
        o_all = jnp.concatenate(outs, axis=0) if G > 1 else outs[0]  # (M, D)

        # output projection: heads already concatenated -> one (M,D)x(D,D) matmul
        attn = jnp.dot(o_all.astype(bf16), wo_ref[0],
                       preferred_element_type=f32) + bo

        y = _layer_norm(x + attn, ln1_g, ln1_b)

        # ---- MLP: Linear -> GELU -> Linear ---------------------------------
        m = jnp.dot(y.astype(bf16), w1_ref[0],
                    preferred_element_type=f32) + b1_ref[0]
        m = _gelu_exact(m)
        m = jnp.dot(m.astype(bf16), w2_ref[0],
                    preferred_element_type=f32) + b2

        out_ref[...] = _layer_norm(y + m, ln2_g, ln2_b).reshape(G, S, D)

    return kernel


# ---------------------------------------------------------------------------
# one-time weight packing (hoisted out of the per-call forward)
# ---------------------------------------------------------------------------
def pack_transformer_params(params):
    f32, bf16 = jnp.float32, jnp.bfloat16
    return dict(
        n_heads=params['n_heads'],
        wqkv=jnp.concatenate([params['wq'], params['wk'], params['wv']],
                             axis=-1).astype(bf16),                 # (L, D, 3D)
        bqkv=jnp.concatenate([params['bq'], params['bk'], params['bv']],
                             axis=-1).astype(f32),                  # (L, 1, 3D)
        wo=params['wo'].astype(bf16),                               # (L, D, D)
        w1=params['w1'].astype(bf16),                               # (L, D, 4D)
        b1=params['b1'].astype(f32),                                # (L, 1, 4D)
        w2=params['w2'].astype(bf16),                               # (L, 4D, D)
        vecs=jnp.stack([params['bo'][:, 0], params['ln1_g'][:, 0],
                        params['ln1_b'][:, 0], params['b2'][:, 0],
                        params['ln2_g'][:, 0], params['ln2_b'][:, 0]],
                       axis=1).astype(f32),                         # (L, 6, D)
        eln=jnp.stack([params['eln_g'][0], params['eln_b'][0]],
                      axis=0).astype(f32),                          # (2, D)
    )


def transformer_pallas(h, packed):
    B, S, D = h.shape
    H = packed['n_heads']
    L = packed['wqkv'].shape[0]
    f32 = jnp.float32

    num_cores, exp_dtype, vmem_limit = _kernel_config()
    G = _pick_group_size(B, num_cores)
    num_groups = B // G

    kernel = _make_transformer_kernel(H, G, S, D, exp_dtype)

    in_specs = [
        pl.BlockSpec((G, S, D), lambda g, l: (g, 0, 0)),          # tokens
        pl.BlockSpec((2, D), lambda g, l: (0, 0)),                # embed_ln
        pl.BlockSpec((1, D, 3 * D), lambda g, l: (l, 0, 0)),      # wqkv (streamed)
        pl.BlockSpec((1, 1, 3 * D), lambda g, l: (l, 0, 0)),      # bqkv
        pl.BlockSpec((1, D, D), lambda g, l: (l, 0, 0)),          # wo
        pl.BlockSpec((1, D, 4 * D), lambda g, l: (l, 0, 0)),      # w1
        pl.BlockSpec((1, 1, 4 * D), lambda g, l: (l, 0, 0)),      # b1
        pl.BlockSpec((1, 4 * D, D), lambda g, l: (l, 0, 0)),      # w2
        pl.BlockSpec((1, 6, D), lambda g, l: (l, 0, 0)),          # packed vectors
    ]
    out_spec = pl.BlockSpec((G, S, D), lambda g, l: (g, 0, 0))

    # advisory cost hint for XLA's scheduler around the custom call
    flops = int(2 * B * S * L * 12 * D * D + 4 * B * L * S * S * D)
    transc = int(B * L * (H * S * S + 4 * S * D))
    bytes_accessed = int(num_groups * L * (12 * D * D * 2 + 13 * D * 4)
                         + 2 * B * S * D * 4)

    cp_kwargs = dict(dimension_semantics=("parallel", "arbitrary"))
    if vmem_limit is not None:
        cp_kwargs["vmem_limit_bytes"] = int(vmem_limit)

    return pl.pallas_call(
        kernel,
        out_shape=jax.ShapeDtypeStruct((B, S, D), f32),
        grid=(num_groups, L),
        in_specs=in_specs,
        out_specs=out_spec,
        compiler_params=pltpu.CompilerParams(**cp_kwargs),
        cost_estimate=pl.CostEstimate(flops=flops, transcendentals=transc,
                                      bytes_accessed=bytes_accessed),
    )(h, packed['eln'], packed['wqkv'], packed['bqkv'], packed['wo'],
      packed['w1'], packed['b1'], packed['w2'], packed['vecs'])


# ---------------------------------------------------------------------------
# pure-JAX references (mixed precision mirrors the kernel; f32 mirrors torch)
# ---------------------------------------------------------------------------
def transformer_ref(h, params, mixed=True):
    B, S, D = h.shape
    H = params['n_heads']
    Dh = D // H
    L = params['wq'].shape[0]
    scale = 1.0 / math.sqrt(Dh)
    exp_dtype = _kernel_config()[1] if mixed else jnp.float32

    def cast(a):
        return a.astype(jnp.bfloat16) if mixed else a

    def mm(a, b):
        return jnp.einsum('bsd,de->bse', cast(a), cast(b),
                          preferred_element_type=jnp.float32)

    x = _layer_norm(h, params['eln_g'], params['eln_b'])
    causal = jnp.tril(jnp.ones((S, S), bool))
    for l in range(L):
        q = (mm(x, params['wq'][l]) + params['bq'][l]) * scale
        k = mm(x, params['wk'][l]) + params['bk'][l]
        v = mm(x, params['wv'][l]) + params['bv'][l]
        qh = q.reshape(B, S, H, Dh).transpose(0, 2, 1, 3)
        kh = k.reshape(B, S, H, Dh).transpose(0, 2, 1, 3)
        vh = v.reshape(B, S, H, Dh).transpose(0, 2, 1, 3)
        s = jnp.einsum('bhqd,bhkd->bhqk', cast(qh), cast(kh),
                       preferred_element_type=jnp.float32)
        s = jnp.where(causal, s, -1e30)
        if mixed:
            s_max = jnp.max(s, axis=-1, keepdims=True)
            e = jnp.exp((s - s_max).astype(exp_dtype)).astype(jnp.float32)
            p = e / jnp.sum(e, axis=-1, keepdims=True)
        else:
            p = jax.nn.softmax(s, axis=-1)
        a = jnp.einsum('bhqk,bhkd->bhqd', cast(p), cast(vh),
                       preferred_element_type=jnp.float32)
        a = a.transpose(0, 2, 1, 3).reshape(B, S, D)
        a = mm(a, params['wo'][l]) + params['bo'][l]
        x = _layer_norm(x + a, params['ln1_g'][l], params['ln1_b'][l])
        m = _gelu_exact(mm(x, params['w1'][l]) + params['b1'][l])
        m = mm(m, params['w2'][l]) + params['b2'][l]
        x = _layer_norm(x + m, params['ln2_g'][l], params['ln2_b'][l])
    return x


# ---------------------------------------------------------------------------
# full DecisionTransformer forward (use_emlp=False branch)
# ---------------------------------------------------------------------------
def decision_transformer_forward(params, timesteps, states, actions,
                                 returns_to_go, backend="pallas", packed=None):
    B, T, _ = states.shape
    D = params['w_state'].shape[1]

    time_emb = params['embed_timestep'][timesteps]                          # (B,T,D)
    state_emb = states @ params['w_state'] + params['b_state'] + time_emb
    action_emb = actions @ params['w_action'] + params['b_action'] + time_emb
    rtg_emb = returns_to_go @ params['w_rtg'] + params['b_rtg'] + time_emb

    # stack (rtg, state, action) -> interleave per timestep -> (B, 3T, D)
    h = jnp.stack([rtg_emb, state_emb, action_emb], axis=1)                 # (B,3,T,D)
    h = jnp.transpose(h, (0, 2, 1, 3)).reshape(B, 3 * T, D)

    if backend == "pallas":
        if packed is None:
            packed = pack_transformer_params(params)
        h = transformer_pallas(h, packed)
    elif backend == "ref_mixed":
        h = transformer_ref(h, params, mixed=True)
    else:
        h = transformer_ref(h, params, mixed=False)

    h = h.reshape(B, T, 3, D).transpose(0, 2, 1, 3)                         # (B,3,T,D)
    return_preds = h[:, 2] @ params['w_pred_rtg'] + params['b_pred_rtg']    # (B,T,1)
    state_preds = h[:, 2] @ params['w_pred_state'] + params['b_pred_state'] # (B,T,Sdim)
    action_preds = jnp.tanh(h[:, 1] @ params['w_pred_action'] + params['b_pred_action'])
    return state_preds, action_preds, return_preds


# ---------------------------------------------------------------------------
# deterministic synthetic parameter init
# ---------------------------------------------------------------------------
def init_params(key, state_dim, act_dim, n_blocks, h_dim, context_len,
                n_heads, max_timestep):
    del context_len  # only affects max_T of the causal mask (handled via S)
    D = h_dim
    keys = iter(jax.random.split(key, 64))

    def w(shape, scale=0.02):
        return (scale * jax.random.normal(next(keys), shape)).astype(jnp.float32)

    L = n_blocks
    return dict(
        n_heads=n_heads,
        # embeddings
        embed_timestep=w((max_timestep, D)),
        w_rtg=w((1, D)), b_rtg=w((1, D), 0.01),
        w_state=w((state_dim, D)), b_state=w((1, D), 0.01),
        w_action=w((act_dim, D)), b_action=w((1, D), 0.01),
        # embed_ln
        eln_g=jnp.ones((1, D), jnp.float32), eln_b=jnp.zeros((1, D), jnp.float32),
        # transformer blocks (stacked along leading n_blocks axis)
        wq=w((L, D, D)), bq=w((L, 1, D), 0.01),
        wk=w((L, D, D)), bk=w((L, 1, D), 0.01),
        wv=w((L, D, D)), bv=w((L, 1, D), 0.01),
        wo=w((L, D, D)), bo=w((L, 1, D), 0.01),
        ln1_g=jnp.ones((L, 1, D), jnp.float32), ln1_b=jnp.zeros((L, 1, D), jnp.float32),
        w1=w((L, D, 4 * D)), b1=w((L, 1, 4 * D), 0.01),
        w2=w((L, 4 * D, D)), b2=w((L, 1, D), 0.01),
        ln2_g=jnp.ones((L, 1, D), jnp.float32), ln2_b=jnp.zeros((L, 1, D), jnp.float32),
        # prediction heads
        w_pred_rtg=w((D, 1)), b_pred_rtg=w((1,), 0.01),
        w_pred_state=w((D, state_dim)), b_pred_state=w((state_dim,), 0.01),
        w_pred_action=w((D, act_dim)), b_pred_action=w((act_dim,), 0.01),
    )


# TODO(synk): the args.use_emlp=True branch (BasisLinear / GroupRepresentations)
# references classes not present in the source module; only the standard
# nn.Linear branch is implemented.

if __name__ == "__main__":
    B, T = 4, 8                  # batch, context_len -> seq = 3*T = 24
    state_dim, act_dim = 4, 4
    h_dim, n_heads, n_blocks = 32, 2, 2
    max_timestep = 64

    key = jax.random.PRNGKey(0)
    k_p, k_ts, k_s, k_a, k_r = jax.random.split(key, 5)

    params = init_params(k_p, state_dim, act_dim, n_blocks, h_dim, T,
                         n_heads, max_timestep)
    packed = pack_transformer_params(params)     # one-time weight packing

    timesteps = jax.random.randint(k_ts, (B, T), 0, max_timestep, dtype=jnp.int32)
    states = jax.random.normal(k_s, (B, T, state_dim), dtype=jnp.float32)
    actions = jax.random.normal(k_a, (B, T, act_dim), dtype=jnp.float32)
    returns_to_go = jax.random.normal(k_r, (B, T, 1), dtype=jnp.float32)

    sp, ap, rp = decision_transformer_forward(
        params, timesteps, states, actions, returns_to_go,
        backend="pallas", packed=packed)
    jax.block_until_ready((sp, ap, rp))

    # tight check: plain-JAX reference with the same mixed-precision policy
    sp_m, ap_m, rp_m = decision_transformer_forward(
        params, timesteps, states, actions, returns_to_go, backend="ref_mixed")
    for got, ref in ((sp, sp_m), (ap, ap_m), (rp, rp_m)):
        assert got.shape == ref.shape
        err = float(jnp.max(jnp.abs(got - ref)))
        assert err < 3e-3, f"mismatch vs mixed-precision reference: {err}"

    # fidelity check vs. the full-f32 (PyTorch-semantics) reference
    sp_f, ap_f, rp_f = decision_transformer_forward(
        params, timesteps, states, actions, returns_to_go, backend="ref_f32")
    for got, ref in ((sp, sp_f), (ap, ap_f), (rp, rp_f)):
        err = float(jnp.max(jnp.abs(got - ref)))
        assert err < 5e-2, f"mismatch vs f32 reference: {err}"

    assert sp.shape == (B, T, state_dim)
    assert ap.shape == (B, T, act_dim)
    assert rp.shape == (B, T, 1)

    print("KERNEL_OK")
</pallas_src>

<mosaic_0001>
module attributes {stable_mosaic.version = 11 : i64} {
  func.func @kernel(%arg0: i32, %arg1: i32, %arg2: memref<4x24x32xf32, #tpu.memory_space<vmem>>, %arg3: memref<2x32xf32, #tpu.memory_space<vmem>>, %arg4: memref<1x32x96xbf16, #tpu.memory_space<vmem>>, %arg5: memref<1x1x96xf32, #tpu.memory_space<vmem>>, %arg6: memref<1x32x32xbf16, #tpu.memory_space<vmem>>, %arg7: memref<1x32x128xbf16, #tpu.memory_space<vmem>>, %arg8: memref<1x1x128xf32, #tpu.memory_space<vmem>>, %arg9: memref<1x128x32xbf16, #tpu.memory_space<vmem>>, %arg10: memref<1x6x32xf32, #tpu.memory_space<vmem>>, %arg11: memref<4x24x32xf32, #tpu.memory_space<vmem>>) attributes {dimension_semantics = [#tpu.dimension_semantics<parallel>, #tpu.dimension_semantics<arbitrary>], iteration_bounds = array<i64: 1, 2>, scalar_prefetch = 0 : i64, scratch_operands = 0 : i64, tpu.core_type = #tpu.core_type<tc>, window_params = [{transform_indices = @transform_0, window_bounds = array<i64: 4, 24, 32>}, {pipeline_mode = #tpu.pipeline_mode<synchronous>, transform_indices = @transform_1, window_bounds = array<i64: 2, 32>}, {transform_indices = @transform_2, window_bounds = array<i64: 1, 32, 96>}, {transform_indices = @transform_3, window_bounds = array<i64: 1, 1, 96>}, {transform_indices = @transform_4, window_bounds = array<i64: 1, 32, 32>}, {transform_indices = @transform_5, window_bounds = array<i64: 1, 32, 128>}, {transform_indices = @transform_6, window_bounds = array<i64: 1, 1, 128>}, {transform_indices = @transform_7, window_bounds = array<i64: 1, 128, 32>}, {transform_indices = @transform_8, window_bounds = array<i64: 1, 6, 32>}, {transform_indices = @transform_9, window_bounds = array<i64: 4, 24, 32>}]} {
    %c0_i32 = arith.constant 0 : i32
    %0 = arith.cmpi eq, %arg1, %c0_i32 : i32
    %1 = arith.extui %0 : i1 to i32
    %c0_i32_0 = arith.constant 0 : i32
    %2 = arith.cmpi ne, %1, %c0_i32_0 : i32
    scf.if %2 {
      %c0_65 = arith.constant 0 : index
      %c0_66 = arith.constant 0 : index
      %c0_67 = arith.constant 0 : index
      %220 = vector.load %arg2[%c0_65, %c0_66, %c0_67] : memref<4x24x32xf32, #tpu.memory_space<vmem>>, vector<4x24x32xf32>
      %221 = vector.shape_cast %220 : vector<4x24x32xf32> to vector<96x32xf32>
      %c0_68 = arith.constant 0 : index
      %c0_69 = arith.constant 0 : index
      %222 = vector.load %arg3[%c0_68, %c0_69] : memref<2x32xf32, #tpu.memory_space<vmem>>, vector<1x32xf32>
      %c1 = arith.constant 1 : index
      %c0_70 = arith.constant 0 : index
      %223 = vector.load %arg3[%c1, %c0_70] : memref<2x32xf32, #tpu.memory_space<vmem>>, vector<1x32xf32>
      %cst_71 = arith.constant dense<0.000000e+00> : vector<96xf32>
      %224 = vector.multi_reduction <add>, %221, %cst_71 [1] : vector<96x32xf32> to vector<96xf32>
      %225 = vector.shape_cast %224 : vector<96xf32> to vector<96x1xf32>
      %cst_72 = arith.constant 3.200000e+01 : f32
      %226 = vector.broadcast %cst_72 : f32 to vector<96x1xf32>
      %227 = arith.divf %225, %226 : vector<96x1xf32>
      %228 = vector.broadcast %227 : vector<96x1xf32> to vector<96x32xf32>
      %229 = arith.subf %221, %228 : vector<96x32xf32>
      %230 = arith.mulf %229, %229 : vector<96x32xf32>
      %cst_73 = arith.constant dense<0.000000e+00> : vector<96xf32>
      %231 = vector.multi_reduction <add>, %230, %cst_73 [1] : vector<96x32xf32> to vector<96xf32>
      %232 = vector.shape_cast %231 : vector<96xf32> to vector<96x1xf32>
      %cst_74 = arith.constant 3.200000e+01 : f32
      %233 = vector.broadcast %cst_74 : f32 to vector<96x1xf32>
      %234 = arith.divf %232, %233 : vector<96x1xf32>
      %235 = vector.broadcast %227 : vector<96x1xf32> to vector<96x32xf32>
      %236 = arith.subf %221, %235 : vector<96x32xf32>
      %cst_75 = arith.constant 9.99999974E-6 : f32
      %237 = vector.broadcast %cst_75 : f32 to vector<96x1xf32>
      %238 = arith.addf %234, %237 : vector<96x1xf32>
      %239 = math.rsqrt %238 : vector<96x1xf32>
      %240 = vector.broadcast %239 : vector<96x1xf32> to vector<96x32xf32>
      %241 = arith.mulf %236, %240 : vector<96x32xf32>
      %242 = vector.broadcast %222 : vector<1x32xf32> to vector<96x32xf32>
      %243 = arith.mulf %241, %242 : vector<96x32xf32>
      %244 = vector.broadcast %223 : vector<1x32xf32> to vector<96x32xf32>
      %245 = arith.addf %243, %244 : vector<96x32xf32>
      %246 = vector.shape_cast %245 : vector<96x32xf32> to vector<4x24x32xf32>
      %c0_76 = arith.constant 0 : index
      %c0_77 = arith.constant 0 : index
      %c0_78 = arith.constant 0 : index
      %247 = vector.load %arg11[%c0_76, %c0_77, %c0_78] : memref<4x24x32xf32, #tpu.memory_space<vmem>>, vector<4x24x32xf32>
      tpu.vector_store %arg11[%c0_76, %c0_77, %c0_78], %246 {strides = array<i32>} : memref<4x24x32xf32, #tpu.memory_space<vmem>>, vector<4x24x32xf32>,
    } else {
    }
    %c0 = arith.constant 0 : index
    %c0_1 = arith.constant 0 : index
    %c0_2 = arith.constant 0 : index
    %3 = vector.load %arg11[%c0, %c0_1, %c0_2] : memref<4x24x32xf32, #tpu.memory_space<vmem>>, vector<4x24x32xf32>
    %4 = vector.shape_cast %3 : vector<4x24x32xf32> to vector<96x32xf32>
    %c0_3 = arith.constant 0 : index
    %c0_4 = arith.constant 0 : index
    %c0_5 = arith.constant 0 : index
    %5 = vector.load %arg10[%c0_3, %c0_4, %c0_5] : memref<1x6x32xf32, #tpu.memory_space<vmem>>, vector<1x6x32xf32>
    %6 = vector.shape_cast %5 : vector<1x6x32xf32> to vector<6x32xf32>
    %7 = vector.extract_strided_slice %6 {offsets = [0, 0], sizes = [1, 32], strides = [1, 1]} : vector<6x32xf32> to vector<1x32xf32>
    %8 = vector.extract_strided_slice %6 {offsets = [1, 0], sizes = [1, 32], strides = [1, 1]} : vector<6x32xf32> to vector<1x32xf32>
    %9 = vector.extract_strided_slice %6 {offsets = [2, 0], sizes = [1, 32], strides = [1, 1]} : vector<6x32xf32> to vector<1x32xf32>
    %10 = vector.extract_strided_slice %6 {offsets = [3, 0], sizes = [1, 32], strides = [1, 1]} : vector<6x32xf32> to vector<1x32xf32>
    %11 = vector.extract_strided_slice %6 {offsets = [4, 0], sizes = [1, 32], strides = [1, 1]} : vector<6x32xf32> to vector<1x32xf32>
    %12 = vector.extract_strided_slice %6 {offsets = [5, 0], sizes = [1, 32], strides = [1, 1]} : vector<6x32xf32> to vector<1x32xf32>
    %13 = tpu.iota {dimensions = array<i32: 0>} : vector<24x24xi32>
    %14 = tpu.iota {dimensions = array<i32: 1>} : vector<24x24xi32>
    %15 = arith.cmpi sle, %14, %13 : vector<24x24xi32>
    %cst = arith.constant 0.000000e+00 : f32
    %cst_6 = arith.constant -1.000000e+30 : f32
    %16 = vector.broadcast %cst : f32 to vector<24x24xf32>
    %17 = vector.broadcast %cst_6 : f32 to vector<24x24xf32>
    %18 = arith.select %15, %16, %17 : vector<24x24xi1>, vector<24x24xf32>
    %19 = arith.truncf %4 : vector<96x32xf32> to vector<96x32xbf16>
    %c0_7 = arith.constant 0 : index
    %c0_8 = arith.constant 0 : index
    %c0_9 = arith.constant 0 : index
    %20 = vector.load %arg4[%c0_7, %c0_8, %c0_9] : memref<1x32x96xbf16, #tpu.memory_space<vmem>>, vector<1x32x96xbf16>
    %21 = vector.shape_cast %20 : vector<1x32x96xbf16> to vector<32x96xbf16>
    %cst_10 = arith.constant dense<0.000000e+00> : vector<96x96xf32>
    %22 = tpu.matmul %19, %21, %cst_10 {dimension_numbers = #tpu.dot_dimension_numbers<[1], [0], [0], [1], [0, 0, 1, 1], [], []>} : vector<96x32xbf16>, vector<32x96xbf16>, vector<96x96xf32> -> vector<96x96xf32>
    %c0_11 = arith.constant 0 : index
    %c0_12 = arith.constant 0 : index
    %c0_13 = arith.constant 0 : index
    %23 = vector.load %arg5[%c0_11, %c0_12, %c0_13] : memref<1x1x96xf32, #tpu.memory_space<vmem>>, vector<1x1x96xf32>
    %24 = vector.shape_cast %23 : vector<1x1x96xf32> to vector<1x96xf32>
    %25 = vector.broadcast %24 : vector<1x96xf32> to vector<96x96xf32>
    %26 = arith.addf %22, %25 : vector<96x96xf32>
    %27 = vector.extract_strided_slice %26 {offsets = [0, 0], sizes = [24, 96], strides = [1, 1]} : vector<96x96xf32> to vector<24x96xf32>
    %28 = vector.shape_cast %27 : vector<24x96xf32> to vector<24x6x16xf32>
    %29 = tpu.transpose %28, [1, 0, 2] : vector<24x6x16xf32> -> vector<6x24x16xf32>
    %30 = vector.extract_strided_slice %29 {offsets = [0, 0, 0], sizes = [2, 24, 16], strides = [1, 1, 1]} : vector<6x24x16xf32> to vector<2x24x16xf32>
    %cst_14 = arith.constant 2.500000e-01 : f32
    %31 = vector.broadcast %cst_14 : f32 to vector<2x24x16xf32>
    %32 = arith.mulf %30, %31 : vector<2x24x16xf32>
    %33 = arith.truncf %32 : vector<2x24x16xf32> to vector<2x24x16xbf16>
    %34 = vector.extract_strided_slice %29 {offsets = [2, 0, 0], sizes = [2, 24, 16], strides = [1, 1, 1]} : vector<6x24x16xf32> to vector<2x24x16xf32>
    %35 = arith.truncf %34 : vector<2x24x16xf32> to vector<2x24x16xbf16>
    %36 = vector.extract_strided_slice %29 {offsets = [4, 0, 0], sizes = [2, 24, 16], strides = [1, 1, 1]} : vector<6x24x16xf32> to vector<2x24x16xf32>
    %37 = arith.truncf %36 : vector<2x24x16xf32> to vector<2x24x16xbf16>
    "tpu.trace_start"() <{level = 10 : i32, message = "hqd,hkd->hqk"}> : () -> ()
    %cst_15 = arith.constant dense<0.000000e+00> : vector<2x24x24xf32>
    %38 = tpu.matmul %33, %35, %cst_15 {dimension_numbers = #tpu.dot_dimension_numbers<[2], [2], [1], [1], [0, 0, 0, 1, 1, 1], [0], [0]>} : vector<2x24x16xbf16>, vector<2x24x16xbf16>, vector<2x24x24xf32> -> vector<2x24x24xf32>
    "tpu.trace_stop"() : () -> ()
    %39 = vector.shape_cast %18 : vector<24x24xf32> to vector<1x24x24xf32>
    %40 = vector.broadcast %39 : vector<1x24x24xf32> to vector<2x24x24xf32>
    %41 = arith.addf %38, %40 : vector<2x24x24xf32>
    %cst_16 = arith.constant dense<0xFF800000> : vector<2x24xf32>
    %42 = vector.multi_reduction <maximumf>, %41, %cst_16 [2] : vector<2x24x24xf32> to vector<2x24xf32>
    %43 = vector.shape_cast %42 : vector<2x24xf32> to vector<2x24x1xf32>
    %44 = vector.broadcast %43 : vector<2x24x1xf32> to vector<2x24x24xf32>
    %45 = arith.subf %41, %44 : vector<2x24x24xf32>
    %46 = math.exp %45 : vector<2x24x24xf32>
    %cst_17 = arith.constant dense<0.000000e+00> : vector<2x24xf32>
    %47 = vector.multi_reduction <add>, %46, %cst_17 [2] : vector<2x24x24xf32> to vector<2x24xf32>
    %48 = vector.shape_cast %47 : vector<2x24xf32> to vector<2x24x1xf32>
    %49 = tpu.reciprocal %48 {approx = true} : vector<2x24x1xf32> -> vector<2x24x1xf32>
    %50 = vector.broadcast %49 : vector<2x24x1xf32> to vector<2x24x24xf32>
    %51 = arith.mulf %46, %50 : vector<2x24x24xf32>
    %52 = arith.truncf %51 : vector<2x24x24xf32> to vector<2x24x24xbf16>
    "tpu.trace_start"() <{level = 10 : i32, message = "hqk,hkd->hqd"}> : () -> ()
    %cst_18 = arith.constant dense<0.000000e+00> : vector<2x24x16xf32>
    %53 = tpu.matmul %52, %37, %cst_18 {dimension_numbers = #tpu.dot_dimension_numbers<[2], [1], [1], [2], [0, 0, 0, 1, 1, 2], [0], [0]>} : vector<2x24x24xbf16>, vector<2x24x16xbf16>, vector<2x24x16xf32> -> vector<2x24x16xf32>
    "tpu.trace_stop"() : () -> ()
    %54 = tpu.transpose %53, [1, 0, 2] : vector<2x24x16xf32> -> vector<24x2x16xf32>
    %55 = vector.shape_cast %54 : vector<24x2x16xf32> to vector<24x32xf32>
    %56 = vector.extract_strided_slice %26 {offsets = [24, 0], sizes = [24, 96], strides = [1, 1]} : vector<96x96xf32> to vector<24x96xf32>
    %57 = vector.shape_cast %56 : vector<24x96xf32> to vector<24x6x16xf32>
    %58 = tpu.transpose %57, [1, 0, 2] : vector<24x6x16xf32> -> vector<6x24x16xf32>
    %59 = vector.extract_strided_slice %58 {offsets = [0, 0, 0], sizes = [2, 24, 16], strides = [1, 1, 1]} : vector<6x24x16xf32> to vector<2x24x16xf32>
    %cst_19 = arith.constant 2.500000e-01 : f32
    %60 = vector.broadcast %cst_19 : f32 to vector<2x24x16xf32>
    %61 = arith.mulf %59, %60 : vector<2x24x16xf32>
    %62 = arith.truncf %61 : vector<2x24x16xf32> to vector<2x24x16xbf16>
    %63 = vector.extract_strided_slice %58 {offsets = [2, 0, 0], sizes = [2, 24, 16], strides = [1, 1, 1]} : vector<6x24x16xf32> to vector<2x24x16xf32>
    %64 = arith.truncf %63 : vector<2x24x16xf32> to vector<2x24x16xbf16>
    %65 = vector.extract_strided_slice %58 {offsets = [4, 0, 0], sizes = [2, 24, 16], strides = [1, 1, 1]} : vector<6x24x16xf32> to vector<2x24x16xf32>
    %66 = arith.truncf %65 : vector<2x24x16xf32> to vector<2x24x16xbf16>
    "tpu.trace_start"() <{level = 10 : i32, message = "hqd,hkd->hqk"}> : () -> ()
    %cst_20 = arith.constant dense<0.000000e+00> : vector<2x24x24xf32>
    %67 = tpu.matmul %62, %64, %cst_20 {dimension_numbers = #tpu.dot_dimension_numbers<[2], [2], [1], [1], [0, 0, 0, 1, 1, 1], [0], [0]>} : vector<2x24x16xbf16>, vector<2x24x16xbf16>, vector<2x24x24xf32> -> vector<2x24x24xf32>
    "tpu.trace_stop"() : () -> ()
    %68 = vector.shape_cast %18 : vector<24x24xf32> to vector<1x24x24xf32>
    %69 = vector.broadcast %68 : vector<1x24x24xf32> to vector<2x24x24xf32>
    %70 = arith.addf %67, %69 : vector<2x24x24xf32>
    %cst_21 = arith.constant dense<0xFF800000> : vector<2x24xf32>
    %71 = vector.multi_reduction <maximumf>, %70, %cst_21 [2] : vector<2x24x24xf32> to vector<2x24xf32>
    %72 = vector.shape_cast %71 : vector<2x24xf32> to vector<2x24x1xf32>
    %73 = vector.broadcast %72 : vector<2x24x1xf32> to vector<2x24x24xf32>
    %74 = arith.subf %70, %73 : vector<2x24x24xf32>
    %75 = math.exp %74 : vector<2x24x24xf32>
    %cst_22 = arith.constant dense<0.000000e+00> : vector<2x24xf32>
    %76 = vector.multi_reduction <add>, %75, %cst_22 [2] : vector<2x24x24xf32> to vector<2x24xf32>
    %77 = vector.shape_cast %76 : vector<2x24xf32> to vector<2x24x1xf32>
    %78 = tpu.reciprocal %77 {approx = true} : vector<2x24x1xf32> -> vector<2x24x1xf32>
    %79 = vector.broadcast %78 : vector<2x24x1xf32> to vector<2x24x24xf32>
    %80 = arith.mulf %75, %79 : vector<2x24x24xf32>
    %81 = arith.truncf %80 : vector<2x24x24xf32> to vector<2x24x24xbf16>
    "tpu.trace_start"() <{level = 10 : i32, message = "hqk,hkd->hqd"}> : () -> ()
    %cst_23 = arith.constant dense<0.000000e+00> : vector<2x24x16xf32>
    %82 = tpu.matmul %81, %66, %cst_23 {dimension_numbers = #tpu.dot_dimension_numbers<[2], [1], [1], [2], [0, 0, 0, 1, 1, 2], [0], [0]>} : vector<2x24x24xbf16>, vector<2x24x16xbf16>, vector<2x24x16xf32> -> vector<2x24x16xf32>
    "tpu.trace_stop"() : () -> ()
    %83 = tpu.transpose %82, [1, 0, 2] : vector<2x24x16xf32> -> vector<24x2x16xf32>
    %84 = vector.shape_cast %83 : vector<24x2x16xf32> to vector<24x32xf32>
    %85 = vector.extract_strided_slice %26 {offsets = [48, 0], sizes = [24, 96], strides = [1, 1]} : vector<96x96xf32> to vector<24x96xf32>
    %86 = vector.shape_cast %85 : vector<24x96xf32> to vector<24x6x16xf32>
    %87 = tpu.transpose %86, [1, 0, 2] : vector<24x6x16xf32> -> vector<6x24x16xf32>
    %88 = vector.extract_strided_slice %87 {offsets = [0, 0, 0], sizes = [2, 24, 16], strides = [1, 1, 1]} : vector<6x24x16xf32> to vector<2x24x16xf32>
    %cst_24 = arith.constant 2.500000e-01 : f32
    %89 = vector.broadcast %cst_24 : f32 to vector<2x24x16xf32>
    %90 = arith.mulf %88, %89 : vector<2x24x16xf32>
    %91 = arith.truncf %90 : vector<2x24x16xf32> to vector<2x24x16xbf16>
    %92 = vector.extract_strided_slice %87 {offsets = [2, 0, 0], sizes = [2, 24, 16], strides = [1, 1, 1]} : vector<6x24x16xf32> to vector<2x24x16xf32>
    %93 = arith.truncf %92 : vector<2x24x16xf32> to vector<2x24x16xbf16>
    %94 = vector.extract_strided_slice %87 {offsets = [4, 0, 0], sizes = [2, 24, 16], strides = [1, 1, 1]} : vector<6x24x16xf32> to vector<2x24x16xf32>
    %95 = arith.truncf %94 : vector<2x24x16xf32> to vector<2x24x16xbf16>
    "tpu.trace_start"() <{level = 10 : i32, message = "hqd,hkd->hqk"}> : () -> ()
    %cst_25 = arith.constant dense<0.000000e+00> : vector<2x24x24xf32>
    %96 = tpu.matmul %91, %93, %cst_25 {dimension_numbers = #tpu.dot_dimension_numbers<[2], [2], [1], [1], [0, 0, 0, 1, 1, 1], [0], [0]>} : vector<2x24x16xbf16>, vector<2x24x16xbf16>, vector<2x24x24xf32> -> vector<2x24x24xf32>
    "tpu.trace_stop"() : () -> ()
    %97 = vector.shape_cast %18 : vector<24x24xf32> to vector<1x24x24xf32>
    %98 = vector.broadcast %97 : vector<1x24x24xf32> to vector<2x24x24xf32>
    %99 = arith.addf %96, %98 : vector<2x24x24xf32>
    %cst_26 = arith.constant dense<0xFF800000> : vector<2x24xf32>
    %100 = vector.multi_reduction <maximumf>, %99, %cst_26 [2] : vector<2x24x24xf32> to vector<2x24xf32>
    %101 = vector.shape_cast %100 : vector<2x24xf32> to vector<2x24x1xf32>
    %102 = vector.broadcast %101 : vector<2x24x1xf32> to vector<2x24x24xf32>
    %103 = arith.subf %99, %102 : vector<2x24x24xf32>
    %104 = math.exp %103 : vector<2x24x24xf32>
    %cst_27 = arith.constant dense<0.000000e+00> : vector<2x24xf32>
    %105 = vector.multi_reduction <add>, %104, %cst_27 [2] : vector<2x24x24xf32> to vector<2x24xf32>
    %106 = vector.shape_cast %105 : vector<2x24xf32> to vector<2x24x1xf32>
    %107 = tpu.reciprocal %106 {approx = true} : vector<2x24x1xf32> -> vector<2x24x1xf32>
    %108 = vector.broadcast %107 : vector<2x24x1xf32> to vector<2x24x24xf32>
    %109 = arith.mulf %104, %108 : vector<2x24x24xf32>
    %110 = arith.truncf %109 : vector<2x24x24xf32> to vector<2x24x24xbf16>
    "tpu.trace_start"() <{level = 10 : i32, message = "hqk,hkd->hqd"}> : () -> ()
    %cst_28 = arith.constant dense<0.000000e+00> : vector<2x24x16xf32>
    %111 = tpu.matmul %110, %95, %cst_28 {dimension_numbers = #tpu.dot_dimension_numbers<[2], [1], [1], [2], [0, 0, 0, 1, 1, 2], [0], [0]>} : vector<2x24x24xbf16>, vector<2x24x16xbf16>, vector<2x24x16xf32> -> vector<2x24x16xf32>
    "tpu.trace_stop"() : () -> ()
    %112 = tpu.transpose %111, [1, 0, 2] : vector<2x24x16xf32> -> vector<24x2x16xf32>
    %113 = vector.shape_cast %112 : vector<24x2x16xf32> to vector<24x32xf32>
    %114 = vector.extract_strided_slice %26 {offsets = [72, 0], sizes = [24, 96], strides = [1, 1]} : vector<96x96xf32> to vector<24x96xf32>
    %115 = vector.shape_cast %114 : vector<24x96xf32> to vector<24x6x16xf32>
    %116 = tpu.transpose %115, [1, 0, 2] : vector<24x6x16xf32> -> vector<6x24x16xf32>
    %117 = vector.extract_strided_slice %116 {offsets = [0, 0, 0], sizes = [2, 24, 16], strides = [1, 1, 1]} : vector<6x24x16xf32> to vector<2x24x16xf32>
    %cst_29 = arith.constant 2.500000e-01 : f32
    %118 = vector.broadcast %cst_29 : f32 to vector<2x24x16xf32>
    %119 = arith.mulf %117, %118 : vector<2x24x16xf32>
    %120 = arith.truncf %119 : vector<2x24x16xf32> to vector<2x24x16xbf16>
    %121 = vector.extract_strided_slice %116 {offsets = [2, 0, 0], sizes = [2, 24, 16], strides = [1, 1, 1]} : vector<6x24x16xf32> to vector<2x24x16xf32>
    %122 = arith.truncf %121 : vector<2x24x16xf32> to vector<2x24x16xbf16>
    %123 = vector.extract_strided_slice %116 {offsets = [4, 0, 0], sizes = [2, 24, 16], strides = [1, 1, 1]} : vector<6x24x16xf32> to vector<2x24x16xf32>
    %124 = arith.truncf %123 : vector<2x24x16xf32> to vector<2x24x16xbf16>
    "tpu.trace_start"() <{level = 10 : i32, message = "hqd,hkd->hqk"}> : () -> ()
    %cst_30 = arith.constant dense<0.000000e+00> : vector<2x24x24xf32>
    %125 = tpu.matmul %120, %122, %cst_30 {dimension_numbers = #tpu.dot_dimension_numbers<[2], [2], [1], [1], [0, 0, 0, 1, 1, 1], [0], [0]>} : vector<2x24x16xbf16>, vector<2x24x16xbf16>, vector<2x24x24xf32> -> vector<2x24x24xf32>
    "tpu.trace_stop"() : () -> ()
    %126 = vector.shape_cast %18 : vector<24x24xf32> to vector<1x24x24xf32>
    %127 = vector.broadcast %126 : vector<1x24x24xf32> to vector<2x24x24xf32>
    %128 = arith.addf %125, %127 : vector<2x24x24xf32>
    %cst_31 = arith.constant dense<0xFF800000> : vector<2x24xf32>
    %129 = vector.multi_reduction <maximumf>, %128, %cst_31 [2] : vector<2x24x24xf32> to vector<2x24xf32>
    %130 = vector.shape_cast %129 : vector<2x24xf32> to vector<2x24x1xf32>
    %131 = vector.broadcast %130 : vector<2x24x1xf32> to vector<2x24x24xf32>
    %132 = arith.subf %128, %131 : vector<2x24x24xf32>
    %133 = math.exp %132 : vector<2x24x24xf32>
    %cst_32 = arith.constant dense<0.000000e+00> : vector<2x24xf32>
    %134 = vector.multi_reduction <add>, %133, %cst_32 [2] : vector<2x24x24xf32> to vector<2x24xf32>
    %135 = vector.shape_cast %134 : vector<2x24xf32> to vector<2x24x1xf32>
    %136 = tpu.reciprocal %135 {approx = true} : vector<2x24x1xf32> -> vector<2x24x1xf32>
    %137 = vector.broadcast %136 : vector<2x24x1xf32> to vector<2x24x24xf32>
    %138 = arith.mulf %133, %137 : vector<2x24x24xf32>
    %139 = arith.truncf %138 : vector<2x24x24xf32> to vector<2x24x24xbf16>
    "tpu.trace_start"() <{level = 10 : i32, message = "hqk,hkd->hqd"}> : () -> ()
    %cst_33 = arith.constant dense<0.000000e+00> : vector<2x24x16xf32>
    %140 = tpu.matmul %139, %124, %cst_33 {dimension_numbers = #tpu.dot_dimension_numbers<[2], [1], [1], [2], [0, 0, 0, 1, 1, 2], [0], [0]>} : vector<2x24x24xbf16>, vector<2x24x16xbf16>, vector<2x24x16xf32> -> vector<2x24x16xf32>
    "tpu.trace_stop"() : () -> ()
    %141 = tpu.transpose %140, [1, 0, 2] : vector<2x24x16xf32> -> vector<24x2x16xf32>
    %142 = vector.shape_cast %141 : vector<24x2x16xf32> to vector<24x32xf32>
    %143 = tpu.concatenate %55, %84, %113, %142 in 0 : vector<24x32xf32>, vector<24x32xf32>, vector<24x32xf32>, vector<24x32xf32> -> vector<96x32xf32>
    %144 = arith.truncf %143 : vector<96x32xf32> to vector<96x32xbf16>
    %c0_34 = arith.constant 0 : index
    %c0_35 = arith.constant 0 : index
    %c0_36 = arith.constant 0 : index
    %145 = vector.load %arg6[%c0_34, %c0_35, %c0_36] : memref<1x32x32xbf16, #tpu.memory_space<vmem>>, vector<1x32x32xbf16>
    %146 = vector.shape_cast %145 : vector<1x32x32xbf16> to vector<32x32xbf16>
    %cst_37 = arith.constant dense<0.000000e+00> : vector<96x32xf32>
    %147 = tpu.matmul %144, %146, %cst_37 {dimension_numbers = #tpu.dot_dimension_numbers<[1], [0], [0], [1], [0, 0, 1, 1], [], []>} : vector<96x32xbf16>, vector<32x32xbf16>, vector<96x32xf32> -> vector<96x32xf32>
    %148 = vector.broadcast %7 : vector<1x32xf32> to vector<96x32xf32>
    %149 = arith.addf %147, %148 : vector<96x32xf32>
    %150 = arith.addf %4, %149 : vector<96x32xf32>
    %cst_38 = arith.constant dense<0.000000e+00> : vector<96xf32>
    %151 = vector.multi_reduction <add>, %150, %cst_38 [1] : vector<96x32xf32> to vector<96xf32>
    %152 = vector.shape_cast %151 : vector<96xf32> to vector<96x1xf32>
    %cst_39 = arith.constant 3.200000e+01 : f32
    %153 = vector.broadcast %cst_39 : f32 to vector<96x1xf32>
    %154 = arith.divf %152, %153 : vector<96x1xf32>
    %155 = vector.broadcast %154 : vector<96x1xf32> to vector<96x32xf32>
    %156 = arith.subf %150, %155 : vector<96x32xf32>
    %157 = arith.mulf %156, %156 : vector<96x32xf32>
    %cst_40 = arith.constant dense<0.000000e+00> : vector<96xf32>
    %158 = vector.multi_reduction <add>, %157, %cst_40 [1] : vector<96x32xf32> to vector<96xf32>
    %159 = vector.shape_cast %158 : vector<96xf32> to vector<96x1xf32>
    %cst_41 = arith.constant 3.200000e+01 : f32
    %160 = vector.broadcast %cst_41 : f32 to vector<96x1xf32>
    %161 = arith.divf %159, %160 : vector<96x1xf32>
    %162 = vector.broadcast %154 : vector<96x1xf32> to vector<96x32xf32>
    %163 = arith.subf %150, %162 : vector<96x32xf32>
    %cst_42 = arith.constant 9.99999974E-6 : f32
    %164 = vector.broadcast %cst_42 : f32 to vector<96x1xf32>
    %165 = arith.addf %161, %164 : vector<96x1xf32>
    %166 = math.rsqrt %165 : vector<96x1xf32>
    %167 = vector.broadcast %166 : vector<96x1xf32> to vector<96x32xf32>
    %168 = arith.mulf %163, %167 : vector<96x32xf32>
    %169 = vector.broadcast %8 : vector<1x32xf32> to vector<96x32xf32>
    %170 = arith.mulf %168, %169 : vector<96x32xf32>
    %171 = vector.broadcast %9 : vector<1x32xf32> to vector<96x32xf32>
    %172 = arith.addf %170, %171 : vector<96x32xf32>
    %173 = arith.truncf %172 : vector<96x32xf32> to vector<96x32xbf16>
    %c0_43 = arith.constant 0 : index
    %c0_44 = arith.constant 0 : index
    %c0_45 = arith.constant 0 : index
    %174 = vector.load %arg7[%c0_43, %c0_44, %c0_45] : memref<1x32x128xbf16, #tpu.memory_space<vmem>>, vector<1x32x128xbf16>
    %175 = vector.shape_cast %174 : vector<1x32x128xbf16> to vector<32x128xbf16>
    %cst_46 = arith.constant dense<0.000000e+00> : vector<96x128xf32>
    %176 = tpu.matmul %173, %175, %cst_46 {dimension_numbers = #tpu.dot_dimension_numbers<[1], [0], [0], [1], [0, 0, 1, 1], [], []>} : vector<96x32xbf16>, vector<32x128xbf16>, vector<96x128xf32> -> vector<96x128xf32>
    %c0_47 = arith.constant 0 : index
    %c0_48 = arith.constant 0 : index
    %c0_49 = arith.constant 0 : index
    %177 = vector.load %arg8[%c0_47, %c0_48, %c0_49] : memref<1x1x128xf32, #tpu.memory_space<vmem>>, vector<1x1x128xf32>
    %178 = vector.shape_cast %177 : vector<1x1x128xf32> to vector<1x128xf32>
    %179 = vector.broadcast %178 : vector<1x128xf32> to vector<96x128xf32>
    %180 = arith.addf %176, %179 : vector<96x128xf32>
    %cst_50 = arith.constant 5.000000e-01 : f32
    %181 = vector.broadcast %cst_50 : f32 to vector<96x128xf32>
    %182 = arith.mulf %181, %180 : vector<96x128xf32>
    %cst_51 = arith.constant 1.41421354 : f32
    %183 = vector.broadcast %cst_51 : f32 to vector<96x128xf32>
    %184 = arith.divf %180, %183 : vector<96x128xf32>
    %185 = math.erf %184 : vector<96x128xf32>
    %cst_52 = arith.constant 1.000000e+00 : f32
    %186 = vector.broadcast %cst_52 : f32 to vector<96x128xf32>
    %187 = arith.addf %186, %185 : vector<96x128xf32>
    %188 = arith.mulf %182, %187 : vector<96x128xf32>
    %189 = arith.truncf %188 : vector<96x128xf32> to vector<96x128xbf16>
    %c0_53 = arith.constant 0 : index
    %c0_54 = arith.constant 0 : index
    %c0_55 = arith.constant 0 : index
    %190 = vector.load %arg9[%c0_53, %c0_54, %c0_55] : memref<1x128x32xbf16, #tpu.memory_space<vmem>>, vector<1x128x32xbf16>
    %191 = vector.shape_cast %190 : vector<1x128x32xbf16> to vector<128x32xbf16>
    %cst_56 = arith.constant dense<0.000000e+00> : vector<96x32xf32>
    %192 = tpu.matmul %189, %191, %cst_56 {dimension_numbers = #tpu.dot_dimension_numbers<[1], [0], [0], [1], [0, 0, 1, 1], [], []>} : vector<96x128xbf16>, vector<128x32xbf16>, vector<96x32xf32> -> vector<96x32xf32>
    %193 = vector.broadcast %10 : vector<1x32xf32> to vector<96x32xf32>
    %194 = arith.addf %192, %193 : vector<96x32xf32>
    %195 = arith.addf %172, %194 : vector<96x32xf32>
    %cst_57 = arith.constant dense<0.000000e+00> : vector<96xf32>
    %196 = vector.multi_reduction <add>, %195, %cst_57 [1] : vector<96x32xf32> to vector<96xf32>
    %197 = vector.shape_cast %196 : vector<96xf32> to vector<96x1xf32>
    %cst_58 = arith.constant 3.200000e+01 : f32
    %198 = vector.broadcast %cst_58 : f32 to vector<96x1xf32>
    %199 = arith.divf %197, %198 : vector<96x1xf32>
    %200 = vector.broadcast %199 : vector<96x1xf32> to vector<96x32xf32>
    %201 = arith.subf %195, %200 : vector<96x32xf32>
    %202 = arith.mulf %201, %201 : vector<96x32xf32>
    %cst_59 = arith.constant dense<0.000000e+00> : vector<96xf32>
    %203 = vector.multi_reduction <add>, %202, %cst_59 [1] : vector<96x32xf32> to vector<96xf32>
    %204 = vector.shape_cast %203 : vector<96xf32> to vector<96x1xf32>
    %cst_60 = arith.constant 3.200000e+01 : f32
    %205 = vector.broadcast %cst_60 : f32 to vector<96x1xf32>
    %206 = arith.divf %204, %205 : vector<96x1xf32>
    %207 = vector.broadcast %199 : vector<96x1xf32> to vector<96x32xf32>
    %208 = arith.subf %195, %207 : vector<96x32xf32>
    %cst_61 = arith.constant 9.99999974E-6 : f32
    %209 = vector.broadcast %cst_61 : f32 to vector<96x1xf32>
    %210 = arith.addf %206, %209 : vector<96x1xf32>
    %211 = math.rsqrt %210 : vector<96x1xf32>
    %212 = vector.broadcast %211 : vector<96x1xf32> to vector<96x32xf32>
    %213 = arith.mulf %208, %212 : vector<96x32xf32>
    %214 = vector.broadcast %11 : vector<1x32xf32> to vector<96x32xf32>
    %215 = arith.mulf %213, %214 : vector<96x32xf32>
    %216 = vector.broadcast %12 : vector<1x32xf32> to vector<96x32xf32>
    %217 = arith.addf %215, %216 : vector<96x32xf32>
    %218 = vector.shape_cast %217 : vector<96x32xf32> to vector<4x24x32xf32>
    %c0_62 = arith.constant 0 : index
    %c0_63 = arith.constant 0 : index
    %c0_64 = arith.constant 0 : index
    %219 = vector.load %arg11[%c0_62, %c0_63, %c0_64] : memref<4x24x32xf32, #tpu.memory_space<vmem>>, vector<4x24x32xf32>
    tpu.vector_store %arg11[%c0_62, %c0_63, %c0_64], %218 {strides = array<i32>} : memref<4x24x32xf32, #tpu.memory_space<vmem>>, vector<4x24x32xf32>,
    return
  }
  func.func @transform_0(%arg0: i32, %arg1: i32) -> (i32, i32, i32) {
    %c0_i32 = arith.constant 0 : i32
    %c0_i32_0 = arith.constant 0 : i32
    %c0_i32_1 = arith.constant 0 : i32
    return %arg0, %c0_i32, %c0_i32_0 : i32, i32, i32
  }
  func.func @transform_1(%arg0: i32, %arg1: i32) -> (i32, i32) {
    %c0_i32 = arith.constant 0 : i32
    %c0_i32_0 = arith.constant 0 : i32
    %c0_i32_1 = arith.constant 0 : i32
    return %c0_i32, %c0_i32_0 : i32, i32
  }
  func.func @transform_2(%arg0: i32, %arg1: i32) -> (i32, i32, i32) {
    %c0_i32 = arith.constant 0 : i32
    %c0_i32_0 = arith.constant 0 : i32
    %c0_i32_1 = arith.constant 0 : i32
    return %arg1, %c0_i32, %c0_i32_0 : i32, i32, i32
  }
  func.func @transform_3(%arg0: i32, %arg1: i32) -> (i32, i32, i32) {
    %c0_i32 = arith.constant 0 : i32
    %c0_i32_0 = arith.constant 0 : i32
    %c0_i32_1 = arith.constant 0 : i32
    return %arg1, %c0_i32, %c0_i32_0 : i32, i32, i32
  }
  func.func @transform_4(%arg0: i32, %arg1: i32) -> (i32, i32, i32) {
    %c0_i32 = arith.constant 0 : i32
    %c0_i32_0 = arith.constant 0 : i32
    %c0_i32_1 = arith.constant 0 : i32
    return %arg1, %c0_i32, %c0_i32_0 : i32, i32, i32
  }
  func.func @transform_5(%arg0: i32, %arg1: i32) -> (i32, i32, i32) {
    %c0_i32 = arith.constant 0 : i32
    %c0_i32_0 = arith.constant 0 : i32
    %c0_i32_1 = arith.constant 0 : i32
    return %arg1, %c0_i32, %c0_i32_0 : i32, i32, i32
  }
  func.func @transform_6(%arg0: i32, %arg1: i32) -> (i32, i32, i32) {
    %c0_i32 = arith.constant 0 : i32
    %c0_i32_0 = arith.constant 0 : i32
    %c0_i32_1 = arith.constant 0 : i32
    return %arg1, %c0_i32, %c0_i32_0 : i32, i32, i32
  }
  func.func @transform_7(%arg0: i32, %arg1: i32) -> (i32, i32, i32) {
    %c0_i32 = arith.constant 0 : i32
    %c0_i32_0 = arith.constant 0 : i32
    %c0_i32_1 = arith.constant 0 : i32
    return %arg1, %c0_i32, %c0_i32_0 : i32, i32, i32
  }
  func.func @transform_8(%arg0: i32, %arg1: i32) -> (i32, i32, i32) {
    %c0_i32 = arith.constant 0 : i32
    %c0_i32_0 = arith.constant 0 : i32
    %c0_i32_1 = arith.constant 0 : i32
    return %arg1, %c0_i32, %c0_i32_0 : i32, i32, i32
  }
  func.func @transform_9(%arg0: i32, %arg1: i32) -> (i32, i32, i32) {
    %c0_i32 = arith.constant 0 : i32
    %c0_i32_0 = arith.constant 0 : i32
    %c0_i32_1 = arith.constant 0 : i32
    return %arg0, %c0_i32, %c0_i32_0 : i32, i32, i32
  }
}

</mosaic_0001>

<bundles_post_ra>
// kernel: tpu_custom_call.1
= control target key start
LH: loop header
LB: loop body
LE: loop exit
PB: predicated region body
PF: predicated region fallthrough
CT: control target
= control target key end

     0   :  { %s11015_s0 = inlined_call_operand.vmem [shape: f32[4,24,32], index: 0, kind: input, shape index: {}]   ;;  %s11016_s1 = inlined_call_operand.vmem [shape: f32[2,32], index: 1, kind: input, shape index: {}]   ;;  %s11017_s2 = inlined_call_operand.vmem [shape: bf16[2,32,96], index: 2, kind: input, shape index: {}]   ;;  %s11018_s3 = inlined_call_operand.vmem [shape: f32[2,1,96], index: 3, kind: input, shape index: {}]   ;;  %s11019_s4 = inlined_call_operand.vmem [shape: bf16[2,32,32], index: 4, kind: input, shape index: {}]   ;;  %s11020_s5 = inlined_call_operand.hbm [shape: bf16[2,32,128], index: 5, kind: input, shape index: {}]   ;;  %s11021_s6 = inlined_call_operand.vmem [shape: f32[2,1,128], index: 6, kind: input, shape index: {}]   ;;  %s11022_s7 = inlined_call_operand.vmem [shape: bf16[2,128,32], index: 7, kind: input, shape index: {}]   ;;  %s11023_s8 = inlined_call_operand.vmem [shape: f32[2,6,32], index: 8, kind: input, shape index: {}]   ;;  %s11024_s9 = inlined_call_operand.hbm [shape: f32[4,24,32], index: 9, kind: output, shape index: {}]  }
   0x1   :  { %11028 = sst [smem:[#allocation11_spill]] %s11018_s3 }
   0x2   :  { %11029 = sst [smem:[#allocation12_spill]] %s11020_s5 }
   0x3   :  { %14 = vsyncpa [#allocation3], 0 }
   0x4   :  { %16 = vsyncpa [#allocation3 + $0x1], 0 }
   0x5   :  { %17 = vsyncpa [#allocation4], 0  ;;  %s8901_s30 = smov 0   ;;  %s8903_s10 = smov 0  }
   0x6   :  { %s8905_s11 = smov 0   ;;  %s8907_s12 = smov 0  }
   0x7   :  { %s8909_s13 = smov 0   ;;  %s8911_s14 = smov 0  }
   0x8 LB: > { %11030 = sst [smem:[#allocation8_spill]] %s8829_s13  ;;  %s11025_s15 = sadd.s32 4294967295, %s8833_s14   ;;  %s8833_s14 = sphi %s8911_s14, %s23_s14   ;;  %s8829_s13 = sphi %s8909_s13, %s11044_s13   ;;  %s8825_s12 = sphi %s8907_s12, %s11043_s12   ;;  %s8821_s11 = sphi %s8905_s11, %s11047_s11   ;;  %s8817_s10 = sphi %s8903_s10, %s11046_s10   ;;  %s8813_s30 = sphi %s8901_s30, %s11045_s30  }
   0x9   : > { %s32_s16 = sadd.s32 1, %s8829_s13  ;;  %s167_s17 = sadd.s32 1, %s8821_s11 }
   0xa   : > { %p33_p0 = scmp.ge.s32.totalorder %s32_s16, 2  ;;  %p174_p1 = scmp.ne.s32.totalorder %s8821_s11, %s8817_s10 }
   0xb   : > { %p175_p2 = scmp.eq.s32.totalorder %s8833_s14, 0  ;;  %p180_p4 = scmp.ne.s32.totalorder %s8817_s10, %s8813_s30 }
   0xc   : > { %s11049_s16 = smov (%p33_p0, %s32_s16), 0  ;;  %p181_p5 = scmp.eq.s32.totalorder %s11025_s15, 0 }
   0xd   : > { %11031 = sst [smem:[#allocation9_spill]] %s11049_s16  ;;  %p8937_p3 = por %p175_p2, %p174_p1 }
   0xe   : > { %s164_s19 = ssub.s32 %s8829_s13, %s11049_s16  ;;  %p8946_p7 = por %p181_p5, %p180_p4 }
   0xf   : > { %p165_p6 = scmp.eq.s32.totalorder %s164_s19, 0  ;;  %p8411_p8 = scmp.lt.s32.totalorder %s8833_s14, 2 }
  0x10   : > { %s343_s22 = sand.u32 1, %s8821_s11   ;;  %s8067_s23 = sshll.u32 %s8829_s13, 8 }
  0x11   : > { %s8952_s21 = scalar_select %p165_p6, %s8821_s11, %s167_s17  }
  0x12   : > { %s7862_s24 = sshll.u32 %s343_s22, 4  ;;  %s11035_s5 = sld [smem:[#allocation12_spill]] }
  0x13   : > { %11034 = sst [smem:[#allocation10_spill]] %s8952_s21  ;;  %s347_s28 = scalar_lea.vmem [#allocation2], %s7862_s24 }
  0x14   : > { %s354_s29 = sshll.u32 %s347_s28, 4  ;;  %p8961_p9 = pnand %p8411_p8, %p8937_p3  ;;  %s355_s29 = int_to_ptr.vmem [resolvable:$true] %s354_s29 }
  0x15   : > { %s344_s19 = scalar_lea.sflag [#allocation3], %s343_s22  ;;  %s8740_s17 = scalar_lea.vmem %s355_s29, 256 }
  0x16   : > { %p8729_p10 = pneg %p8961_p9  ;;  %p8741_p11 = scmp.ne.s32.totalorder %s355_s29, %s8740_s17 }
  0x17   : > { %s8835_s15 = smov [#allocation2]  }
  0x18   : > { %s353_s27 = scalar_lea.hbm %s11035_s5, %s8067_s23  ;;  %p8743_p12 = pnand %p8741_p11, %p8729_p10 }
  0x19   : > { %s8745_s16 = sshll.u32 %s8835_s15, 4  ;;  %s8746_s16 = int_to_ptr.vmem [resolvable:$false] %s8745_s16 }
  0x1a   : > { %p8744_p13 = pneg %p8743_p12  ;;  %s8747_s23 = scalar_lea.vmem %s8746_s16, 512 }
  0x1b   : > { %p8748_p0 = scmp.lt.s32.totalorder %s355_s29, %s8746_s16  ;;  %p8749_p1 = scmp.lt.s32.totalorder %s8747_s23, %s8740_s17 }
  0x1d   : > { %p8750_p2 = por %p8749_p1, %p8748_p0 }
  0x1f   : > { %p8751_p3 = pnand %p8750_p2, %p8744_p13 }
  0x21   : > { %8754 = shalt.err (!%p8751_p3)
}
  0x22   : > { %s8836_s18 = smov 64   ;;  %s8837_s22 = smov 4  }
  0x23   : > { %8410 = dma.hbm_to_vmem [thread:$0]  (!%p8961_p9), %s353_s27, 256, %s355_s29, %s344_s19, %s8836_s18, %s8836_s18, %s8837_s22  }
  0x24   : > { %p7865_p4 = scmp.ge.s32.totalorder %s8833_s14, 1  ;;  %p383_p5 = scmp.lt.s32.totalorder %s8833_s14, 3 }
  0x26   : > { %p384_p6 = pnand %p7865_p4, %p383_p5 }
  0x27   : > { %s389_s15 = sand.u32 (!%p384_p6), 1, %s8817_s10  }
  0x28   : > { %387 = sbr.rel (%p384_p6) target bundleno = 4986 (0x137a), region = 56  ;;  %s8972_s24 = sshll.u32 (!%p384_p6), %s389_s15, 4 }
  0x29   : > { %s390_s16 = scalar_lea.sflag (!%p384_p6), [#allocation3], %s389_s15 }
  0x2d   : > { %8804 = dma.done.wait (%p8946_p7), %s390_s16, 256  }
  0x2e   : > { %8806 = vsyncadd (%p8946_p7), %s390_s16, 4294967040  ;;  %p461_p8 = scmp.lt.s32.totalorder %s8825_s12, 1  ;;  %s11037_s3 = sld [smem:[#allocation11_spill]] }
  0x2f   : > { %p7874_p7 = scmp.ne.s32.totalorder %s8825_s12, 0 }
  0x30   : > { %s8981_s26 = scalar_select %p461_p8, %s8825_s12, 1 }
  0x32   : > { %s8068_s27 = sshll.u32 %s8981_s26, 4  ;;  %s476_s25 = scalar_lea.vmem %s11021_s6, %s8981_s26 }
  0x33   : > { %s8993_s20 = scalar_lea.vmem %s11017_s2, %s8068_s27  ;;  %s8998_s22 = scalar_lea.vmem %s11019_s4, %s8068_s27 }
  0x34   : > { %s8988_s30 = scalar_lea.vmem %s11037_s3, %s8981_s26  ;;  %s8070_s5 = sshll.u32 %s8981_s26, 6 }
  0x35   : > { %s9008_s28 = scalar_lea.vmem %s11022_s7, %s8070_s5  ;;  %s7873_s29 = sshll.u32 %s8981_s26, 3 }
  0x36   : > { %s9014_s17 = scalar_lea.vmem %s11023_s8, %s7873_s29  ;;  %491 = sbr.rel (%p7874_p7) target bundleno = 393 (0x189), region = 64 }
  0x3b   : > { %v492_v0 = vld [vmem:[%s11015_s0] sm:$0xff]  ;;  %vm506_vm0 = vcmask 261120   ;;  %v494_v1 = vld [vmem:[%s11015_s0 + $0x10] sm:$0xff]  ;;  %v493_v2 = vld [vmem:[%s11015_s0 + $0x8] sm:$0xff] }
  0x3c   : > { %v507_v3 = vsel %vm506_vm0, %v492_v0, 0.0  ;;  %v513_v4 = vsel %vm506_vm0, %v494_v1, 0.0  ;;  %v495_v5 = vld [vmem:[%s11015_s0 + $0x18] sm:$0xff]  ;;  %v510_v6 = vsel %vm506_vm0, %v493_v2, 0.0  ;;  %v496_v8 = vld [vmem:[%s11015_s0 + $0x20] sm:$0xff]  ;;  %v497_v9 = vld [vmem:[%s11015_s0 + $0x28] sm:$0xff] }
  0x3d   : > { %508 = vadd.xlane.f32.xlu0 %v507_v3  ;;  %514 = vadd.xlane.f32.xlu1 %v513_v4  ;;  %v516_v7 = vsel %vm506_vm0, %v495_v5, 0.0  ;;  %v519_v10 = vsel %vm506_vm0, %v496_v8, 0.0  ;;  %v522_v11 = vsel %vm506_vm0, %v497_v9, 0.0  ;;  %v498_v12 = vld [vmem:[%s11015_s0 + $0x30] sm:$0xff]  ;;  %v499_v13 = vld [vmem:[%s11015_s0 + $0x38] sm:$0xff]  ;;  %v500_v16 = vld [vmem:[%s11015_s0 + $0x40] sm:$0xff] }
  0x3e   : > { %v525_v14 = vsel %vm506_vm0, %v498_v12, 0.0  ;;  %v528_v15 = vsel %vm506_vm0, %v499_v13, 0.0  ;;  %v501_v17 = vld [vmem:[%s11015_s0 + $0x48] sm:$0xff]  ;;  %v531_v18 = vsel %vm506_vm0, %v500_v16, 0.0  ;;  %v9060_v20 = vld [vmem:[%s11015_s0 + $0x50] sm:$0xff]  ;;  %v9065_v21 = vld [vmem:[%s11015_s0 + $0x58] sm:$0xff] }
  0x3f   : > { %v534_v19 = vsel %vm506_vm0, %v501_v17, 0.0  ;;  %v537_v22 = vsel %vm506_vm0, %v9060_v20, 0.0  ;;  %v540_v23 = vsel %vm506_vm0, %v9065_v21, 0.0 }
  0x41   : > { %511 = vadd.xlane.f32.xlu0 %v510_v6  ;;  %517 = vadd.xlane.f32.xlu1 %v516_v7 }
  0x45   : > { %520 = vadd.xlane.f32.xlu0 %v519_v10  ;;  %523 = vadd.xlane.f32.xlu1 %v522_v11 }
  0x49   : > { %526 = vadd.xlane.f32.xlu0 %v525_v14  ;;  %529 = vadd.xlane.f32.xlu1 %v528_v15 }
  0x4d   : > { %532 = vadd.xlane.f32.xlu0 %v531_v18  ;;  %535 = vadd.xlane.f32.xlu1 %v534_v19 }
  0x51   : > { %538 = vadd.xlane.f32.xlu0 %v537_v22  ;;  %541 = vadd.xlane.f32.xlu1 %v540_v23 }
  0xc6   : > { %v509_v24 = vpop.xlane.xlu0 %508  ;;  %v515_v25 = vpop.xlane.xlu1 %514 }
  0xc7   : > { %v544_v26 = vmul.f32 0.03125, %v509_v24  ;;  %v546_v27 = vmul.f32 0.03125, %v515_v25 }
  0xc9   : > { %v9071_v28 = vsub.f32 %v492_v0, %v544_v26  ;;  %v9073_v29 = vsub.f32 %v494_v1, %v546_v27 }
  0xca   : > { %v512_v30 = vpop.xlane.xlu0 %511  ;;  %v518_v31 = vpop.xlane.xlu1 %517 }
  0xcb   : > { %v545_v32 = vmul.f32 0.03125, %v512_v30  ;;  %v547_v33 = vmul.f32 0.03125, %v518_v31  ;;  %v568_v34 = vmul.f32 %v9071_v28, %v9071_v28  ;;  %v570_v35 = vmul.f32 %v9073_v29, %v9073_v29 }
  0xcd   : > { %v9079_v36 = vsub.f32 %v493_v2, %v545_v32  ;;  %v9081_v37 = vsub.f32 %v495_v5, %v547_v33  ;;  %v580_v38 = vsel %vm506_vm0, %v568_v34, 0.0  ;;  %v586_v41 = vsel %vm506_vm0, %v570_v35, 0.0 }
  0xce   : > { %581 = vadd.xlane.f32.xlu0 %v580_v38  ;;  %v521_v39 = vpop.xlane.xlu0 %520  ;;  %v524_v40 = vpop.xlane.xlu1 %523 }
  0xcf   : > { %v548_v42 = vmul.f32 0.03125, %v521_v39  ;;  %v549_v43 = vmul.f32 0.03125, %v524_v40  ;;  %v569_v44 = vmul.f32 %v9079_v36, %v9079_v36  ;;  %v571_v45 = vmul.f32 %v9081_v37, %v9081_v37 }
  0xd1   : > { %v9089_v46 = vsub.f32 %v496_v8, %v548_v42  ;;  %v9091_v47 = vsub.f32 %v497_v9, %v549_v43  ;;  %v583_v48 = vsel %vm506_vm0, %v569_v44, 0.0  ;;  %v589_v51 = vsel %vm506_vm0, %v571_v45, 0.0 }
  0xd2   : > { %587 = vadd.xlane.f32.xlu0 %v586_v41  ;;  %584 = vadd.xlane.f32.xlu1 %v583_v48  ;;  %v527_v49 = vpop.xlane.xlu0 %526  ;;  %v530_v50 = vpop.xlane.xlu1 %529 }
  0xd3   : > { %v550_v52 = vmul.f32 0.03125, %v527_v49  ;;  %v551_v53 = vmul.f32 0.03125, %v530_v50  ;;  %v572_v54 = vmul.f32 %v9089_v46, %v9089_v46  ;;  %v573_v55 = vmul.f32 %v9091_v47, %v9091_v47 }
  0xd5   : > { %v9099_v56 = vsub.f32 %v498_v12, %v550_v52  ;;  %v9101_v57 = vsub.f32 %v499_v13, %v551_v53  ;;  %v592_v58 = vsel %vm506_vm0, %v572_v54, 0.0  ;;  %v595_v61 = vsel %vm506_vm0, %v573_v55, 0.0  ;;  %v9136_v52 = vld [vmem:[%s11016_s1] ss:$0 sm:$0xff] }
  0xd6   : > { %590 = vadd.xlane.f32.xlu1 %v589_v51  ;;  %593 = vadd.xlane.f32.xlu0 %v592_v58  ;;  %v533_v59 = vpop.xlane.xlu0 %532  ;;  %v536_v60 = vpop.xlane.xlu1 %535  ;;  %v9142_v58 = vld [vmem:[%s11016_s1 + $0x1] ss:$0 sm:$0xff] }
  0xd7   : > { %v552_v62 = vmul.f32 0.03125, %v533_v59  ;;  %v553_v63 = vmul.f32 0.03125, %v536_v60  ;;  %v574_v0 = vmul.f32 %v9099_v56, %v9099_v56  ;;  %v575_v1 = vmul.f32 %v9101_v57, %v9101_v57 }
  0xd9   : > { %v9109_v2 = vsub.f32 %v500_v16, %v552_v62  ;;  %v9111_v3 = vsub.f32 %v501_v17, %v553_v63  ;;  %v598_v4 = vsel %vm506_vm0, %v574_v0, 0.0  ;;  %v601_v7 = vsel %vm506_vm0, %v575_v1, 0.0 }
  0xda   : > { %596 = vadd.xlane.f32.xlu1 %v595_v61  ;;  %599 = vadd.xlane.f32.xlu0 %v598_v4  ;;  %v539_v5 = vpop.xlane.xlu0 %538  ;;  %v542_v6 = vpop.xlane.xlu1 %541 }
  0xdb   : > { %v554_v8 = vmul.f32 0.03125, %v539_v5  ;;  %v555_v9 = vmul.f32 0.03125, %v542_v6  ;;  %v576_v10 = vmul.f32 %v9109_v2, %v9109_v2  ;;  %v577_v11 = vmul.f32 %v9111_v3, %v9111_v3 }
  0xdd   : > { %v9120_v12 = vsub.f32 %v9060_v20, %v554_v8  ;;  %v9123_v13 = vsub.f32 %v9065_v21, %v555_v9  ;;  %v604_v14 = vsel %vm506_vm0, %v576_v10, 0.0  ;;  %v607_v15 = vsel %vm506_vm0, %v577_v11, 0.0 }
  0xde   : > { %602 = vadd.xlane.f32.xlu1 %v601_v7  ;;  %605 = vadd.xlane.f32.xlu0 %v604_v14 }
  0xdf   : > { %v578_v16 = vmul.f32 %v9120_v12, %v9120_v12  ;;  %v579_v17 = vmul.f32 %v9123_v13, %v9123_v13 }
  0xe1   : > { %v610_v18 = vsel %vm506_vm0, %v578_v16, 0.0  ;;  %v613_v19 = vsel %vm506_vm0, %v579_v17, 0.0 }
  0xe2   : > { %608 = vadd.xlane.f32.xlu1 %v607_v15  ;;  %611 = vadd.xlane.f32.xlu0 %v610_v18 }
  0xe6   : > { %614 = vadd.xlane.f32.xlu1 %v613_v19 }
 0x157   : > { %v582_v20 = vpop.xlane.xlu0 %581 }
 0x158   : > { %v616_v21 = vmul.f32 0.03125, %v582_v20 }
 0x15a   : > { %v628_v22 = vadd.f32 1e-05, %v616_v21 }
 0x15b   : > { %v585_v23 = vpop.xlane.xlu1 %584  ;;  %v588_v24 = vpop.xlane.xlu0 %587 }
 0x15c   : > { %8477 = vrsqrt.f32 %v628_v22  ;;  %v617_v25 = vmul.f32 0.03125, %v585_v23  ;;  %v618_v26 = vmul.f32 0.03125, %v588_v24 }
 0x15e   : > { %v629_v27 = vadd.f32 1e-05, %v617_v25  ;;  %v630_v30 = vadd.f32 1e-05, %v618_v26 }
 0x15f   : > { %v591_v31 = vpop.xlane.xlu1 %590  ;;  %v594_v32 = vpop.xlane.xlu0 %593 }
 0x160   : > { %8479 = vrsqrt.f32 %v629_v27  ;;  %v619_v33 = vmul.f32 0.03125, %v591_v31  ;;  %v620_v34 = vmul.f32 0.03125, %v594_v32 }
 0x161   : > { %8481 = vrsqrt.f32 %v630_v30 }
 0x162   : > { %v631_v35 = vadd.f32 1e-05, %v619_v33  ;;  %v632_v38 = vadd.f32 1e-05, %v620_v34 }
 0x163   : > { %v597_v39 = vpop.xlane.xlu1 %596  ;;  %v600_v40 = vpop.xlane.xlu0 %599 }
 0x164   : > { %8483 = vrsqrt.f32 %v631_v35  ;;  %v621_v41 = vmul.f32 0.03125, %v597_v39  ;;  %v622_v42 = vmul.f32 0.03125, %v600_v40 }
 0x165   : > { %8485 = vrsqrt.f32 %v632_v38 }
 0x166   : > { %v633_v43 = vadd.f32 1e-05, %v621_v41  ;;  %v634_v44 = vadd.f32 1e-05, %v622_v42 }
 0x167   : > { %v603_v45 = vpop.xlane.xlu1 %602  ;;  %v606_v48 = vpop.xlane.xlu0 %605 }
 0x168   : > { %8487 = vrsqrt.f32 %v633_v43  ;;  %v623_v49 = vmul.f32 0.03125, %v603_v45  ;;  %v624_v50 = vmul.f32 0.03125, %v606_v48 }
 0x169   : > { %v8478_v51 = vpop.eup %8477  ;;  %8489 = vrsqrt.f32 %v634_v44 }
 0x16a   : > { %v652_v53 = vmul.f32 %v8478_v51, %v9071_v28  ;;  %v635_v54 = vadd.f32 1e-05, %v623_v49  ;;  %v636_v55 = vadd.f32 1e-05, %v624_v50 }
 0x16b   : > { %v609_v59 = vpop.xlane.xlu1 %608  ;;  %v612_v60 = vpop.xlane.xlu0 %611 }
 0x16c   : > { %v668_v61 = vmul.f32 %v9136_v52, %v652_v53  ;;  %8491 = vrsqrt.f32 %v635_v54  ;;  %v625_v62 = vmul.f32 0.03125, %v609_v59  ;;  %v626_v63 = vmul.f32 0.03125, %v612_v60 }
 0x16d   : > { %v8480_v0 = vpop.eup %8479  ;;  %8493 = vrsqrt.f32 %v636_v55 }
 0x16e   : > { %v8482_v1 = vpop.eup %8481  ;;  %v684_v4 = vadd.f32 %v9142_v58, %v668_v61  ;;  %v653_v28 = vmul.f32 %v8480_v0, %v9079_v36  ;;  %v637_v5 = vadd.f32 1e-05, %v625_v62  ;;  %v638_v6 = vadd.f32 1e-05, %v626_v63 }
 0x16f   : > { %v654_v7 = vmul.f32 %v8482_v1, %v9073_v29  ;;  %v615_v8 = vpop.xlane.xlu1 %614 }
 0x170   : > { %696 = vst.msk [vmem:[#allocation5] sm:$0xff] %vm506_vm0, %v684_v4  ;;  %v669_v9 = vmul.f32 %v9136_v52, %v653_v28  ;;  %8495 = vrsqrt.f32 %v637_v5  ;;  %v627_v10 = vmul.f32 0.03125, %v615_v8 }
 0x171   : > { %v8484_v11 = vpop.eup %8483  ;;  %v670_v14 = vmul.f32 %v9136_v52, %v654_v7  ;;  %8497 = vrsqrt.f32 %v638_v6 }
 0x172   : > { %v8486_v15 = vpop.eup %8485  ;;  %v685_v16 = vadd.f32 %v9142_v58, %v669_v9  ;;  %v655_v36 = vmul.f32 %v8484_v11, %v9081_v37  ;;  %v639_v17 = vadd.f32 1e-05, %v627_v10 }
 0x173   : > { %v686_v18 = vadd.f32 %v9142_v58, %v670_v14  ;;  %v656_v29 = vmul.f32 %v8486_v15, %v9089_v46 }
 0x174   : > { %697 = vst.msk [vmem:[#allocation5 + $0x8] sm:$0xff] %vm506_vm0, %v685_v16  ;;  %v671_v19 = vmul.f32 %v9136_v52, %v655_v36  ;;  %8499 = vrsqrt.f32 %v639_v17 }
 0x175   : > { %v8488_v20 = vpop.eup %8487  ;;  %698 = vst.msk [vmem:[#allocation5 + $0x10] sm:$0xff] %vm506_vm0, %v686_v18  ;;  %v672_v21 = vmul.f32 %v9136_v52, %v656_v29 }
 0x176   : > { %v8490_v22 = vpop.eup %8489  ;;  %v687_v23 = vadd.f32 %v9142_v58, %v671_v19  ;;  %v657_v37 = vmul.f32 %v8488_v20, %v9091_v47 }
 0x177   : > { %v688_v24 = vadd.f32 %v9142_v58, %v672_v21  ;;  %v658_v25 = vmul.f32 %v8490_v22, %v9099_v56 }
 0x178   : > { %699 = vst.msk [vmem:[#allocation5 + $0x18] sm:$0xff] %vm506_vm0, %v687_v23  ;;  %v673_v46 = vmul.f32 %v9136_v52, %v657_v37 }
 0x179   : > { %v8492_v26 = vpop.eup %8491  ;;  %700 = vst.msk [vmem:[#allocation5 + $0x20] sm:$0xff] %vm506_vm0, %v688_v24  ;;  %v674_v27 = vmul.f32 %v9136_v52, %v658_v25 }
 0x17a   : > { %v8494_v30 = vpop.eup %8493  ;;  %v689_v31 = vadd.f32 %v9142_v58, %v673_v46  ;;  %v659_v32 = vmul.f32 %v8492_v26, %v9101_v57 }
 0x17b   : > { %v690_v47 = vadd.f32 %v9142_v58, %v674_v27  ;;  %v660_v33 = vmul.f32 %v8494_v30, %v9109_v2 }
 0x17c   : > { %701 = vst.msk [vmem:[#allocation5 + $0x28] sm:$0xff] %vm506_vm0, %v689_v31  ;;  %v675_v56 = vmul.f32 %v9136_v52, %v659_v32 }
 0x17d   : > { %v8496_v34 = vpop.eup %8495  ;;  %702 = vst.msk [vmem:[#allocation5 + $0x30] sm:$0xff] %vm506_vm0, %v690_v47  ;;  %v676_v35 = vmul.f32 %v9136_v52, %v660_v33 }
 0x17e   : > { %v8498_v38 = vpop.eup %8497  ;;  %v691_v39 = vadd.f32 %v9142_v58, %v675_v56  ;;  %v661_v40 = vmul.f32 %v8496_v34, %v9111_v3 }
 0x17f   : > { %v692_v57 = vadd.f32 %v9142_v58, %v676_v35  ;;  %v662_v41 = vmul.f32 %v8498_v38, %v9120_v12 }
 0x180   : > { %703 = vst.msk [vmem:[#allocation5 + $0x38] sm:$0xff] %vm506_vm0, %v691_v39  ;;  %v677_v2 = vmul.f32 %v9136_v52, %v661_v40 }
 0x181   : > { %v8500_v42 = vpop.eup %8499  ;;  %704 = vst.msk [vmem:[#allocation5 + $0x40] sm:$0xff] %vm506_vm0, %v692_v57  ;;  %v678_v43 = vmul.f32 %v9136_v52, %v662_v41 }
 0x182   : > { %v693_v44 = vadd.f32 %v9142_v58, %v677_v2  ;;  %v663_v45 = vmul.f32 %v8500_v42, %v9123_v13 }
 0x183   : > { %v694_v48 = vadd.f32 %v9142_v58, %v678_v43 }
 0x184   : > { %705 = vst.msk [vmem:[#allocation5 + $0x48] sm:$0xff] %vm506_vm0, %v693_v44  ;;  %v679_v3 = vmul.f32 %v9136_v52, %v663_v45 }
 0x185   : > { %706 = vst.msk [vmem:[#allocation5 + $0x50] sm:$0xff] %vm506_vm0, %v694_v48 }
 0x186   : > { %v695_v12 = vadd.f32 %v9142_v58, %v679_v3 }
 0x188   : > { %707 = vst.msk [vmem:[#allocation5 + $0x58] sm:$0xff] %vm506_vm0, %v695_v12 }
 0x189 PF: > { %v8531_v49 = vld [vmem:[%s8993_s20 + $0x8] sm:$0xff]   ;;  %v8532_v50 = vld [vmem:[%s8993_s20] sm:$0xff]   ;;  %vm762_vm1 = vcmask 261120   ;;  %v710_v53 = vld [vmem:[#allocation5 + $0x10] sm:$0xff]  ;;  %s8838_s20 = smov 80   ;;  %s8839_s5 = smov 112   ;;  %v721_v36 = vlaneseq }
 0x18a   : > { %8173 = vmatprep.subr.bf16.mxu1 %v8531_v49  ;;  %v708_v13 = vld [vmem:[#allocation5] sm:$0xff]  ;;  %v709_v51 = vld [vmem:[#allocation5 + $0x8] sm:$0xff]  ;;  %v711_v52 = vld [vmem:[#allocation5 + $0x18] sm:$0xff]  ;;  %s8840_s13 = smov 96   ;;  %s8841_s3 = smov 64   ;;  %vm1684_vm2 = vcmask 130048  }
 0x18b   : > { %8174 = vmatpush3.bf16.msra.mxu1 %v8531_v49  ;;  %v733_v54 = vpack.c.bf16 %v709_v51, %v708_v13  ;;  %v734_v55 = vpack.c.bf16 %v711_v52, %v710_v53  ;;  %v9196_v58 = vld [vmem:[%s8988_s30] ss:$0 sm:$0xff]  ;;  %v713_v28 = vld [vmem:[#allocation5 + $0x28] sm:$0xff]  ;;  %v714_v6 = vld [vmem:[#allocation5 + $0x30] sm:$0xff]  ;;  %v8842_v17 = vmov 1983009808  }
 0x18c   : > { %8175 = vmatprep.subr.bf16.mxu1 %v8532_v50  ;;  %v712_v4 = vld [vmem:[#allocation5 + $0x20] sm:$0xff]  ;;  %v715_v7 = vld [vmem:[#allocation5 + $0x38] sm:$0xff]  ;;  %v717_v10 = vld [vmem:[#allocation5 + $0x48] sm:$0xff]  ;;  %v913_v18 = vunpack.c.l.s4 %v8842_v17  ;;  %v8843_v29 = vmov 1934713408   ;;  %v9234_v20 = vshrl.u32 %v721_v36, 7 }
 0x18d   : > { %8177 = vmatprep.mubr.msk.bf16.mxu1 %vm762_vm1, %v733_v54  ;;  %v735_v5 = vpack.c.bf16 %v713_v28, %v712_v4  ;;  %v736_v8 = vpack.c.bf16 %v715_v7, %v714_v6  ;;  %v716_v9 = vld [vmem:[#allocation5 + $0x40] sm:$0xff]  ;;  %v718_v11 = vld [vmem:[#allocation5 + $0x50] sm:$0xff]  ;;  %v975_v19 = vunpack.c.l.s4 %v8843_v29  ;;  %vm1805_vm5 = vcmask 195584   ;;  %s8845_s12 = smov 48  }
 0x18e   : > { %v737_v14 = vpack.c.bf16 %v717_v10, %v716_v9  ;;  %v914_v21 = vunpack.c.0.s8 %v913_v18  ;;  %vm1882_vm7 = vcmask 1043456  }
 0x18f   : > { %8176 = vmatpush3.bf16.msra.mxu1 %v8532_v50  ;;  %v719_v15 = vld [vmem:[#allocation5 + $0x58] sm:$0xff]  ;;  %v976_v37 = vunpack.c.0.s8 %v975_v19 }
 0x190   : > { %v738_v16 = vpack.c.bf16 %v719_v15, %v718_v11  ;;  %v9237_v24 = vsub.s32 %v914_v21, %v9234_v20 }
 0x191   : > { %v9242_v32 = vsub.s32 %v976_v37, %v9234_v20 }
 0x192   : > { %8178 = vmatmul.mubr.msk.bf16.vlgmr.msra.gmra.mxu1 %vm762_vm1, %v734_v55 }
 0x193   : > { %8181 = vmatprep.mubr.msk.bf16.mxu1 %vm762_vm1, %v735_v5 }
 0x19a   : > { %8182 = vmatmul.mubr.msk.bf16.gmra.mxu1 %vm762_vm1, %v736_v8 }
 0x19b   : > { %8185 = vmatprep.mubr.msk.bf16.mxu1 %vm762_vm1, %v737_v14 }
 0x1a2   : > { %8186 = vmatmul.mubr.msk.bf16.gmra.mxu1 %vm762_vm1, %v738_v16 }
 0x252   : > { %v8179_v59 = vpop.f32.mrf.mxu1 }
 0x253   : > { %v9199_v60 = vadd.f32 %v8179_v59, %v9196_v58 }
 0x254   : > { %v815_v61 = vpop.f32.mrf.mxu1 }
 0x255   : > { %887 = vrot.lane.b32.xlu1 %v9199_v60, %s8838_s20  ;;  %869 = vrot.lane.b32.xlu0 %v9199_v60, %s8839_s5  ;;  %v9208_v63 = vadd.f32 %v9196_v58, %v815_v61 }
 0x256   : > { %v9205_v62 = vpop.f32.mrf.mxu1 }
 0x258   : > { %v818_v0 = vpop.f32.mrf.mxu1 }
 0x259   : > { %878 = vrot.lane.b32.xlu0 %v9199_v60, %s8840_s13  ;;  %865 = vrot.lane.b32.xlu1 %v9208_v63, %s8839_s5  ;;  %v9215_v1 = vadd.f32 %v9196_v58, %v818_v0 }
 0x25d   : > { %867 = vrot.lane.b32.xlu0 %v9215_v1, %s8839_s5  ;;  %874 = vrot.lane.b32.xlu1 %v9208_v63, %s8840_s13 }
 0x261   : > { %876 = vrot.lane.b32.xlu0 %v9215_v1, %s8840_s13  ;;  %883 = vrot.lane.b32.xlu1 %v9208_v63, %s8838_s20 }
 0x265   : > { %885 = vrot.lane.b32.xlu0 %v9215_v1, %s8838_s20  ;;  %896 = vrot.lane.b32.xlu1 %v9199_v60, %s8841_s3 }
 0x2c7   : > { %v888_v22 = vpop.permute.xlu1 %887  ;;  %v870_v23 = vpop.permute.xlu0 %869 }
 0x2c8   : > { %v1194_v25 = vcombine.low %v870_v23, %v888_v22  ;;  %v1195_v46 = vcombine.high %v870_v23, %v888_v22 }
 0x2ca   : > { %v1202_v47 = vrot.slane %v1194_v25, %v9237_v24  ;;  %v1209_v33 = vrot.slane %v1195_v46, %v9237_v24 }
 0x2cb   : > { %v879_v26 = vpop.permute.xlu0 %878  ;;  %v866_v27 = vpop.permute.xlu1 %865 }
 0x2cc   : > { %v1178_v30 = vcombine.low %v9199_v60, %v879_v26  ;;  %v1179_v31 = vcombine.high %v9199_v60, %v879_v26 }
 0x2ce   : > { %v1186_v56 = vrot.slane %v1178_v30, %v9237_v24  ;;  %v1193_v34 = vrot.slane %v1179_v31, %v9237_v24 }
 0x2cf   : > { %v868_v35 = vpop.permute.xlu0 %867  ;;  %v875_v38 = vpop.permute.xlu1 %874 }
 0x2d0   : > { %v1240_v39 = vcombine.low %v1186_v56, %v1202_v47  ;;  %v1241_v40 = vcombine.high %v1186_v56, %v1202_v47  ;;  %v1256_v57 = vcombine.low %v1193_v34, %v1209_v33  ;;  %v1257_v41 = vcombine.high %v1193_v34, %v1209_v33 }
 0x2d1   : > { %v910_v2 = vcombine.low %v9208_v63, %v875_v38  ;;  %v911_v42 = vcombine.high %v9208_v63, %v875_v38 }
 0x2d2   : > { %v1248_v43 = vrot.slane %v1240_v39, %v9242_v32  ;;  %v1255_v44 = vrot.slane %v1241_v40, %v9242_v32  ;;  %v1264_v45 = vrot.slane %v1256_v57, %v9242_v32  ;;  %v1271_v48 = vrot.slane %v1257_v41, %v9242_v32 }
 0x2d3   : > { %v877_v3 = vpop.permute.xlu0 %876  ;;  %v884_v12 = vpop.permute.xlu1 %883  ;;  %v918_v52 = vrot.slane %v910_v2, %v9237_v24  ;;  %v925_v55 = vrot.slane %v911_v42, %v9237_v24 }
 0x2d4   : > { %v7902_v49 = vcombine.low %v1248_v43, %v1255_v44  ;;  %v7904_v50 = vcombine.high %v1248_v43, %v1255_v44  ;;  %v7906_v13 = vcombine.low %v1264_v45, %v1271_v48  ;;  %v7908_v51 = vcombine.high %v1264_v45, %v1271_v48 }
 0x2d5   : > { %v926_v53 = vcombine.low %v866_v27, %v884_v12  ;;  %v927_v54 = vcombine.high %v866_v27, %v884_v12  ;;  %v1044_v59 = vcombine.low %v9215_v1, %v877_v3  ;;  %v1045_v61 = vcombine.high %v9215_v1, %v877_v3 }
 0x2d6   : > { %v9259_v0 = vrot.slane %v7902_v49, %v9237_v24  ;;  %v9262_v4 = vrot.slane %v7904_v50, %v9237_v24  ;;  %v9267_v7 = vrot.slane %v7906_v13, %v9237_v24  ;;  %v9270_v8 = vrot.slane %v7908_v51, %v9237_v24 }
 0x2d7   : > { %v934_v28 = vrot.slane %v926_v53, %v9237_v24  ;;  %v941_v5 = vrot.slane %v927_v54, %v9237_v24  ;;  %v886_v6 = vpop.permute.xlu0 %885  ;;  %v1052_v17 = vrot.slane %v1044_v59, %v9237_v24  ;;  %v1059_v18 = vrot.slane %v1045_v61, %v9237_v24 }
 0x2d8   : > { %v1060_v9 = vcombine.low %v868_v35, %v886_v6  ;;  %v1061_v10 = vcombine.high %v868_v35, %v886_v6  ;;  %v1612_v45 = vcombine.low %v9259_v0, %v9262_v4  ;;  %v1613_v48 = vcombine.high %v9259_v0, %v9262_v4 }
 0x2d9   : > { %v972_v11 = vcombine.low %v918_v52, %v934_v28  ;;  %v973_v14 = vcombine.high %v918_v52, %v934_v28  ;;  %v988_v15 = vcombine.low %v925_v55, %v941_v5  ;;  %v989_v16 = vcombine.high %v925_v55, %v941_v5 }
 0x2da   : > { %v1068_v29 = vrot.slane %v1060_v9, %v9237_v24  ;;  %v1075_v19 = vrot.slane %v1061_v10, %v9237_v24  ;;  %v1637_v3 = vcombine.high %v9267_v7, %v9270_v8  ;;  %v1636_v51 = vcombine.low %v9267_v7, %v9270_v8 }
 0x2db   : > { %v980_v21 = vrot.slane %v972_v11, %v9242_v32  ;;  %v987_v22 = vrot.slane %v973_v14, %v9242_v32  ;;  %v996_v23 = vrot.slane %v988_v15, %v9242_v32  ;;  %v1003_v37 = vrot.slane %v989_v16, %v9242_v32 }
 0x2dc   : > { %v1106_v25 = vcombine.low %v1052_v17, %v1068_v29  ;;  %v1107_v46 = vcombine.high %v1052_v17, %v1068_v29  ;;  %v1122_v26 = vcombine.low %v1059_v18, %v1075_v19  ;;  %v1123_v27 = vcombine.high %v1059_v18, %v1075_v19 }
 0x2dd   : > { %v7886_v30 = vcombine.low %v980_v21, %v987_v22  ;;  %v7888_v31 = vcombine.high %v980_v21, %v987_v22  ;;  %v7890_v47 = vcombine.low %v996_v23, %v1003_v37  ;;  %v7892_v33 = vcombine.high %v996_v23, %v1003_v37 }
 0x2de   : > { %v1114_v56 = vrot.slane %v1106_v25, %v9242_v32  ;;  %v1121_v34 = vrot.slane %v1107_v46, %v9242_v32  ;;  %v1130_v35 = vrot.slane %v1122_v26, %v9242_v32  ;;  %v1137_v38 = vrot.slane %v1123_v27, %v9242_v32 }
 0x2df   : > { %v1320_v39 = vrot.slane %v7886_v30, %v9237_v24  ;;  %v1336_v40 = vrot.slane %v7888_v31, %v9237_v24  ;;  %v1352_v57 = vrot.slane %v7890_v47, %v9237_v24  ;;  %v1368_v41 = vrot.slane %v7892_v33, %v9237_v24 }
 0x2e0   : > { %v7894_v2 = vcombine.low %v1114_v56, %v1121_v34  ;;  %v7896_v42 = vcombine.high %v1114_v56, %v1121_v34  ;;  %v7898_v43 = vcombine.low %v1130_v35, %v1137_v38  ;;  %v7900_v44 = vcombine.high %v1130_v35, %v1137_v38 }
 0x2e1   : > { %v1627_v53 = vrot.slane %v1613_v48, %v9242_v32  ;;  %v1651_v54 = vrot.slane %v1637_v3, %v9242_v32  ;;  %v1377_v52 = vcombine.high %v1320_v39, %v1336_v40  ;;  %v1401_v55 = vcombine.high %v1352_v57, %v1368_v41 }
 0x2e2   : > { %v1438_v12 = vrot.slane %v7894_v2, %v9237_v24  ;;  %v1454_v49 = vrot.slane %v7896_v42, %v9237_v24  ;;  %v1470_v50 = vrot.slane %v7898_v43, %v9237_v24  ;;  %v1486_v13 = vrot.slane %v7900_v44, %v9237_v24 }
 0x2e3   : > { %v1376_v0 = vcombine.low %v1320_v39, %v1336_v40  ;;  %v1662_v4 = vcombine.low %v1627_v53, %v1651_v54  ;;  %v1663_v28 = vcombine.high %v1627_v53, %v1651_v54  ;;  %v1391_v5 = vrot.slane %v1377_v52, %v9242_v32 }
 0x2e4   : > { %v1495_v59 = vcombine.high %v1438_v12, %v1454_v49  ;;  %v1519_v61 = vcombine.high %v1470_v50, %v1486_v13  ;;  %v1400_v6 = vcombine.low %v1352_v57, %v1368_v41  ;;  %v1415_v9 = vrot.slane %v1401_v55, %v9242_v32 }
 0x2e5   : > { %v1384_v8 = vrot.slane %v1376_v0, %v9242_v32  ;;  %v1677_v11 = vpack.c.bf16 %v1662_v4, %v1662_v4  ;;  %v1679_v14 = vpack.c.bf16 %v1663_v28, %v1663_v28  ;;  %v1494_v16 = vcombine.low %v1438_v12, %v1454_v49  ;;  %v9324_v12 = vpop.f32.mrf.mxu1 }
 0x2e6   : > { %v1509_v10 = vrot.slane %v1495_v59, %v9242_v32  ;;  %v1533_v7 = vrot.slane %v1519_v61, %v9242_v32  ;;  %v1408_v15 = vrot.slane %v1400_v6, %v9242_v32  ;;  %v1426_v17 = vcombine.low %v1391_v5, %v1415_v9 }
 0x2e7   : > { %v1427_v29 = vcombine.high %v1391_v5, %v1415_v9  ;;  %8377 = vmatprep.subr.msk.bf16.mxu1 %vm1684_vm2, %v1677_v11  ;;  %8379 = vmatprep.subr.msk.bf16.mxu0 %vm1684_vm2, %v1679_v14  ;;  %v1695_v21 = vsel %vm1684_vm2, %v1677_v11, 0  ;;  %v1755_v22 = vsel %vm1684_vm2, %v1679_v14, 0  ;;  %v1502_v23 = vrot.slane %v1494_v16, %v9242_v32  ;;  %v831_v49 = vpop.f32.mrf.mxu1 }
 0x2e8   : > { %v1544_v18 = vcombine.low %v1509_v10, %v1533_v7  ;;  %v1545_v19 = vcombine.high %v1509_v10, %v1533_v7  ;;  %8190 = vmatpush3.bf16.xpose.msra.mxu1 %v1695_v21  ;;  %8198 = vmatpush3.bf16.xpose.msra.mxu0 %v1755_v22  ;;  %v1518_v46 = vcombine.low %v1470_v50, %v1486_v13  ;;  %v724_v54 = vadd.s32 16, %v9234_v20 }
 0x2e9   : > { %v1620_v26 = vrot.slane %v1612_v45, %v9242_v32  ;;  %v1644_v27 = vrot.slane %v1636_v51, %v9242_v32  ;;  %v1424_v30 = vcombine.low %v1384_v8, %v1408_v15  ;;  %v1425_v47 = vcombine.high %v1384_v8, %v1408_v15  ;;  %v9326_v50 = vpop.f32.mrf.mxu1 }
 0x2ea   : > { %v1676_v37 = vpack.c.bf16 %v1544_v18, %v1426_v17  ;;  %v1678_v25 = vpack.c.bf16 %v1545_v19, %v1427_v29  ;;  %v1526_v31 = vrot.slane %v1518_v46, %v9242_v32  ;;  %v726_v52 = vand.u32 127, %v721_v36 }
 0x2eb   : > { %v1660_v38 = vcombine.low %v1620_v26, %v1644_v27  ;;  %v1661_v39 = vcombine.high %v1620_v26, %v1644_v27  ;;  %v1666_v40 = vmul.f32 0.25, %v1424_v30  ;;  %v1669_v41 = vmul.f32 0.25, %v1425_v47  ;;  %v834_v13 = vpop.f32.mrf.mxu1  ;;  %v897_v27 = vpop.permute.xlu1 %896 }
 0x2ec   : > { %8378 = vmatprep.subr.msk.bf16.mxu1 %vm1684_vm2, %v1676_v37  ;;  %8380 = vmatprep.subr.msk.bf16.mxu0 %vm1684_vm2, %v1678_v25  ;;  %v1542_v33 = vcombine.low %v1502_v23, %v1526_v31  ;;  %v1543_v56 = vcombine.high %v1502_v23, %v1526_v31  ;;  %v1692_v34 = vsel %vm1684_vm2, %v1676_v37, 0  ;;  %v1752_v35 = vsel %vm1684_vm2, %v1678_v25, 0 }
 0x2ed   : > { %v1668_v44 = vmul.f32 0.25, %v1660_v38  ;;  %v1671_v45 = vmul.f32 0.25, %v1661_v39  ;;  %v9328_v51 = vpop.f32.mrf.mxu1  ;;  %vm729_vm3 = vcmp.le.s32.totalorder %v726_v52, %v724_v54  ;;  %vm727_vm4 = vcmp.le.s32.totalorder %v726_v52, %v9234_v20 }
 0x2ee   : > { %v1667_v57 = vmul.f32 0.25, %v1542_v33  ;;  %v1670_v2 = vmul.f32 0.25, %v1543_v56  ;;  %v723_v59 = vadd.s32 8, %v9234_v20  ;;  %v8844_v0 = vmov -1e+30  }
 0x2ef   : > { %v1673_v48 = vpack.c.bf16 %v1668_v44, %v1668_v44  ;;  %v1675_v3 = vpack.c.bf16 %v1671_v45, %v1671_v45  ;;  %v9330_v53 = vpop.f32.mrf.mxu1  ;;  %v9340_v4 = vsel %vm729_vm3, 0.0, %v8844_v0  ;;  %v9342_v6 = vsel %vm727_vm4, 0.0, %v8844_v0 }
 0x2f0   : > { %8192 = vmatpush3.bf16.xpose.msra.mxu1 %v1692_v34  ;;  %8200 = vmatpush3.bf16.xpose.msra.mxu0 %v1752_v35  ;;  %v1672_v42 = vpack.c.bf16 %v1667_v57, %v1666_v40  ;;  %v1674_v43 = vpack.c.bf16 %v1670_v2, %v1669_v41  ;;  %vm728_vm6 = vcmp.le.s32.totalorder %v726_v52, %v723_v59  ;;  %v8846_v40 = vmov 0.0  }
 0x2f1   : > { %v9334_v55 = vpop.f32.mrf.mxu1  ;;  %v9349_v17 = vsel %vm728_vm6, 0.0, %v8844_v0  ;;  %v9365_v37 = vadd.f32 %v9196_v58, %v834_v13  ;;  %v9372_v25 = vadd.f32 %v9196_v58, %v831_v49  ;;  %v9389_v26 = vadd.f32 %v9205_v62, %v9196_v58 }
 0x2f2   : > { %8193 = vmatprep.mubr.msk.bf16.mxu1 %vm1684_vm2, %v1672_v42  ;;  %8201 = vmatprep.mubr.msk.bf16.mxu0 %vm1684_vm2, %v1674_v43  ;;  %v1210_v57 = vcombine.high %v897_v27, %v8846_v40  ;;  %v1217_v43 = vrot.slane %v897_v27, %v9237_v24 }
 0x2f3   : > { %v9338_v61 = vpop.f32.mrf.mxu1 }
 0x2f4   : > { %v1224_v49 = vrot.slane %v1210_v57, %v9237_v24 }
 0x2f7   : > { %8194 = vmatmul.mubr.msk.bf16.vlgmr.msra.gmra.mxu1 %vm1684_vm2, %v1673_v48  ;;  %8202 = vmatmul.mubr.msk.bf16.vlgmr.msra.gmra.mxu0 %vm1684_vm2, %v1675_v3 }
 0x3b7   : > { %v8195_v28 = vpop.f32.mrf.mxu1  ;;  %v8203_v5 = vpop.f32.mrf.mxu0 }
 0x3b8   : > { %v1740_v9 = vadd.f32 %v8195_v28, %v9340_v4  ;;  %v1800_v36 = vadd.f32 %v8203_v5, %v9340_v4 }
 0x3b9   : > { %v1731_v10 = vpop.f32.mrf.mxu1  ;;  %v1791_v7 = vpop.f32.mrf.mxu0 }
 0x3ba   : > { %v1732_v8 = vadd.f32 %v1731_v10, %v9342_v6  ;;  %v1821_v11 = vsel %vm1805_vm5, %v1800_v36, -inf  ;;  %v1812_v14 = vsel %vm1805_vm5, %v1740_v9, -inf  ;;  %v1792_v29 = vadd.f32 %v1791_v7, %v9342_v6 }
 0x3bb   : > { %1822 = vmax.xlane.f32.xlu1 %v1821_v11  ;;  %v8204_v15 = vpop.f32.mrf.mxu0  ;;  %1813 = vmax.xlane.f32.xlu0 %v1812_v14  ;;  %v8196_v16 = vpop.f32.mrf.mxu1 }
 0x3bc   : > { %v1806_v21 = vsel %vm1805_vm5, %v1732_v8, -inf  ;;  %v1815_v23 = vsel %vm1805_vm5, %v1792_v29, -inf }
 0x3bd   : > { %v1734_v18 = vpop.f32.mrf.mxu1 }
 0x3be   : > { %v1735_v19 = vadd.f32 %v1734_v18, %v9349_v17 }
 0x3bf   : > { %1807 = vmax.xlane.f32.xlu1 %v1806_v21 }
 0x3c0   : > { %v1809_v22 = vsel %vm1805_vm5, %v1735_v19, -inf }
 0x3c1   : > { %1810 = vmax.xlane.f32.xlu0 %v1809_v22 }
 0x3c3   : > { %1816 = vmax.xlane.f32.xlu1 %v1815_v23 }
 0x3d4   : > { %892 = vrot.lane.b32.xlu1 %v9208_v63, %s8841_s3 }
 0x3d7   : > { %905 = vrot.lane.b32.xlu0 %v9199_v60, %s8845_s12  ;;  %v1794_v60 = vpop.f32.mrf.mxu0 }
 0x3d8   : > { %894 = vrot.lane.b32.xlu1 %v9215_v1, %s8841_s3 }
 0x3dc   : > { %903 = vrot.lane.b32.xlu1 %v9215_v1, %s8845_s12  ;;  %v9379_v1 = vadd.f32 %v1794_v60, %v9349_v17 }
 0x3de   : > { %v1818_v46 = vsel %vm1805_vm5, %v9379_v1, -inf }
 0x3e0   : > { %2370 = vrot.lane.b32.xlu1 %v9365_v37, %s8840_s13 }
 0x3e4   : > { %2379 = vrot.lane.b32.xlu1 %v9365_v37, %s8838_s20 }
 0x3e8   : > { %2359 = vrot.lane.b32.xlu1 %v9372_v25, %s8839_s5 }
 0x3ec   : > { %2368 = vrot.lane.b32.xlu1 %v9372_v25, %s8840_s13 }
 0x3f6   : > { %1819 = vmax.xlane.f32.xlu0 %v1818_v46 }
 0x40c   : > { %901 = vrot.lane.b32.xlu0 %v9208_v63, %s8845_s12 }
 0x410   : > { %2361 = vrot.lane.b32.xlu0 %v9365_v37, %s8839_s5 }
 0x414   : > { %2357 = vrot.lane.b32.xlu0 %v9389_v26, %s8839_s5 }
 0x418   : > { %2366 = vrot.lane.b32.xlu0 %v9389_v26, %s8840_s13 }
 0x444   : > { %v1814_v30 = vpop.xlane.xlu0 %1813  ;;  %v1823_v31 = vpop.xlane.xlu1 %1822 }
 0x445   : > { %v1826_v47 = vsub.f32 %v1740_v9, %v1814_v30  ;;  %v1829_v33 = vsub.f32 %v1800_v36, %v1823_v31 }
 0x447   : > { %v1834_v56 = vmul.f32 1.442695, %v1826_v47  ;;  %v1840_v63 = vmul.f32 1.442695, %v1829_v33 }
 0x448   : > { %v1808_v34 = vpop.xlane.xlu1 %1807 }
 0x449   : > { %8545 = vpow2.f32 %v1834_v56  ;;  %v1824_v35 = vsub.f32 %v1732_v8, %v1808_v34 }
 0x44a   : > { %v1811_v38 = vpop.xlane.xlu0 %1810  ;;  %8547 = vpow2.f32 %v1840_v63 }
 0x44b   : > { %v1825_v39 = vsub.f32 %v1735_v19, %v1811_v38  ;;  %v1830_v58 = vmul.f32 1.442695, %v1824_v35 }
 0x44c   : > { %v1817_v62 = vpop.xlane.xlu1 %1816 }
 0x44d   : > { %v1832_v41 = vmul.f32 1.442695, %v1825_v39  ;;  %v1827_v2 = vsub.f32 %v1792_v29, %v1817_v62 }
 0x44e   : > { %v906_v42 = vpop.permute.xlu0 %905 }
 0x44f   : > { %8549 = vpow2.f32 %v1832_v41  ;;  %v1225_v44 = vcombine.high %v906_v42, %v8846_v40  ;;  %v1232_v45 = vrot.slane %v906_v42, %v9237_v24  ;;  %v1836_v48 = vmul.f32 1.442695, %v1827_v2 }
 0x450   : > { %8551 = vpow2.f32 %v1830_v58  ;;  %v9399_v3 = vpop.permute.xlu1 %892 }
 0x451   : > { %v1239_v13 = vrot.slane %v1225_v44, %v9237_v24  ;;  %v1272_v54 = vcombine.low %v1217_v43, %v1232_v45  ;;  %v1273_v52 = vcombine.high %v1217_v43, %v1232_v45  ;;  %8553 = vpow2.f32 %v1836_v48 }
 0x453   : > { %v1280_v59 = vrot.slane %v1272_v54, %v9242_v32  ;;  %v1287_v0 = vrot.slane %v1273_v52, %v9242_v32  ;;  %v1288_v28 = vcombine.low %v1224_v49, %v1239_v13  ;;  %v1289_v5 = vcombine.high %v1224_v49, %v1239_v13 }
 0x454   : > { %v895_v9 = vpop.permute.xlu1 %894 }
 0x455   : > { %v1296_v36 = vrot.slane %v1288_v28, %v9242_v32  ;;  %v1303_v10 = vrot.slane %v1289_v5, %v9242_v32  ;;  %v7903_v7 = vcombine.low %v1280_v59, %v1287_v0  ;;  %v7905_v8 = vcombine.high %v1280_v59, %v1287_v0 }
 0x456   : > { %v9407_v11 = vpop.eup %8545  ;;  %v1076_v14 = vcombine.high %v895_v9, %v8846_v40  ;;  %v1083_v19 = vrot.slane %v895_v9, %v9237_v24 }
 0x457   : > { %v1563_v15 = vrot.slane %v7903_v7, %v9237_v24  ;;  %v1579_v16 = vrot.slane %v7905_v8, %v9237_v24  ;;  %v7907_v18 = vcombine.low %v1296_v36, %v1303_v10  ;;  %v7909_v29 = vcombine.high %v1296_v36, %v1303_v10  ;;  %v9415_v23 = vpop.eup %8547 }
 0x458   : > { %v1848_v21 = vsel %vm1805_vm5, %v9407_v11, 0.0  ;;  %v904_v22 = vpop.permute.xlu1 %903  ;;  %v1090_v47 = vrot.slane %v1076_v14, %v9237_v24  ;;  %v1857_v35 = vsel %vm1805_vm5, %v9415_v23, 0.0 }
 0x459   : > { %v1595_v60 = vrot.slane %v7907_v18, %v9237_v24  ;;  %v1611_v46 = vrot.slane %v7909_v29, %v9237_v24  ;;  %1849 = vadd.xlane.f32.xlu0 %v1848_v21  ;;  %v1091_v27 = vcombine.high %v904_v22, %v8846_v40  ;;  %v1098_v30 = vrot.slane %v904_v22, %v9237_v24 }
 0x45a   : > { %v1628_v31 = vcombine.low %v1563_v15, %v1579_v16  ;;  %v942_v22 = vcombine.high %v9399_v3, %v8846_v40 }
 0x45b   : > { %v1105_v33 = vrot.slane %v1091_v27, %v9237_v24  ;;  %v1138_v56 = vcombine.low %v1083_v19, %v1098_v30  ;;  %v1139_v63 = vcombine.high %v1083_v19, %v1098_v30  ;;  %v1652_v38 = vcombine.low %v1595_v60, %v1611_v46 }
 0x45c   : > { %v9423_v34 = vpop.eup %8549  ;;  %v9434_v42 = vrot.slane %v1628_v31, %v9242_v32  ;;  %v2371_v60 = vpop.permute.xlu1 %2370  ;;  %v949_v30 = vrot.slane %v9399_v3, %v9237_v24 }
 0x45d   : > { %v9427_v39 = vpop.eup %8551  ;;  %v1146_v58 = vrot.slane %v1138_v56, %v9242_v32  ;;  %v1153_v62 = vrot.slane %v1139_v63, %v9242_v32  ;;  %v1154_v57 = vcombine.low %v1090_v47, %v1105_v33  ;;  %v1155_v41 = vcombine.high %v1090_v47, %v1105_v33  ;;  %1858 = vadd.xlane.f32.xlu0 %v1857_v35 }
 0x45e   : > { %v1845_v2 = vsel %vm1805_vm5, %v9423_v34, 0.0  ;;  %v9437_v43 = vrot.slane %v1652_v38, %v9242_v32  ;;  %v1842_v13 = vsel %vm1805_vm5, %v9427_v39, 0.0  ;;  %v9445_v52 = vpop.eup %8553  ;;  %v956_v33 = vrot.slane %v942_v22, %v9237_v24 }
 0x45f   : > { %v1162_v44 = vrot.slane %v1154_v57, %v9242_v32  ;;  %v1169_v45 = vrot.slane %v1155_v41, %v9242_v32  ;;  %v7895_v48 = vcombine.low %v1146_v58, %v1153_v62  ;;  %v7897_v49 = vcombine.high %v1146_v58, %v1153_v62  ;;  %1846 = vadd.xlane.f32.xlu1 %v1845_v2 }
 0x460   : > { %v1664_v54 = vcombine.low %v9434_v42, %v9437_v43  ;;  %v1851_v14 = vsel %vm1805_vm5, %v9445_v52, 0.0  ;;  %v2670_v35 = vcombine.low %v9365_v37, %v2371_v60  ;;  %v2671_v38 = vcombine.high %v9365_v37, %v2371_v60  ;;  %v2380_v62 = vpop.permute.xlu1 %2379 }
 0x461   : > { %v1445_v59 = vrot.slane %v7895_v48, %v9237_v24  ;;  %v1461_v0 = vrot.slane %v7897_v49, %v9237_v24  ;;  %v7899_v28 = vcombine.low %v1162_v44, %v1169_v45  ;;  %v7901_v5 = vcombine.high %v1162_v44, %v1169_v45  ;;  %1843 = vadd.xlane.f32.xlu0 %v1842_v13 }
 0x462   : > { %v1681_v9 = vpack.c.bf16 %v1664_v54, %v1664_v54 }
 0x463   : > { %v1477_v36 = vrot.slane %v7899_v28, %v9237_v24  ;;  %v1493_v10 = vrot.slane %v7901_v5, %v9237_v24  ;;  %v1510_v7 = vcombine.low %v1445_v59, %v1461_v0  ;;  %v2678_v59 = vrot.slane %v2670_v35, %v9237_v24 }
 0x464   : > { %8381 = vmatprep.subr.msk.bf16.mxu1 %vm1882_vm7, %v1681_v9  ;;  %v1884_v8 = vsel %vm1882_vm7, %v1681_v9, 0  ;;  %v2685_v0 = vrot.slane %v2671_v38, %v9237_v24 }
 0x465   : > { %8206 = vmatpush3.bf16.msra.mxu1 %v1884_v8  ;;  %1852 = vadd.xlane.f32.xlu0 %v1851_v14  ;;  %v1534_v15 = vcombine.low %v1477_v36, %v1493_v10  ;;  %v9456_v16 = vrot.slane %v1510_v7, %v9242_v32 }
 0x467   : > { %v9459_v18 = vrot.slane %v1534_v15, %v9242_v32 }
 0x469   : > { %v1547_v29 = vcombine.high %v9456_v16, %v9459_v18 }
 0x47b   : > { %2375 = vrot.lane.b32.xlu0 %v9389_v26, %s8838_s20 }
 0x47f   : > { %v1820_v19 = vpop.xlane.xlu0 %1819 }
 0x480   : > { %v1828_v21 = vsub.f32 %v9379_v1, %v1820_v19 }
 0x482   : > { %v1838_v46 = vmul.f32 1.442695, %v1828_v21 }
 0x483   : > { %v902_v27 = vpop.permute.xlu0 %901 }
 0x484   : > { %8555 = vpow2.f32 %v1838_v46  ;;  %v957_v31 = vcombine.high %v902_v27, %v8846_v40  ;;  %v964_v47 = vrot.slane %v902_v27, %v9237_v24 }
 0x486   : > { %v971_v56 = vrot.slane %v957_v31, %v9237_v24  ;;  %v1004_v63 = vcombine.low %v949_v30, %v964_v47  ;;  %v1005_v1 = vcombine.high %v949_v30, %v964_v47 }
 0x487   : > { %v2362_v58 = vpop.permute.xlu0 %2361 }
 0x488   : > { %v1012_v57 = vrot.slane %v1004_v63, %v9242_v32  ;;  %v1019_v3 = vrot.slane %v1005_v1, %v9242_v32  ;;  %v1020_v41 = vcombine.low %v956_v33, %v971_v56  ;;  %v1021_v2 = vcombine.high %v956_v33, %v971_v56 }
 0x489   : > { %v2686_v44 = vcombine.low %v2362_v58, %v2380_v62  ;;  %v2687_v45 = vcombine.high %v2362_v58, %v2380_v62 }
 0x48a   : > { %v1028_v48 = vrot.slane %v1020_v41, %v9242_v32  ;;  %v1035_v49 = vrot.slane %v1021_v2, %v9242_v32  ;;  %v7887_v13 = vcombine.low %v1012_v57, %v1019_v3  ;;  %v7889_v54 = vcombine.high %v1012_v57, %v1019_v3 }
 0x48b   : > { %v2694_v28 = vrot.slane %v2686_v44, %v9237_v24  ;;  %v2701_v5 = vrot.slane %v2687_v45, %v9237_v24  ;;  %v1546_v45 = vcombine.low %v9456_v16, %v9459_v18 }
 0x48c   : > { %v1327_v9 = vrot.slane %v7887_v13, %v9237_v24  ;;  %v1343_v36 = vrot.slane %v7889_v54, %v9237_v24  ;;  %v7891_v10 = vcombine.low %v1028_v48, %v1035_v49  ;;  %v7893_v7 = vcombine.high %v1028_v48, %v1035_v49 }
 0x48d   : > { %v2732_v8 = vcombine.low %v2678_v59, %v2694_v28  ;;  %v2733_v14 = vcombine.high %v2678_v59, %v2694_v28  ;;  %v2748_v15 = vcombine.low %v2685_v0, %v2701_v5  ;;  %v2749_v19 = vcombine.high %v2685_v0, %v2701_v5 }
 0x48e   : > { %v1359_v21 = vrot.slane %v7891_v10, %v9237_v24  ;;  %v1375_v22 = vrot.slane %v7893_v7, %v9237_v24  ;;  %v1392_v60 = vcombine.low %v1327_v9, %v1343_v36  ;;  %v1665_v48 = vcombine.high %v9434_v42, %v9437_v43 }
 0x48f   : > { %v2740_v46 = vrot.slane %v2732_v8, %v9242_v32  ;;  %v2747_v27 = vrot.slane %v2733_v14, %v9242_v32  ;;  %v2756_v30 = vrot.slane %v2748_v15, %v9242_v32  ;;  %v2763_v31 = vrot.slane %v2749_v19, %v9242_v32  ;;  %v2358_v15 = vpop.permute.xlu0 %2357  ;;  %v9526_v19 = vpop.permute.xlu1 %2359 }
 0x490   : > { %v1416_v47 = vcombine.low %v1359_v21, %v1375_v22  ;;  %v1399_v58 = vrot.slane %v1392_v60, %v9242_v32  ;;  %v1683_v42 = vpack.c.bf16 %v1665_v48, %v1665_v48 }
 0x491   : > { %v9492_v33 = vpop.eup %8555  ;;  %v7940_v56 = vcombine.low %v2740_v46, %v2747_v27  ;;  %v7942_v63 = vcombine.high %v2740_v46, %v2747_v27  ;;  %v7944_v1 = vcombine.low %v2756_v30, %v2763_v31  ;;  %v7946_v35 = vcombine.high %v2756_v30, %v2763_v31 }
 0x492   : > { %v1854_v38 = vsel %vm1805_vm5, %v9492_v33, 0.0  ;;  %v1423_v62 = vrot.slane %v1416_v47, %v9242_v32 }
 0x493   : > { %v3048_v57 = vrot.slane %v7940_v56, %v9237_v24  ;;  %v3064_v3 = vrot.slane %v7942_v63, %v9237_v24  ;;  %v3080_v41 = vrot.slane %v7944_v1, %v9237_v24  ;;  %v3096_v2 = vrot.slane %v7946_v35, %v9237_v24  ;;  %1855 = vadd.xlane.f32.xlu1 %v1854_v38  ;;  %v2367_v21 = vpop.permute.xlu0 %2366  ;;  %v2369_v60 = vpop.permute.xlu1 %2368 }
 0x494   : > { %v1428_v44 = vcombine.low %v1399_v58, %v1423_v62  ;;  %v1429_v49 = vcombine.high %v1399_v58, %v1423_v62  ;;  %v1941_v62 = vsel %vm1882_vm7, %v1683_v42, 0 }
 0x495   : > { %v3104_v13 = vcombine.low %v3048_v57, %v3064_v3  ;;  %v3128_v54 = vcombine.low %v3080_v41, %v3096_v2  ;;  %v3105_v59 = vcombine.high %v3048_v57, %v3064_v3  ;;  %v3129_v0 = vcombine.high %v3080_v41, %v3096_v2 }
 0x496   : > { %v1680_v28 = vpack.c.bf16 %v1546_v45, %v1428_v44  ;;  %v1682_v5 = vpack.c.bf16 %v1547_v29, %v1429_v49  ;;  %v2402_v41 = vcombine.low %v9389_v26, %v2367_v21  ;;  %v2403_v2 = vcombine.high %v9389_v26, %v2367_v21 }
 0x497   : > { %v3119_v9 = vrot.slane %v3105_v59, %v9242_v32  ;;  %v3143_v36 = vrot.slane %v3129_v0, %v9242_v32  ;;  %v9512_v10 = vrot.slane %v3104_v13, %v9242_v32  ;;  %v9515_v7 = vrot.slane %v3128_v54, %v9242_v32 }
 0x498   : > { %8207 = vmatprep.subr.bf16.mxu1 %v1680_v28  ;;  %v2410_v48 = vrot.slane %v2402_v41, %v9237_v24  ;;  %v2417_v49 = vrot.slane %v2403_v2, %v9237_v24  ;;  %v2537_v21 = vcombine.high %v9372_v25, %v2369_v60 }
 0x499   : > { %8208 = vmatpush3.bf16.msra.mxu1 %v1680_v28  ;;  %v3154_v43 = vcombine.low %v3119_v9, %v3143_v36  ;;  %v3155_v8 = vcombine.high %v3119_v9, %v3143_v36  ;;  %v3152_v14 = vcombine.low %v9512_v10, %v9515_v7  ;;  %v3153_v16 = vcombine.high %v9512_v10, %v9515_v7 }
 0x49a   : > { %8382 = vmatprep.subr.msk.bf16.mxu1 %vm1882_vm7, %v1683_v42 }
 0x49b   : > { %v3169_v18 = vpack.c.bf16 %v3154_v43, %v3154_v43  ;;  %v9534_v57 = vpack.c.bf16 %v3155_v8, %v3155_v8 }
 0x49d   : > { %8383 = vmatprep.subr.msk.bf16.mxu0 %vm1684_vm2, %v3169_v18  ;;  %v3186_v29 = vsel %vm1684_vm2, %v3169_v18, 0 }
 0x49e   : > { %8222 = vmatpush3.bf16.xpose.msra.mxu0 %v3186_v29 }
 0x4a4   : > { %2377 = vrot.lane.b32.xlu1 %v9372_v25, %s8838_s20 }
 0x4e2   : > { %v1850_v22 = vpop.xlane.xlu0 %1849 }
 0x4e3   : > { %8557 = vrcp.f32 %v1850_v22 }
 0x4e6   : > { %v1859_v46 = vpop.xlane.xlu0 %1858 }
 0x4e8   : > { %v1847_v27 = vpop.xlane.xlu1 %1846 }
 0x4e9   : > { %8559 = vrcp.f32 %v1847_v27 }
 0x4ea   : > { %v1844_v30 = vpop.xlane.xlu0 %1843 }
 0x4eb   : > { %8561 = vrcp.f32 %v1844_v30 }
 0x4ec   : > { %8563 = vrcp.f32 %v1859_v46 }
 0x4ee   : > { %v1853_v3 = vpop.xlane.xlu0 %1852 }
 0x4ef   : > { %8565 = vrcp.f32 %v1853_v3 }
 0x4f0   : > { %v8558_v31 = vpop.eup %8557 }
 0x4f1   : > { %v1868_v63 = vmul.f32 %v8558_v31, %v9407_v11 }
 0x4f2   : > { %v2376_v11 = vpop.permute.xlu0 %2375 }
 0x4f3   : > { %v1873_v58 = vpack.c.bf16 %v1868_v63, %v1868_v63 }
 0x4f6   : > { %v8560_v47 = vpop.eup %8559 }
 0x4f7   : > { %v1867_v35 = vmul.f32 %v8560_v47, %v9423_v34  ;;  %v2419_v34 = vcombine.high %v2358_v15, %v2376_v11 }
 0x4f8   : > { %v8562_v56 = vpop.eup %8561 }
 0x4f9   : > { %v1866_v1 = vmul.f32 %v8562_v56, %v9427_v39  ;;  %v2418_v39 = vcombine.low %v2358_v15, %v2376_v11  ;;  %v2433_v45 = vrot.slane %v2419_v34, %v9237_v24  ;;  %v2536_v15 = vcombine.low %v9372_v25, %v2369_v60  ;;  %v8564_v3 = vpop.eup %8563 }
 0x4fb   : > { %v1872_v38 = vpack.c.bf16 %v1867_v35, %v1866_v1  ;;  %v2426_v44 = vrot.slane %v2418_v39, %v9237_v24  ;;  %v2480_v59 = vcombine.low %v2417_v49, %v2433_v45  ;;  %v2481_v0 = vcombine.high %v2417_v49, %v2433_v45 }
 0x4fc   : > { %v2544_v63 = vrot.slane %v2536_v15, %v9237_v24  ;;  %v2551_v1 = vrot.slane %v2537_v21, %v9237_v24  ;;  %v8566_v49 = vpop.eup %8565 }
 0x4fd   : > { %8209 = vmatprep.mubr.msk.bf16.mxu1 %vm1805_vm5, %v1872_v38  ;;  %v2464_v13 = vcombine.low %v2410_v48, %v2426_v44  ;;  %v2465_v54 = vcombine.high %v2410_v48, %v2426_v44  ;;  %v2488_v9 = vrot.slane %v2480_v59, %v9242_v32  ;;  %v2495_v36 = vrot.slane %v2481_v0, %v9242_v32 }
 0x4fe   : > { %8210 = vmatmul.mubr.msk.bf16.vlgmr.msra.gmra.mxu1 %vm1805_vm5, %v1873_v58 }
 0x4ff   : > { %8214 = vmatpush3.bf16.msra.mxu1 %v1941_v62  ;;  %v2472_v28 = vrot.slane %v2464_v13, %v9242_v32  ;;  %v7928_v18 = vcombine.low %v2488_v9, %v2495_v36  ;;  %v7930_v29 = vcombine.high %v2488_v9, %v2495_v36 }
 0x500   : > { %8215 = vmatprep.subr.bf16.mxu1 %v1682_v5 }
 0x501   : > { %v2844_v47 = vrot.slane %v7928_v18, %v9237_v24  ;;  %v2860_v56 = vrot.slane %v7930_v29, %v9237_v24  ;;  %v1869_v29 = vmul.f32 %v8566_v49, %v9445_v52 }
 0x503   : > { %8216 = vmatpush3.bf16.msra.mxu1 %v1682_v5  ;;  %v2479_v5 = vrot.slane %v2465_v54, %v9242_v32  ;;  %v2892_v39 = vcombine.low %v2844_v47, %v2860_v56  ;;  %v2893_v48 = vcombine.high %v2844_v47, %v2860_v56 }
 0x504   : > { %8385 = vmatprep.subr.msk.bf16.mxu1 %vm1684_vm2, %v9534_v57 }
 0x505   : > { %v7924_v43 = vcombine.low %v2472_v28, %v2479_v5  ;;  %v7926_v8 = vcombine.high %v2472_v28, %v2479_v5  ;;  %v1871_v5 = vmul.f32 %v8564_v3, %v9415_v23  ;;  %v2900_v36 = vrot.slane %v2892_v39, %v9242_v32 }
 0x506   : > { %v2907_v23 = vrot.slane %v2893_v48, %v9242_v32 }
 0x507   : > { %v2812_v30 = vrot.slane %v7924_v43, %v9237_v24  ;;  %v2828_v31 = vrot.slane %v7926_v8, %v9237_v24  ;;  %v1875_v47 = vpack.c.bf16 %v1871_v5, %v1871_v5 }
 0x509   : > { %v2868_v11 = vcombine.low %v2812_v30, %v2828_v31  ;;  %v2869_v45 = vcombine.high %v2812_v30, %v2828_v31 }
 0x50b   : > { %v2876_v9 = vrot.slane %v2868_v11, %v9242_v32  ;;  %v2883_v21 = vrot.slane %v2869_v45, %v9242_v32 }
 0x50d   : > { %v2916_v56 = vcombine.low %v2876_v9, %v2900_v36 }
 0x50f   : > { %v3158_v39 = vmul.f32 0.25, %v2916_v56 }
 0x51c   : > { %v1856_v42 = vpop.xlane.xlu1 %1855 }
 0x51d   : > { %8567 = vrcp.f32 %v1856_v42 }
 0x520   : > { %v2378_v22 = vpop.permute.xlu1 %2377 }
 0x521   : > { %v2552_v46 = vcombine.low %v9526_v19, %v2378_v22  ;;  %v2553_v27 = vcombine.high %v9526_v19, %v2378_v22 }
 0x523   : > { %v2560_v35 = vrot.slane %v2552_v46, %v9237_v24  ;;  %v2567_v60 = vrot.slane %v2553_v27, %v9237_v24 }
 0x525   : > { %v2598_v38 = vcombine.low %v2544_v63, %v2560_v35  ;;  %v2599_v58 = vcombine.high %v2544_v63, %v2560_v35  ;;  %v2614_v62 = vcombine.low %v2551_v1, %v2567_v60  ;;  %v2615_v19 = vcombine.high %v2551_v1, %v2567_v60 }
 0x526   : > { %v2917_v63 = vcombine.high %v2876_v9, %v2900_v36  ;;  %v3246_v60 = vsel %vm1684_vm2, %v9534_v57, 0 }
 0x527   : > { %v2606_v34 = vrot.slane %v2598_v38, %v9242_v32  ;;  %v2613_v41 = vrot.slane %v2599_v58, %v9242_v32  ;;  %v2622_v2 = vrot.slane %v2614_v62, %v9242_v32  ;;  %v2629_v44 = vrot.slane %v2615_v19, %v9242_v32 }
 0x528   : > { %v2918_v38 = vcombine.low %v2883_v21, %v2907_v23  ;;  %v2919_v58 = vcombine.high %v2883_v21, %v2907_v23 }
 0x529   : > { %v7932_v13 = vcombine.low %v2606_v34, %v2613_v41  ;;  %v7934_v54 = vcombine.high %v2606_v34, %v2613_v41  ;;  %v7936_v59 = vcombine.low %v2622_v2, %v2629_v44  ;;  %v7938_v0 = vcombine.high %v2622_v2, %v2629_v44 }
 0x52a   : > { %v8568_v28 = vpop.eup %8567  ;;  %v3161_v34 = vmul.f32 0.25, %v2917_v63 }
 0x52b   : > { %v2930_v42 = vrot.slane %v7932_v13, %v9237_v24  ;;  %v2946_v43 = vrot.slane %v7934_v54, %v9237_v24  ;;  %v2962_v8 = vrot.slane %v7936_v59, %v9237_v24  ;;  %v2978_v18 = vrot.slane %v7938_v0, %v9237_v24 }
 0x52c   : > { %v1870_v15 = vmul.f32 %v8568_v28, %v9492_v33  ;;  %v3160_v13 = vmul.f32 0.25, %v3152_v14  ;;  %v3163_v0 = vmul.f32 0.25, %v3153_v16 }
 0x52d   : > { %v2987_v22 = vcombine.high %v2930_v42, %v2946_v43  ;;  %v3011_v46 = vcombine.high %v2962_v8, %v2978_v18  ;;  %v2986_v27 = vcombine.low %v2930_v42, %v2946_v43  ;;  %v3010_v30 = vcombine.low %v2962_v8, %v2978_v18 }
 0x52e   : > { %v1874_v31 = vpack.c.bf16 %v1870_v15, %v1869_v29  ;;  %v3165_v59 = vpack.c.bf16 %v3160_v13, %v3160_v13  ;;  %v3167_v28 = vpack.c.bf16 %v3163_v0, %v3163_v0 }
 0x52f   : > { %v3001_v1 = vrot.slane %v2987_v22, %v9242_v32  ;;  %v3025_v35 = vrot.slane %v3011_v46, %v9242_v32  ;;  %v2994_v52 = vrot.slane %v2986_v27, %v9242_v32  ;;  %v3018_v33 = vrot.slane %v3010_v30, %v9242_v32 }
 0x530   : > { %8217 = vmatprep.mubr.msk.bf16.mxu1 %vm1805_vm5, %v1874_v31 }
 0x531   : > { %8218 = vmatmul.mubr.msk.bf16.vlgmr.msra.gmra.mxu1 %vm1805_vm5, %v1875_v47  ;;  %v3036_v62 = vcombine.low %v3001_v1, %v3025_v35  ;;  %v3037_v19 = vcombine.high %v3001_v1, %v3025_v35  ;;  %v3034_v3 = vcombine.low %v2994_v52, %v3018_v33  ;;  %v3035_v11 = vcombine.high %v2994_v52, %v3018_v33 }
 0x532   : > { %8230 = vmatpush3.bf16.xpose.msra.mxu1 %v3246_v60 }
 0x533   : > { %v3168_v41 = vpack.c.bf16 %v3036_v62, %v2918_v38  ;;  %v3170_v2 = vpack.c.bf16 %v3037_v19, %v2919_v58  ;;  %v3159_v44 = vmul.f32 0.25, %v3034_v3  ;;  %v3162_v45 = vmul.f32 0.25, %v3035_v11 }
 0x535   : > { %8384 = vmatprep.subr.msk.bf16.mxu0 %vm1684_vm2, %v3168_v41  ;;  %8386 = vmatprep.subr.msk.bf16.mxu1 %vm1684_vm2, %v3170_v2  ;;  %v3183_v57 = vsel %vm1684_vm2, %v3168_v41, 0  ;;  %v3164_v48 = vpack.c.bf16 %v3159_v44, %v3158_v39  ;;  %v3166_v49 = vpack.c.bf16 %v3162_v45, %v3161_v34  ;;  %v3243_v54 = vsel %vm1684_vm2, %v3170_v2, 0 }
 0x536   : > { %8224 = vmatpush3.bf16.xpose.msra.mxu0 %v3183_v57 }
 0x537   : > { %8225 = vmatprep.mubr.msk.bf16.mxu0 %vm1684_vm2, %v3164_v48  ;;  %8233 = vmatprep.mubr.msk.bf16.mxu1 %vm1684_vm2, %v3166_v49 }
 0x53a   : > { %8232 = vmatpush3.bf16.xpose.msra.mxu1 %v3243_v54 }
 0x53d   : > { %8226 = vmatmul.mubr.msk.bf16.vlgmr.msra.gmra.mxu0 %vm1684_vm2, %v3165_v59 }
 0x541   : > { %8234 = vmatmul.mubr.msk.bf16.vlgmr.msra.gmra.mxu1 %vm1684_vm2, %v3167_v28 }
 0x5be   : > { %v8211_v5 = vpop.f32.mrf.mxu1 }
 0x5bf   : > { %v2123_v42 = vcombine.high %v8211_v5, %v8846_v40  ;;  %v2130_v18 = vrot.slane %v8211_v5, %v9237_v24 }
 0x5c0   : > { %v1920_v9 = vpop.f32.mrf.mxu1 }
 0x5c1   : > { %v1991_v14 = vcombine.high %v1920_v9, %v8846_v40  ;;  %v2137_v7 = vrot.slane %v2123_v42, %v9237_v24  ;;  %v1998_v46 = vrot.slane %v1920_v9, %v9237_v24 }
 0x5c2   : > { %v8212_v36 = vpop.f32.mrf.mxu1 }
 0x5c3   : > { %v2005_v27 = vrot.slane %v1991_v14, %v9237_v24 }
 0x5c4   : > { %v1923_v43 = vpop.f32.mrf.mxu1 }
 0x5c5   : > { %v2057_v35 = vcombine.high %v1923_v43, %v8846_v40 }
 0x5f1   : > { %v8219_v8 = vpop.f32.mrf.mxu1 }
 0x5f2   : > { %v2138_v29 = vcombine.high %v8219_v8, %v8846_v40  ;;  %v2145_v10 = vrot.slane %v8219_v8, %v9237_v24 }
 0x5f3   : > { %v1977_v16 = vpop.f32.mrf.mxu1 }
 0x5f4   : > { %v2152_v15 = vrot.slane %v2138_v29, %v9237_v24  ;;  %v2153_v21 = vcombine.low %v2130_v18, %v2145_v10  ;;  %v2154_v23 = vcombine.high %v2130_v18, %v2145_v10  ;;  %v2006_v22 = vcombine.high %v1977_v16, %v8846_v40 }
 0x5f5   : > { %v2013_v30 = vrot.slane %v1977_v16, %v9237_v24  ;;  %v8220_v31 = vpop.f32.mrf.mxu1  ;;  %v2064_v18 = vrot.slane %v1923_v43, %v9237_v24  ;;  %v2071_v29 = vrot.slane %v2057_v35, %v9237_v24 }
 0x5f6   : > { %v2161_v47 = vrot.slane %v2153_v21, %v9242_v32  ;;  %v2168_v56 = vrot.slane %v2154_v23, %v9242_v32  ;;  %v2169_v63 = vcombine.low %v2137_v7, %v2152_v15  ;;  %v2170_v1 = vcombine.high %v2137_v7, %v2152_v15 }
 0x5f7   : > { %v2020_v52 = vrot.slane %v2006_v22, %v9237_v24  ;;  %v2021_v33 = vcombine.low %v1998_v46, %v2013_v30  ;;  %v2022_v60 = vcombine.high %v1998_v46, %v2013_v30  ;;  %v1980_v41 = vpop.f32.mrf.mxu1 }
 0x5f8   : > { %v2177_v38 = vrot.slane %v2169_v63, %v9242_v32  ;;  %v2184_v58 = vrot.slane %v2170_v1, %v9242_v32  ;;  %v2289_v62 = vcombine.low %v2161_v47, %v2168_v56  ;;  %v7922_v19 = vcombine.high %v2161_v47, %v2168_v56 }
 0x5f9   : > { %v2029_v3 = vrot.slane %v2021_v33, %v9242_v32  ;;  %v2036_v11 = vrot.slane %v2022_v60, %v9242_v32  ;;  %v2037_v39 = vcombine.low %v2005_v27, %v2020_v52  ;;  %v2038_v34 = vcombine.high %v2005_v27, %v2020_v52 }
 0x5fa   : > { %v2296_v2 = vrot.slane %v2289_v62, %v9237_v24  ;;  %v2304_v44 = vrot.slane %v7922_v19, %v9237_v24  ;;  %v2305_v45 = vcombine.low %v2177_v38, %v2184_v58  ;;  %v7923_v57 = vcombine.high %v2177_v38, %v2184_v58 }
 0x5fb   : > { %v2045_v48 = vrot.slane %v2037_v39, %v9242_v32  ;;  %v2052_v49 = vrot.slane %v2038_v34, %v9242_v32  ;;  %v2189_v13 = vcombine.low %v2029_v3, %v2036_v11  ;;  %v7918_v54 = vcombine.high %v2029_v3, %v2036_v11 }
 0x5fc   : > { %v2312_v59 = vrot.slane %v2305_v45, %v9237_v24  ;;  %v2320_v0 = vrot.slane %v7923_v57, %v9237_v24  ;;  %v2321_v28 = vcombine.low %v2296_v2, %v2304_v44  ;;  %v2072_v5 = vcombine.high %v1980_v41, %v8846_v40 }
 0x5fd   : > { %v2196_v9 = vrot.slane %v2189_v13, %v9237_v24  ;;  %v2204_v36 = vrot.slane %v7918_v54, %v9237_v24  ;;  %v2205_v42 = vcombine.low %v2045_v48, %v2052_v49  ;;  %v7919_v14 = vcombine.high %v2045_v48, %v2052_v49  ;;  %v8227_v8 = vpop.f32.mrf.mxu0 }
 0x5fe   : > { %v2079_v10 = vrot.slane %v1980_v41, %v9237_v24  ;;  %v2086_v7 = vrot.slane %v2072_v5, %v9237_v24  ;;  %v2329_v22 = vcombine.low %v2312_v59, %v2320_v0  ;;  %v9650_v57 = vrot.slane %v2321_v28, %v9242_v32 }
 0x5ff   : > { %v2212_v16 = vrot.slane %v2205_v42, %v9237_v24  ;;  %v2220_v15 = vrot.slane %v7919_v14, %v9237_v24  ;;  %v2221_v21 = vcombine.low %v2196_v9, %v2204_v36  ;;  %v3222_v23 = vpop.f32.mrf.mxu0  ;;  %v3231_v59 = vadd.f32 %v8227_v8, %v9340_v4 }
 0x600   : > { %v2087_v46 = vcombine.low %v2064_v18, %v2079_v10  ;;  %v2088_v27 = vcombine.high %v2064_v18, %v2079_v10  ;;  %v2103_v30 = vcombine.low %v2071_v29, %v2086_v7  ;;  %v2104_v31 = vcombine.high %v2071_v29, %v2086_v7 }
 0x601   : > { %v3223_v47 = vadd.f32 %v3222_v23, %v9342_v6  ;;  %v8235_v43 = vpop.f32.mrf.mxu1  ;;  %v8228_v56 = vpop.f32.mrf.mxu0  ;;  %v2229_v63 = vcombine.low %v2212_v16, %v2220_v15  ;;  %v9638_v62 = vrot.slane %v2221_v21, %v9242_v32  ;;  %v9644_v3 = vrot.slane %v2329_v22, %v9242_v32 }
 0x602   : > { %v2095_v1 = vrot.slane %v2087_v46, %v9242_v32  ;;  %v2102_v35 = vrot.slane %v2088_v27, %v9242_v32  ;;  %v2111_v52 = vrot.slane %v2103_v30, %v9242_v32  ;;  %v2118_v33 = vrot.slane %v2104_v31, %v9242_v32 }
 0x603   : > { %v3282_v60 = vpop.f32.mrf.mxu1  ;;  %v3225_v38 = vpop.f32.mrf.mxu0  ;;  %v3296_v58 = vsel %vm1805_vm5, %v3223_v47, -inf  ;;  %v9641_v19 = vrot.slane %v2229_v63, %v9242_v32  ;;  %v2338_v5 = vcombine.high %v9650_v57, %v9644_v3  ;;  %v2337_v42 = vcombine.low %v9650_v57, %v9644_v3 }
 0x604   : > { %v2239_v11 = vcombine.low %v2095_v1, %v2102_v35  ;;  %v7920_v39 = vcombine.high %v2095_v1, %v2102_v35  ;;  %v2255_v34 = vcombine.low %v2111_v52, %v2118_v33  ;;  %v7921_v41 = vcombine.high %v2111_v52, %v2118_v33  ;;  %3297 = vmax.xlane.f32.xlu0 %v3296_v58 }
 0x605   : > { %v3226_v2 = vadd.f32 %v3225_v38, %v9349_v17  ;;  %v8236_v44 = vpop.f32.mrf.mxu1  ;;  %v2238_v45 = vcombine.high %v9638_v62, %v9641_v19  ;;  %v2237_v9 = vcombine.low %v9638_v62, %v9641_v19  ;;  %v3302_v8 = vsel %vm1805_vm5, %v3231_v59, -inf }
 0x606   : > { %v2246_v48 = vrot.slane %v2239_v11, %v9237_v24  ;;  %v2254_v49 = vrot.slane %v7920_v39, %v9237_v24  ;;  %v2262_v13 = vrot.slane %v2255_v34, %v9237_v24  ;;  %v2270_v54 = vrot.slane %v7921_v41, %v9237_v24  ;;  %v9706_v34 = vld [vmem:[%s8988_s30] ss:$0 sm:$0xff]  ;;  %s8847_s30 = smov 16  }
 0x607   : > { %v3299_v0 = vsel %vm1805_vm5, %v3226_v2, -inf  ;;  %v3291_v63 = vadd.f32 %v8235_v43, %v9340_v4  ;;  %v3285_v58 = vpop.f32.mrf.mxu1  ;;  %v9710_v41 = vadd.f32 %v9706_v34, %v9330_v53  ;;  %v9730_v53 = vadd.f32 %v9706_v34, %v9326_v50 }
 0x608   : > { %v2271_v28 = vcombine.low %v2246_v48, %v2254_v49  ;;  %3300 = vmax.xlane.f32.xlu1 %v3299_v0  ;;  %v2279_v36 = vcombine.low %v2262_v13, %v2270_v54  ;;  %v3286_v43 = vadd.f32 %v3285_v58, %v9349_v17 }
 0x609   : > { %v3311_v33 = vsel %vm1805_vm5, %v3291_v63, -inf }
 0x60a   : > { %v9665_v14 = vrot.slane %v2271_v28, %v9242_v32  ;;  %v9668_v18 = vrot.slane %v2279_v36, %v9242_v32 }
 0x60c   : > { %3303 = vmax.xlane.f32.xlu1 %v3302_v8  ;;  %v2288_v29 = vcombine.high %v9665_v14, %v9668_v18  ;;  %v2287_v10 = vcombine.low %v9665_v14, %v9668_v18 }
 0x60e   : > { %v9675_v7 = vpack.i.bf16 %v2288_v29, %v2238_v45 }
 0x61d   : > { %2388 = vrot.lane.b32.xlu1 %v9365_v37, %s8841_s3 }
 0x68d   : > { %v3298_v16 = vpop.xlane.xlu0 %3297 }
 0x68e   : > { %v3314_v23 = vsub.f32 %v3223_v47, %v3298_v16  ;;  %v3283_v47 = vadd.f32 %v3282_v60, %v9342_v6  ;;  %v3308_v60 = vsel %vm1805_vm5, %v3286_v43, -inf }
 0x690   : > { %v3320_v30 = vmul.f32 1.442695, %v3314_v23  ;;  %v3305_v11 = vsel %vm1805_vm5, %v3283_v47, -inf }
 0x691   : > { %v3301_v15 = vpop.xlane.xlu1 %3300 }
 0x692   : > { %v3315_v21 = vsub.f32 %v3226_v2, %v3301_v15  ;;  %v9718_v2 = vadd.f32 %v9706_v34, %v9324_v12 }
 0x694   : > { %v3322_v22 = vmul.f32 1.442695, %v3315_v21 }
 0x695   : > { %v3304_v46 = vpop.xlane.xlu1 %3303 }
 0x696   : > { %8569 = vpow2.f32 %v3322_v22  ;;  %v3316_v27 = vsub.f32 %v3231_v59, %v3304_v46 }
 0x698   : > { %v3324_v31 = vmul.f32 1.442695, %v3316_v27 }
 0x699   : > { %v2389_v12 = vpop.permute.xlu1 %2388 }
 0x69a   : > { %8571 = vpow2.f32 %v3324_v31  ;;  %v2702_v28 = vcombine.high %v2389_v12, %v8846_v40  ;;  %v2709_v15 = vrot.slane %v2389_v12, %v9237_v24 }
 0x69b   : > { %8573 = vpow2.f32 %v3320_v30 }
 0x69c   : > { %v2716_v23 = vrot.slane %v2702_v28, %v9237_v24 }
 0x6a3   : > { %v9679_v56 = vpop.eup %8569 }
 0x6a4   : > { %v3335_v1 = vsel %vm1805_vm5, %v9679_v56, 0.0 }
 0x6a5   : > { %3336 = vadd.xlane.f32.xlu0 %v3335_v1 }
 0x6a7   : > { %v9684_v35 = vpop.eup %8571 }
 0x6a8   : > { %v3338_v52 = vsel %vm1805_vm5, %v9684_v35, 0.0  ;;  %v9690_v38 = vpop.eup %8573 }
 0x6a9   : > { %3339 = vadd.xlane.f32.xlu1 %v3338_v52  ;;  %3312 = vmax.xlane.f32.xlu0 %v3311_v33  ;;  %v3332_v39 = vsel %vm1805_vm5, %v9690_v38, 0.0 }
 0x6ad   : > { %3306 = vmax.xlane.f32.xlu0 %v3305_v11  ;;  %3333 = vadd.xlane.f32.xlu1 %v3332_v39 }
 0x6b1   : > { %3309 = vmax.xlane.f32.xlu0 %v3308_v60 }
 0x6be   : > { %2384 = vrot.lane.b32.xlu1 %v9389_v26, %s8841_s3 }
 0x6c2   : > { %2386 = vrot.lane.b32.xlu1 %v9372_v25, %s8841_s3 }
 0x6c6   : > { %2395 = vrot.lane.b32.xlu1 %v9372_v25, %s8845_s12 }
 0x6c7   : > { %2397 = vrot.lane.b32.xlu0 %v9365_v37, %s8845_s12 }
 0x6ca   : > { %3859 = vrot.lane.b32.xlu1 %v9710_v41, %s8840_s13 }
 0x6cb   : > { %2393 = vrot.lane.b32.xlu0 %v9389_v26, %s8845_s12 }
 0x6ce   : > { %3846 = vrot.lane.b32.xlu1 %v9718_v2, %s8839_s5 }
 0x6cf   : > { %3850 = vrot.lane.b32.xlu0 %v9710_v41, %s8839_s5 }
 0x6d2   : > { %3855 = vrot.lane.b32.xlu1 %v9718_v2, %s8840_s13 }
 0x6d3   : > { %3868 = vrot.lane.b32.xlu0 %v9710_v41, %s8838_s20 }
 0x6d7   : > { %3848 = vrot.lane.b32.xlu0 %v9730_v53, %s8839_s5 }
 0x6db   : > { %3857 = vrot.lane.b32.xlu0 %v9730_v53, %s8840_s13 }
 0x72e   : > { %v3337_v37 = vpop.xlane.xlu0 %3336 }
 0x72f   : > { %8575 = vrcp.f32 %v3337_v37 }
 0x732   : > { %v3340_v25 = vpop.xlane.xlu1 %3339  ;;  %v3313_v26 = vpop.xlane.xlu0 %3312 }
 0x733   : > { %v3319_v44 = vsub.f32 %v3291_v63, %v3313_v26 }
 0x735   : > { %v3330_v13 = vmul.f32 1.442695, %v3319_v44 }
 0x736   : > { %v3334_v45 = vpop.xlane.xlu1 %3333  ;;  %v3307_v48 = vpop.xlane.xlu0 %3306 }
 0x737   : > { %v3317_v49 = vsub.f32 %v3283_v47, %v3307_v48  ;;  %8577 = vpow2.f32 %v3330_v13 }
 0x738   : > { %8579 = vrcp.f32 %v3334_v45 }
 0x739   : > { %v3326_v54 = vmul.f32 1.442695, %v3317_v49 }
 0x73a   : > { %v2385_v59 = vpop.permute.xlu1 %2384  ;;  %v3310_v50 = vpop.xlane.xlu0 %3309 }
 0x73b   : > { %v3318_v0 = vsub.f32 %v3286_v43, %v3310_v50  ;;  %8581 = vpow2.f32 %v3326_v54  ;;  %v2434_v43 = vcombine.high %v2385_v59, %v8846_v40  ;;  %v2441_v45 = vrot.slane %v2385_v59, %v9237_v24 }
 0x73c   : > { %v8576_v13 = vpop.eup %8575 }
 0x73d   : > { %v3328_v36 = vmul.f32 1.442695, %v3318_v0  ;;  %v2448_v59 = vrot.slane %v2434_v43, %v9237_v24 }
 0x73e   : > { %v2387_v8 = vpop.permute.xlu1 %2386  ;;  %v2398_v29 = vpop.permute.xlu0 %2397 }
 0x73f   : > { %v2717_v16 = vcombine.high %v2398_v29, %v8846_v40  ;;  %v2724_v21 = vrot.slane %v2398_v29, %v9237_v24  ;;  %8583 = vpow2.f32 %v3328_v36  ;;  %v2568_v46 = vcombine.high %v2387_v8, %v8846_v40 }
 0x740   : > { %v2575_v27 = vrot.slane %v2387_v8, %v9237_v24  ;;  %8585 = vrcp.f32 %v3340_v25 }
 0x741   : > { %v2731_v22 = vrot.slane %v2717_v16, %v9237_v24  ;;  %v2764_v30 = vcombine.low %v2709_v15, %v2724_v21  ;;  %v2765_v31 = vcombine.high %v2709_v15, %v2724_v21  ;;  %v2582_v54 = vrot.slane %v2568_v46, %v9237_v24 }
 0x742   : > { %v2396_v63 = vpop.permute.xlu1 %2395  ;;  %v2394_v1 = vpop.permute.xlu0 %2393 }
 0x743   : > { %v2780_v47 = vcombine.low %v2716_v23, %v2731_v22  ;;  %v2781_v52 = vcombine.high %v2716_v23, %v2731_v22  ;;  %v2583_v33 = vcombine.high %v2396_v63, %v8846_v40  ;;  %v2590_v58 = vrot.slane %v2396_v63, %v9237_v24 }
 0x744   : > { %v2772_v11 = vrot.slane %v2764_v30, %v9242_v32  ;;  %v2779_v39 = vrot.slane %v2765_v31, %v9242_v32  ;;  %v2449_v60 = vcombine.high %v2394_v1, %v8846_v40  ;;  %v2456_v44 = vrot.slane %v2394_v1, %v9237_v24  ;;  %v9759_v21 = vpop.eup %8577 }
 0x745   : > { %v2788_v12 = vrot.slane %v2780_v47, %v9242_v32  ;;  %v2795_v37 = vrot.slane %v2781_v52, %v9242_v32  ;;  %v2630_v26 = vcombine.low %v2575_v27, %v2590_v58  ;;  %v2597_v48 = vrot.slane %v2583_v33, %v9237_v24  ;;  %v8580_v22 = vpop.eup %8579 }
 0x746   : > { %v2631_v49 = vcombine.high %v2575_v27, %v2590_v58  ;;  %v7941_v50 = vcombine.low %v2772_v11, %v2779_v39  ;;  %v7943_v0 = vcombine.high %v2772_v11, %v2779_v39  ;;  %v2463_v28 = vrot.slane %v2449_v60, %v9237_v24  ;;  %v3851_v36 = vpop.permute.xlu0 %3850  ;;  %v3860_v30 = vpop.permute.xlu1 %3859 }
 0x747   : > { %v7945_v8 = vcombine.low %v2788_v12, %v2795_v37  ;;  %v7947_v29 = vcombine.high %v2788_v12, %v2795_v37  ;;  %v2638_v16 = vrot.slane %v2630_v26, %v9242_v32  ;;  %v2496_v23 = vcombine.low %v2441_v45, %v2456_v44 }
 0x748   : > { %v2645_v15 = vrot.slane %v2631_v49, %v9242_v32  ;;  %v2646_v27 = vcombine.low %v2582_v54, %v2597_v48  ;;  %v2497_v46 = vcombine.high %v2441_v45, %v2456_v44  ;;  %v3357_v31 = vmul.f32 %v8576_v13, %v9679_v56  ;;  %v9763_v63 = vpop.eup %8581 }
 0x749   : > { %v3055_v1 = vrot.slane %v7941_v50, %v9237_v24  ;;  %v2647_v47 = vcombine.high %v2582_v54, %v2597_v48  ;;  %v2512_v52 = vcombine.low %v2448_v59, %v2463_v28  ;;  %v2513_v33 = vcombine.high %v2448_v59, %v2463_v28 }
 0x74a   : > { %v3071_v58 = vrot.slane %v7943_v0, %v9237_v24  ;;  %v3087_v11 = vrot.slane %v7945_v8, %v9237_v24  ;;  %v3103_v43 = vrot.slane %v7947_v29, %v9237_v24  ;;  %v7933_v39 = vcombine.low %v2638_v16, %v2645_v15  ;;  %v3869_v37 = vpop.permute.xlu0 %3868 }
 0x74b   : > { %v7935_v25 = vcombine.high %v2638_v16, %v2645_v15  ;;  %v2504_v60 = vrot.slane %v2496_v23, %v9242_v32  ;;  %v2511_v12 = vrot.slane %v2497_v46, %v9242_v32  ;;  %v4159_v56 = vcombine.low %v9710_v41, %v3860_v30 }
 0x74c   : > { %v9772_v26 = vpop.eup %8583  ;;  %v4160_v44 = vcombine.high %v9710_v41, %v3860_v30  ;;  %v3347_v45 = vsel %vm1805_vm5, %v9759_v21, 0.0  ;;  %v3356_v48 = vmul.f32 %v8580_v22, %v9690_v38  ;;  %v3341_v49 = vsel %vm1805_vm5, %v9763_v63, 0.0 }
 0x74d   : > { %v2654_v13 = vrot.slane %v2646_v27, %v9242_v32  ;;  %v2661_v54 = vrot.slane %v2647_v47, %v9242_v32  ;;  %v2520_v50 = vrot.slane %v2512_v52, %v9242_v32  ;;  %v2527_v0 = vrot.slane %v2513_v33, %v9242_v32  ;;  %3348 = vadd.xlane.f32.xlu0 %v3347_v45 }
 0x74e   : > { %v9785_v28 = vrot.slane %v7933_v39, %v9237_v24  ;;  %v3362_v8 = vpack.c.bf16 %v3357_v31, %v3356_v48  ;;  %3342 = vadd.xlane.f32.xlu1 %v3341_v49  ;;  %v4175_v29 = vcombine.low %v3851_v36, %v3869_v37  ;;  %v4176_v16 = vcombine.high %v3851_v36, %v3869_v37 }
 0x74f   : > { %v9788_v38 = vrot.slane %v7935_v25, %v9237_v24  ;;  %v7925_v15 = vcombine.low %v2504_v60, %v2511_v12  ;;  %v7927_v59 = vcombine.high %v2504_v60, %v2511_v12  ;;  %v4167_v23 = vrot.slane %v4159_v56, %v9237_v24 }
 0x750   : > { %v4174_v22 = vrot.slane %v4160_v44, %v9237_v24  ;;  %8241 = vmatprep.mubr.msk.bf16.mxu0 %vm1805_vm5, %v3362_v8  ;;  %v4183_v27 = vrot.slane %v4175_v29, %v9237_v24  ;;  %v4190_v46 = vrot.slane %v4176_v16, %v9237_v24  ;;  %v3344_v30 = vsel %vm1805_vm5, %v9772_v26, 0.0 }
 0x751   : > { %v7937_v31 = vcombine.low %v2654_v13, %v2661_v54  ;;  %v7929_v36 = vcombine.low %v2520_v50, %v2527_v0  ;;  %v7931_v47 = vcombine.high %v2520_v50, %v2527_v0  ;;  %3345 = vadd.xlane.f32.xlu0 %v3344_v30  ;;  %v3120_v52 = vcombine.low %v3055_v1, %v3071_v58  ;;  %v8586_v0 = vpop.eup %8585 }
 0x752   : > { %v4221_v33 = vcombine.low %v4167_v23, %v4183_v27  ;;  %v4222_v39 = vcombine.high %v4167_v23, %v4183_v27  ;;  %v4237_v25 = vcombine.low %v4174_v22, %v4190_v46  ;;  %v4238_v60 = vcombine.high %v4174_v22, %v4190_v46 }
 0x753   : > { %v7939_v12 = vcombine.high %v2654_v13, %v2661_v54  ;;  %v2819_v56 = vrot.slane %v7925_v15, %v9237_v24  ;;  %v2835_v37 = vrot.slane %v7927_v59, %v9237_v24  ;;  %v3144_v44 = vcombine.low %v3087_v11, %v3103_v43 }
 0x754   : > { %v4229_v45 = vrot.slane %v4221_v33, %v9242_v32  ;;  %v4236_v48 = vrot.slane %v4222_v39, %v9242_v32  ;;  %v4245_v49 = vrot.slane %v4237_v25, %v9242_v32  ;;  %v4252_v50 = vrot.slane %v4238_v60, %v9242_v32 }
 0x755   : > { %v3127_v1 = vrot.slane %v3120_v52, %v9242_v32  ;;  %v3151_v58 = vrot.slane %v3144_v44, %v9242_v32  ;;  %v2851_v13 = vrot.slane %v7929_v36, %v9237_v24  ;;  %v2867_v54 = vrot.slane %v7931_v47, %v9237_v24 }
 0x756   : > { %v7978_v8 = vcombine.low %v4229_v45, %v4236_v48  ;;  %v7980_v29 = vcombine.high %v4229_v45, %v4236_v48  ;;  %v7982_v11 = vcombine.low %v4245_v49, %v4252_v50  ;;  %v7984_v43 = vcombine.high %v4245_v49, %v4252_v50 }
 0x757   : > { %v3156_v16 = vcombine.low %v3127_v1, %v3151_v58  ;;  %v3157_v15 = vcombine.high %v3127_v1, %v3151_v58  ;;  %v2884_v59 = vcombine.low %v2819_v56, %v2835_v37  ;;  %v2908_v23 = vcombine.low %v2851_v13, %v2867_v54 }
 0x758   : > { %v4537_v22 = vrot.slane %v7978_v8, %v9237_v24  ;;  %v4553_v27 = vrot.slane %v7980_v29, %v9237_v24  ;;  %v4569_v46 = vrot.slane %v7982_v11, %v9237_v24  ;;  %v4585_v30 = vrot.slane %v7984_v43, %v9237_v24 }
 0x759   : > { %v3173_v52 = vpack.c.bf16 %v3156_v16, %v3156_v16  ;;  %v3175_v36 = vpack.c.bf16 %v3157_v15, %v3157_v15  ;;  %v2915_v47 = vrot.slane %v2908_v23, %v9242_v32  ;;  %v2969_v33 = vrot.slane %v7937_v31, %v9237_v24 }
 0x75a   : > { %v4593_v39 = vcombine.low %v4537_v22, %v4553_v27  ;;  %v4617_v25 = vcombine.low %v4569_v46, %v4585_v30  ;;  %v2985_v60 = vrot.slane %v7939_v12, %v9237_v24  ;;  %v3002_v56 = vcombine.low %v9785_v28, %v9788_v38 }
 0x75b   : > { %8387 = vmatprep.subr.msk.bf16.mxu0 %vm1882_vm7, %v3173_v52  ;;  %8388 = vmatprep.subr.msk.bf16.mxu1 %vm1882_vm7, %v3175_v36  ;;  %v3373_v37 = vsel %vm1882_vm7, %v3173_v52, 0  ;;  %v3430_v44 = vsel %vm1882_vm7, %v3175_v36, 0  ;;  %v2891_v45 = vrot.slane %v2884_v59, %v9242_v32  ;;  %v4594_v48 = vcombine.high %v4537_v22, %v4553_v27 }
 0x75c   : > { %8238 = vmatpush3.bf16.msra.mxu0 %v3373_v37  ;;  %8246 = vmatpush3.bf16.msra.mxu1 %v3430_v44  ;;  %v3026_v31 = vcombine.low %v2969_v33, %v2985_v60  ;;  %v4618_v49 = vcombine.high %v4569_v46, %v4585_v30  ;;  %v9822_v12 = vrot.slane %v4593_v39, %v9242_v32 }
 0x75d   : > { %v9825_v28 = vrot.slane %v4617_v25, %v9242_v32  ;;  %v2920_v38 = vcombine.low %v2891_v45, %v2915_v47  ;;  %v3009_v50 = vrot.slane %v3002_v56, %v9242_v32  ;;  %v2921_v58 = vcombine.high %v2891_v45, %v2915_v47 }
 0x75e   : > { %v3033_v1 = vrot.slane %v3026_v31, %v9242_v32  ;;  %v4608_v13 = vrot.slane %v4594_v48, %v9242_v32  ;;  %v4632_v54 = vrot.slane %v4618_v49, %v9242_v32  ;;  %v3358_v22 = vmul.f32 %v8586_v0, %v9684_v35  ;;  %v3849_v35 = vpop.permute.xlu0 %3848  ;;  %v3847_v0 = vpop.permute.xlu1 %3846 }
 0x75f   : > { %3864 = vrot.lane.b32.xlu1 %v9718_v2, %s8838_s20  ;;  %v4641_v8 = vcombine.low %v9822_v12, %v9825_v28  ;;  %v4642_v29 = vcombine.high %v9822_v12, %v9825_v28 }
 0x760   : > { %v3038_v11 = vcombine.low %v3009_v50, %v3033_v1  ;;  %v3039_v43 = vcombine.high %v3009_v50, %v3033_v1  ;;  %v4643_v16 = vcombine.low %v4608_v13, %v4632_v54  ;;  %v4644_v15 = vcombine.high %v4608_v13, %v4632_v54 }
 0x761   : > { %v3363_v30 = vpack.c.bf16 %v3358_v22, %v3358_v22 }
 0x762   : > { %v3172_v59 = vpack.c.bf16 %v3038_v11, %v2920_v38  ;;  %v3174_v23 = vpack.c.bf16 %v3039_v43, %v2921_v58  ;;  %v4658_v27 = vpack.c.bf16 %v4643_v16, %v4643_v16  ;;  %v9838_v46 = vpack.c.bf16 %v4644_v15, %v4644_v15  ;;  %v3858_v36 = vpop.permute.xlu0 %3857  ;;  %v3856_v47 = vpop.permute.xlu1 %3855 }
 0x763   : > { %v3891_v25 = vcombine.low %v9718_v2, %v3856_v47  ;;  %v3892_v60 = vcombine.high %v9718_v2, %v3856_v47  ;;  %v4025_v31 = vcombine.low %v9730_v53, %v3858_v36  ;;  %v4026_v48 = vcombine.high %v9730_v53, %v3858_v36 }
 0x764   : > { %8239 = vmatprep.subr.bf16.mxu0 %v3172_v59  ;;  %8247 = vmatprep.subr.bf16.mxu1 %v3174_v23  ;;  %v4675_v52 = vsel %vm1684_vm2, %v4658_v27, 0 }
 0x765   : > { %8240 = vmatpush3.bf16.msra.mxu0 %v3172_v59  ;;  %8248 = vmatpush3.bf16.msra.mxu1 %v3174_v23  ;;  %v3899_v49 = vrot.slane %v3891_v25, %v9237_v24  ;;  %v3906_v38 = vrot.slane %v3892_v60, %v9237_v24  ;;  %v4033_v59 = vrot.slane %v4025_v31, %v9237_v24 }
 0x766   : > { %8389 = vmatprep.subr.msk.bf16.mxu0 %vm1684_vm2, %v4658_v27  ;;  %8391 = vmatprep.subr.msk.bf16.mxu1 %vm1684_vm2, %v9838_v46  ;;  %v4040_v23 = vrot.slane %v4026_v48, %v9237_v24 }
 0x767   : > { %3866 = vrot.lane.b32.xlu0 %v9730_v53, %s8838_s20 }
 0x768   : > { %8242 = vmatmul.mubr.msk.bf16.vlgmr.msra.gmra.mxu0 %vm1805_vm5, %v3363_v30 }
 0x769   : > { %8254 = vmatpush3.bf16.xpose.msra.mxu0 %v4675_v52 }
 0x7d6   : > { %v3349_v33 = vpop.xlane.xlu0 %3348 }
 0x7d7   : > { %v3343_v39 = vpop.xlane.xlu1 %3342  ;;  %8587 = vrcp.f32 %v3349_v33 }
 0x7d8   : > { %8589 = vrcp.f32 %v3343_v39 }
 0x7da   : > { %v3346_v56 = vpop.xlane.xlu0 %3345 }
 0x7db   : > { %v3865_v37 = vpop.permute.xlu1 %3864  ;;  %8591 = vrcp.f32 %v3346_v56 }
 0x7dc   : > { %v3907_v44 = vcombine.low %v3847_v0, %v3865_v37  ;;  %v3908_v45 = vcombine.high %v3847_v0, %v3865_v37 }
 0x7de   : > { %v3915_v50 = vrot.slane %v3907_v44, %v9237_v24  ;;  %v3922_v1 = vrot.slane %v3908_v45, %v9237_v24  ;;  %v3867_v58 = vpop.permute.xlu0 %3866 }
 0x7df   : > { %v4041_v13 = vcombine.low %v3849_v35, %v3867_v58  ;;  %v4042_v54 = vcombine.high %v3849_v35, %v3867_v58 }
 0x7e0   : > { %v3953_v11 = vcombine.low %v3899_v49, %v3915_v50  ;;  %v3954_v43 = vcombine.high %v3899_v49, %v3915_v50  ;;  %v3969_v16 = vcombine.low %v3906_v38, %v3922_v1  ;;  %v3970_v15 = vcombine.high %v3906_v38, %v3922_v1 }
 0x7e1   : > { %v4049_v22 = vrot.slane %v4041_v13, %v9237_v24  ;;  %v4056_v27 = vrot.slane %v4042_v54, %v9237_v24 }
 0x7e2   : > { %v3961_v30 = vrot.slane %v3953_v11, %v9242_v32  ;;  %v3968_v52 = vrot.slane %v3954_v43, %v9242_v32  ;;  %v3977_v0 = vrot.slane %v3969_v16, %v9242_v32  ;;  %v3984_v35 = vrot.slane %v3970_v15, %v9242_v32 }
 0x7e3   : > { %v4087_v36 = vcombine.low %v4033_v59, %v4049_v22  ;;  %v4088_v47 = vcombine.high %v4033_v59, %v4049_v22  ;;  %v4103_v33 = vcombine.low %v4040_v23, %v4056_v27  ;;  %v4104_v39 = vcombine.high %v4040_v23, %v4056_v27 }
 0x7e4   : > { %v7962_v25 = vcombine.low %v3961_v30, %v3968_v52  ;;  %v7964_v60 = vcombine.high %v3961_v30, %v3968_v52  ;;  %v7966_v56 = vcombine.low %v3977_v0, %v3984_v35  ;;  %v7968_v37 = vcombine.high %v3977_v0, %v3984_v35  ;;  %v8588_v44 = vpop.eup %8587 }
 0x7e5   : > { %v4095_v45 = vrot.slane %v4087_v36, %v9242_v32  ;;  %v4102_v31 = vrot.slane %v4088_v47, %v9242_v32  ;;  %v4111_v48 = vrot.slane %v4103_v33, %v9242_v32  ;;  %v4118_v49 = vrot.slane %v4104_v39, %v9242_v32  ;;  %v8590_v13 = vpop.eup %8589 }
 0x7e6   : > { %v4301_v38 = vrot.slane %v7962_v25, %v9237_v24  ;;  %v4317_v50 = vrot.slane %v7964_v60, %v9237_v24  ;;  %v4333_v1 = vrot.slane %v7966_v56, %v9237_v24  ;;  %v4349_v58 = vrot.slane %v7968_v37, %v9237_v24 }
 0x7e7   : > { %v7970_v54 = vcombine.low %v4095_v45, %v4102_v31  ;;  %v7972_v11 = vcombine.high %v4095_v45, %v4102_v31  ;;  %v7974_v43 = vcombine.low %v4111_v48, %v4118_v49  ;;  %v7976_v16 = vcombine.high %v4111_v48, %v4118_v49 }
 0x7e8   : > { %v8592_v15 = vpop.eup %8591  ;;  %v3361_v59 = vmul.f32 %v8588_v44, %v9759_v21  ;;  %v4358_v23 = vcombine.high %v4301_v38, %v4317_v50  ;;  %v4382_v22 = vcombine.high %v4333_v1, %v4349_v58  ;;  %v3359_v35 = vmul.f32 %v8590_v13, %v9763_v63 }
 0x7e9   : > { %v4419_v27 = vrot.slane %v7970_v54, %v9237_v24  ;;  %v4435_v30 = vrot.slane %v7972_v11, %v9237_v24  ;;  %v4451_v52 = vrot.slane %v7974_v43, %v9237_v24  ;;  %v4467_v0 = vrot.slane %v7976_v16, %v9237_v24 }
 0x7ea   : > { %v3360_v36 = vmul.f32 %v8592_v15, %v9772_v26  ;;  %v4372_v47 = vrot.slane %v4358_v23, %v9242_v32  ;;  %v4396_v33 = vrot.slane %v4382_v22, %v9242_v32  ;;  %v4357_v25 = vcombine.low %v4301_v38, %v4317_v50 }
 0x7eb   : > { %v4476_v39 = vcombine.high %v4419_v27, %v4435_v30  ;;  %v4500_v21 = vcombine.high %v4451_v52, %v4467_v0  ;;  %v4381_v60 = vcombine.low %v4333_v1, %v4349_v58  ;;  %v3365_v37 = vpack.c.bf16 %v3361_v59, %v3361_v59 }
 0x7ec   : > { %v3364_v56 = vpack.c.bf16 %v3360_v36, %v3359_v35  ;;  %v4475_v44 = vcombine.low %v4419_v27, %v4435_v30  ;;  %v4365_v48 = vrot.slane %v4357_v25, %v9242_v32  ;;  %v4735_v26 = vsel %vm1684_vm2, %v9838_v46, 0 }
 0x7ed   : > { %v4490_v45 = vrot.slane %v4476_v39, %v9242_v32  ;;  %v4514_v31 = vrot.slane %v4500_v21, %v9242_v32  ;;  %v4389_v63 = vrot.slane %v4381_v60, %v9242_v32  ;;  %v4499_v38 = vcombine.low %v4451_v52, %v4467_v0 }
 0x7ee   : > { %8249 = vmatprep.mubr.msk.bf16.mxu1 %vm1805_vm5, %v3364_v56  ;;  %v4483_v49 = vrot.slane %v4475_v44, %v9242_v32  ;;  %v4407_v50 = vcombine.low %v4372_v47, %v4396_v33  ;;  %v4408_v58 = vcombine.high %v4372_v47, %v4396_v33  ;;  %v4649_v0 = vmul.f32 0.25, %v4641_v8 }
 0x7ef   : > { %8250 = vmatmul.mubr.msk.bf16.vlgmr.msra.gmra.mxu1 %vm1805_vm5, %v3365_v37  ;;  %v4525_v1 = vcombine.low %v4490_v45, %v4514_v31  ;;  %v4526_v13 = vcombine.high %v4490_v45, %v4514_v31  ;;  %v4405_v54 = vcombine.low %v4365_v48, %v4389_v63  ;;  %v4507_v11 = vrot.slane %v4499_v38, %v9242_v32 }
 0x7f0   : > { %8262 = vmatpush3.bf16.xpose.msra.mxu1 %v4735_v26  ;;  %v4406_v43 = vcombine.high %v4365_v48, %v4389_v63  ;;  %v4654_v33 = vpack.c.bf16 %v4649_v0, %v4649_v0  ;;  %v4652_v39 = vmul.f32 0.25, %v4642_v29 }
 0x7f1   : > { %v4657_v16 = vpack.c.bf16 %v4525_v1, %v4407_v50  ;;  %v4659_v15 = vpack.c.bf16 %v4526_v13, %v4408_v58  ;;  %v4523_v59 = vcombine.low %v4483_v49, %v4507_v11  ;;  %v4524_v23 = vcombine.high %v4483_v49, %v4507_v11 }
 0x7f2   : > { %v4647_v22 = vmul.f32 0.25, %v4405_v54  ;;  %v4650_v30 = vmul.f32 0.25, %v4406_v43  ;;  %v4656_v21 = vpack.c.bf16 %v4652_v39, %v4652_v39 }
 0x7f3   : > { %8390 = vmatprep.subr.msk.bf16.mxu0 %vm1684_vm2, %v4657_v16  ;;  %8392 = vmatprep.subr.msk.bf16.mxu1 %vm1684_vm2, %v4659_v15  ;;  %v4672_v46 = vsel %vm1684_vm2, %v4657_v16, 0  ;;  %v4648_v27 = vmul.f32 0.25, %v4523_v59  ;;  %v4651_v52 = vmul.f32 0.25, %v4524_v23  ;;  %v4732_v47 = vsel %vm1684_vm2, %v4659_v15, 0 }
 0x7f4   : > { %8256 = vmatpush3.bf16.xpose.msra.mxu0 %v4672_v46 }
 0x7f5   : > { %v4653_v35 = vpack.c.bf16 %v4648_v27, %v4647_v22  ;;  %v4655_v36 = vpack.c.bf16 %v4651_v52, %v4650_v30 }
 0x7f7   : > { %8257 = vmatprep.mubr.msk.bf16.mxu0 %vm1684_vm2, %v4653_v35  ;;  %8265 = vmatprep.mubr.msk.bf16.mxu1 %vm1684_vm2, %v4655_v36 }
 0x7f8   : > { %8264 = vmatpush3.bf16.xpose.msra.mxu1 %v4732_v47 }
 0x7fb   : > { %8258 = vmatmul.mubr.msk.bf16.vlgmr.msra.gmra.mxu0 %vm1684_vm2, %v4654_v33 }
 0x7ff   : > { %8266 = vmatmul.mubr.msk.bf16.vlgmr.msra.gmra.mxu1 %vm1684_vm2, %v4656_v21 }
 0x828   : > { %v8243_v8 = vpop.f32.mrf.mxu0 }
 0x829   : > { %v3612_v56 = vcombine.high %v8243_v8, %v8846_v40  ;;  %v3619_v45 = vrot.slane %v8243_v8, %v9237_v24 }
 0x82a   : > { %v3409_v25 = vpop.f32.mrf.mxu0 }
 0x82b   : > { %v3480_v37 = vcombine.high %v3409_v25, %v8846_v40  ;;  %v3626_v28 = vrot.slane %v3612_v56, %v9237_v24  ;;  %v3487_v50 = vrot.slane %v3409_v25, %v9237_v24 }
 0x82c   : > { %v8244_v60 = vpop.f32.mrf.mxu0 }
 0x82d   : > { %v3494_v1 = vrot.slane %v3480_v37, %v9237_v24 }
 0x82e   : > { %v3412_v48 = vpop.f32.mrf.mxu0 }
 0x82f   : > { %v3546_v15 = vcombine.high %v3412_v48, %v8846_v40 }
 0x8af   : > { %v8251_v44 = vpop.f32.mrf.mxu1 }
 0x8b0   : > { %v3627_v31 = vcombine.high %v8251_v44, %v8846_v40  ;;  %v3634_v12 = vrot.slane %v8251_v44, %v9237_v24 }
 0x8b1   : > { %v3466_v29 = vpop.f32.mrf.mxu1 }
 0x8b2   : > { %v3641_v63 = vrot.slane %v3627_v31, %v9237_v24  ;;  %v3642_v26 = vcombine.low %v3619_v45, %v3634_v12  ;;  %v3643_v49 = vcombine.high %v3619_v45, %v3634_v12  ;;  %v3495_v38 = vcombine.high %v3466_v29, %v8846_v40 }
 0x8b3   : > { %v3502_v58 = vrot.slane %v3466_v29, %v9237_v24  ;;  %v8252_v13 = vpop.f32.mrf.mxu1 }
 0x8b4   : > { %v3650_v54 = vrot.slane %v3642_v26, %v9242_v32  ;;  %v3657_v11 = vrot.slane %v3643_v49, %v9242_v32  ;;  %v3658_v43 = vcombine.low %v3626_v28, %v3641_v63  ;;  %v3659_v16 = vcombine.high %v3626_v28, %v3641_v63 }
 0x8b5   : > { %v3509_v59 = vrot.slane %v3495_v38, %v9237_v24  ;;  %v3510_v23 = vcombine.low %v3487_v50, %v3502_v58  ;;  %v3511_v46 = vcombine.high %v3487_v50, %v3502_v58  ;;  %v3469_v33 = vpop.f32.mrf.mxu1  ;;  %v3553_v50 = vrot.slane %v3412_v48, %v9237_v24 }
 0x8b6   : > { %v3666_v22 = vrot.slane %v3658_v43, %v9242_v32  ;;  %v3673_v27 = vrot.slane %v3659_v16, %v9242_v32  ;;  %v3778_v30 = vcombine.low %v3650_v54, %v3657_v11  ;;  %v7960_v52 = vcombine.high %v3650_v54, %v3657_v11 }
 0x8b7   : > { %v3518_v0 = vrot.slane %v3510_v23, %v9242_v32  ;;  %v3525_v35 = vrot.slane %v3511_v46, %v9242_v32  ;;  %v3526_v36 = vcombine.low %v3494_v1, %v3509_v59  ;;  %v3527_v47 = vcombine.high %v3494_v1, %v3509_v59 }
 0x8b8   : > { %v3785_v39 = vrot.slane %v3778_v30, %v9237_v24  ;;  %v3793_v21 = vrot.slane %v7960_v52, %v9237_v24  ;;  %v3794_v8 = vcombine.low %v3666_v22, %v3673_v27  ;;  %v7961_v25 = vcombine.high %v3666_v22, %v3673_v27 }
 0x8b9   : > { %v3534_v60 = vrot.slane %v3526_v36, %v9242_v32  ;;  %v3541_v56 = vrot.slane %v3527_v47, %v9242_v32  ;;  %v3678_v37 = vcombine.low %v3518_v0, %v3525_v35  ;;  %v7956_v44 = vcombine.high %v3518_v0, %v3525_v35 }
 0x8ba   : > { %v3801_v45 = vrot.slane %v3794_v8, %v9237_v24  ;;  %v3809_v31 = vrot.slane %v7961_v25, %v9237_v24  ;;  %v3810_v12 = vcombine.low %v3785_v39, %v3793_v21  ;;  %v3561_v28 = vcombine.high %v3469_v33, %v8846_v40 }
 0x8bb   : > { %v3685_v29 = vrot.slane %v3678_v37, %v9237_v24  ;;  %v3693_v63 = vrot.slane %v7956_v44, %v9237_v24  ;;  %v3694_v26 = vcombine.low %v3534_v60, %v3541_v56  ;;  %v7957_v49 = vcombine.high %v3534_v60, %v3541_v56  ;;  %v8259_v38 = vpop.f32.mrf.mxu0 }
 0x8bc   : > { %v3560_v1 = vrot.slane %v3546_v15, %v9237_v24  ;;  %v3568_v58 = vrot.slane %v3469_v33, %v9237_v24  ;;  %v3575_v13 = vrot.slane %v3561_v28, %v9237_v24  ;;  %v3818_v59 = vcombine.low %v3801_v45, %v3809_v31 }
 0x8bd   : > { %v3701_v54 = vrot.slane %v3694_v26, %v9237_v24  ;;  %v3709_v11 = vrot.slane %v7957_v49, %v9237_v24  ;;  %v3710_v43 = vcombine.low %v3685_v29, %v3693_v63  ;;  %v4711_v16 = vpop.f32.mrf.mxu0  ;;  %v9957_v29 = vrot.slane %v3810_v12, %v9242_v32 }
 0x8be   : > { %v3576_v23 = vcombine.low %v3553_v50, %v3568_v58  ;;  %v3577_v46 = vcombine.high %v3553_v50, %v3568_v58  ;;  %v3592_v22 = vcombine.low %v3560_v1, %v3575_v13  ;;  %v3593_v27 = vcombine.high %v3560_v1, %v3575_v13 }
 0x8bf   : > { %v4712_v30 = vadd.f32 %v4711_v16, %v9342_v6  ;;  %v8260_v48 = vpop.f32.mrf.mxu0  ;;  %v3718_v52 = vcombine.low %v3701_v54, %v3709_v11  ;;  %v8267_v47 = vpop.f32.mrf.mxu1  ;;  %v9945_v21 = vrot.slane %v3710_v43, %v9242_v32  ;;  %v9951_v25 = vrot.slane %v3818_v59, %v9242_v32 }
 0x8c0   : > { %v3584_v15 = vrot.slane %v3576_v23, %v9242_v32  ;;  %v3591_v0 = vrot.slane %v3577_v46, %v9242_v32  ;;  %v3600_v35 = vrot.slane %v3592_v22, %v9242_v32  ;;  %v3607_v36 = vrot.slane %v3593_v27, %v9242_v32 }
 0x8c1   : > { %v4714_v33 = vpop.f32.mrf.mxu0  ;;  %v4785_v39 = vsel %vm1805_vm5, %v4712_v30, -inf  ;;  %v9948_v8 = vrot.slane %v3718_v52, %v9242_v32  ;;  %v4771_v45 = vpop.f32.mrf.mxu1  ;;  %v4720_v58 = vadd.f32 %v8259_v38, %v9340_v4  ;;  %v3827_v12 = vcombine.high %v9957_v29, %v9951_v25 }
 0x8c2   : > { %v3728_v60 = vcombine.low %v3584_v15, %v3591_v0  ;;  %v7958_v56 = vcombine.high %v3584_v15, %v3591_v0  ;;  %v3744_v37 = vcombine.low %v3600_v35, %v3607_v36  ;;  %v7959_v44 = vcombine.high %v3600_v35, %v3607_v36  ;;  %4786 = vmax.xlane.f32.xlu1 %v4785_v39 }
 0x8c3   : > { %v4715_v31 = vadd.f32 %v4714_v33, %v9349_v17  ;;  %v3727_v28 = vcombine.high %v9945_v21, %v9948_v8  ;;  %v8268_v1 = vpop.f32.mrf.mxu1  ;;  %v3826_v16 = vcombine.low %v9957_v29, %v9951_v25  ;;  %v3726_v59 = vcombine.low %v9945_v21, %v9948_v8 }
 0x8c4   : > { %v3735_v63 = vrot.slane %v3728_v60, %v9237_v24  ;;  %v3743_v26 = vrot.slane %v7958_v56, %v9237_v24  ;;  %v3751_v49 = vrot.slane %v3744_v37, %v9237_v24  ;;  %v3759_v50 = vrot.slane %v7959_v44, %v9237_v24 }
 0x8c5   : > { %v4788_v13 = vsel %vm1805_vm5, %v4715_v31, -inf  ;;  %v9968_v54 = vpack.i.bf16 %v3727_v28, %v2338_v5  ;;  %v4791_v5 = vsel %vm1805_vm5, %v4720_v58, -inf  ;;  %v4772_v37 = vadd.f32 %v4771_v45, %v9342_v6 }
 0x8c6   : > { %v3760_v11 = vcombine.low %v3735_v63, %v3743_v26  ;;  %4789 = vmax.xlane.f32.xlu0 %v4788_v13  ;;  %v3768_v43 = vcombine.low %v3751_v49, %v3759_v50  ;;  %v10020_v50 = vadd.f32 %v9706_v34, %v9338_v61  ;;  %v10039_v61 = vadd.f32 %v9706_v34, %v9328_v51 }
 0x8c8   : > { %v9977_v38 = vrot.slane %v3760_v11, %v9242_v32  ;;  %v9980_v23 = vrot.slane %v3768_v43, %v9242_v32 }
 0x8ca   : > { %4792 = vmax.xlane.f32.xlu0 %v4791_v5  ;;  %v3777_v46 = vcombine.high %v9977_v38, %v9980_v23  ;;  %v3776_v22 = vcombine.low %v9977_v38, %v9980_v23 }
 0x8cc   : > { %v9987_v27 = vpack.i.bf16 %v3827_v12, %v3777_v46 }
 0x94b   : > { %v4787_v48 = vpop.xlane.xlu1 %4786 }
 0x94c   : > { %v4803_v52 = vsub.f32 %v4712_v30, %v4787_v48  ;;  %v4780_v30 = vadd.f32 %v8267_v47, %v9340_v4  ;;  %v10014_v47 = vadd.f32 %v9706_v34, %v9334_v55 }
 0x94e   : > { %v4809_v15 = vmul.f32 1.442695, %v4803_v52  ;;  %v4800_v49 = vsel %vm1805_vm5, %v4780_v30, -inf }
 0x94f   : > { %v4790_v0 = vpop.xlane.xlu0 %4789 }
 0x950   : > { %8593 = vpow2.f32 %v4809_v15  ;;  %v4804_v35 = vsub.f32 %v4715_v31, %v4790_v0  ;;  %v4794_v31 = vsel %vm1805_vm5, %v4772_v37, -inf }
 0x952   : > { %v4811_v36 = vmul.f32 1.442695, %v4804_v35 }
 0x953   : > { %v4793_v33 = vpop.xlane.xlu0 %4792 }
 0x954   : > { %8595 = vpow2.f32 %v4811_v36  ;;  %v4805_v39 = vsub.f32 %v4720_v58, %v4793_v33 }
 0x956   : > { %v4813_v60 = vmul.f32 1.442695, %v4805_v39 }
 0x958   : > { %8597 = vpow2.f32 %v4813_v60 }
 0x95d   : > { %v9989_v56 = vpop.eup %8593 }
 0x95e   : > { %v4821_v44 = vsel %vm1805_vm5, %v9989_v56, 0.0 }
 0x95f   : > { %4822 = vadd.xlane.f32.xlu0 %v4821_v44 }
 0x961   : > { %v8596_v28 = vpop.eup %8595 }
 0x962   : > { %v4824_v63 = vsel %vm1805_vm5, %v8596_v28, 0.0 }
 0x963   : > { %4825 = vadd.xlane.f32.xlu1 %v4824_v63  ;;  %4795 = vmax.xlane.f32.xlu0 %v4794_v31 }
 0x965   : > { %v9997_v26 = vpop.eup %8597 }
 0x966   : > { %v4827_v45 = vsel %vm1805_vm5, %v9997_v26, 0.0 }
 0x967   : > { %4801 = vmax.xlane.f32.xlu1 %v4800_v49  ;;  %4828 = vadd.xlane.f32.xlu0 %v4827_v45 }
 0x978   : > { %3886 = vrot.lane.b32.xlu1 %v9710_v41, %s8845_s12 }
 0x97c   : > { %3873 = vrot.lane.b32.xlu1 %v9718_v2, %s8841_s3 }
 0x97d   : > { %3877 = vrot.lane.b32.xlu0 %v9710_v41, %s8841_s3  ;;  %v4774_v41 = vpop.f32.mrf.mxu1 }
 0x981   : > { %3875 = vrot.lane.b32.xlu0 %v9730_v53, %s8841_s3 }
 0x985   : > { %3884 = vrot.lane.b32.xlu0 %v9730_v53, %s8845_s12  ;;  %v10027_v53 = vadd.f32 %v4774_v41, %v9349_v17 }
 0x987   : > { %v4797_v55 = vsel %vm1805_vm5, %v10027_v53, -inf }
 0x989   : > { %5348 = vrot.lane.b32.xlu0 %v10014_v47, %s8840_s13 }
 0x98d   : > { %5335 = vrot.lane.b32.xlu0 %v10020_v50, %s8839_s5 }
 0x991   : > { %5344 = vrot.lane.b32.xlu0 %v10020_v50, %s8840_s13 }
 0x9a0   : > { %4798 = vmax.xlane.f32.xlu1 %v4797_v55 }
 0x9b1   : > { %3882 = vrot.lane.b32.xlu1 %v9718_v2, %s8845_s12 }
 0x9b5   : > { %5339 = vrot.lane.b32.xlu1 %v10014_v47, %s8839_s5 }
 0x9b9   : > { %5357 = vrot.lane.b32.xlu1 %v10014_v47, %s8838_s20 }
 0x9bd   : > { %5337 = vrot.lane.b32.xlu1 %v10039_v61, %s8839_s5 }
 0x9c1   : > { %5346 = vrot.lane.b32.xlu1 %v10039_v61, %s8840_s13 }
 0x9e8   : > { %v4823_v1 = vpop.xlane.xlu0 %4822 }
 0x9e9   : > { %8599 = vrcp.f32 %v4823_v1 }
 0x9ec   : > { %v4796_v58 = vpop.xlane.xlu0 %4795  ;;  %v4826_v2 = vpop.xlane.xlu1 %4825 }
 0x9ed   : > { %v4806_v13 = vsub.f32 %v4772_v37, %v4796_v58  ;;  %8601 = vrcp.f32 %v4826_v2 }
 0x9ef   : > { %v4815_v12 = vmul.f32 1.442695, %v4806_v13 }
 0x9f0   : > { %v10045_v11 = vpop.xlane.xlu0 %4828  ;;  %v4802_v43 = vpop.xlane.xlu1 %4801 }
 0x9f1   : > { %8603 = vpow2.f32 %v4815_v12  ;;  %v4808_v5 = vsub.f32 %v4780_v30, %v4802_v43 }
 0x9f3   : > { %v4819_v51 = vmul.f32 1.442695, %v4808_v5 }
 0x9f4   : > { %v3878_v34 = vpop.permute.xlu0 %3877  ;;  %v3887_v46 = vpop.permute.xlu1 %3886 }
 0x9f5   : > { %8605 = vpow2.f32 %v4819_v51  ;;  %v4191_v48 = vcombine.high %v3878_v34, %v8846_v40  ;;  %v4198_v52 = vrot.slane %v3878_v34, %v9237_v24  ;;  %v4206_v15 = vcombine.high %v3887_v46, %v8846_v40 }
 0x9f6   : > { %v4213_v0 = vrot.slane %v3887_v46, %v9237_v24  ;;  %v8600_v60 = vpop.eup %8599 }
 0x9f7   : > { %v4205_v35 = vrot.slane %v4191_v48, %v9237_v24  ;;  %v4220_v36 = vrot.slane %v4206_v15, %v9237_v24  ;;  %v4845_v58 = vmul.f32 %v8600_v60, %v9989_v56 }
 0x9f8   : > { %v4253_v33 = vcombine.low %v4198_v52, %v4213_v0  ;;  %v4254_v39 = vcombine.high %v4198_v52, %v4213_v0 }
 0x9f9   : > { %v4269_v37 = vcombine.low %v4205_v35, %v4220_v36  ;;  %v4270_v44 = vcombine.high %v4205_v35, %v4220_v36 }
 0x9fa   : > { %v8602_v30 = vpop.eup %8601  ;;  %v4261_v63 = vrot.slane %v4253_v33, %v9242_v32  ;;  %v4268_v31 = vrot.slane %v4254_v39, %v9242_v32 }
 0x9fb   : > { %v4277_v49 = vrot.slane %v4269_v37, %v9242_v32  ;;  %v4284_v45 = vrot.slane %v4270_v44, %v9242_v32  ;;  %v4846_v41 = vmul.f32 %v8602_v30, %v8596_v28  ;;  %v3876_v30 = vpop.permute.xlu0 %3875 }
 0x9fc   : > { %v7979_v55 = vcombine.low %v4261_v63, %v4268_v31  ;;  %v7981_v1 = vcombine.high %v4261_v63, %v4268_v31 }
 0x9fd   : > { %v7983_v2 = vcombine.low %v4277_v49, %v4284_v45  ;;  %v7985_v13 = vcombine.high %v4277_v49, %v4284_v45  ;;  %v4851_v51 = vpack.c.bf16 %v4846_v41, %v4845_v58  ;;  %v4057_v49 = vcombine.high %v3876_v30, %v8846_v40  ;;  %v3874_v58 = vpop.permute.xlu1 %3873 }
 0x9fe   : > { %v10058_v12 = vpop.eup %8603  ;;  %v4544_v43 = vrot.slane %v7979_v55, %v9237_v24  ;;  %v4560_v5 = vrot.slane %v7981_v1, %v9237_v24  ;;  %v4064_v1 = vrot.slane %v3876_v30, %v9237_v24 }
 0x9ff   : > { %v4576_v34 = vrot.slane %v7983_v2, %v9237_v24  ;;  %v4592_v46 = vrot.slane %v7985_v13, %v9237_v24  ;;  %8273 = vmatprep.mubr.msk.bf16.mxu0 %vm1805_vm5, %v4851_v51  ;;  %v4830_v28 = vsel %vm1805_vm5, %v10058_v12, 0.0  ;;  %v3885_v63 = vpop.permute.xlu0 %3884  ;;  %v4071_v41 = vrot.slane %v4057_v49, %v9237_v24 }
 0xa00   : > { %v4609_v48 = vcombine.low %v4544_v43, %v4560_v5  ;;  %4831 = vadd.xlane.f32.xlu0 %v4830_v28  ;;  %v4072_v31 = vcombine.high %v3885_v63, %v8846_v40  ;;  %v4079_v55 = vrot.slane %v3885_v63, %v9237_v24 }
 0xa01   : > { %v4633_v52 = vcombine.low %v4576_v34, %v4592_v46 }
 0xa02   : > { %v10067_v56 = vpop.eup %8605  ;;  %v4616_v0 = vrot.slane %v4609_v48, %v9242_v32  ;;  %v4086_v45 = vrot.slane %v4072_v31, %v9237_v24  ;;  %v4119_v43 = vcombine.low %v4064_v1, %v4079_v55  ;;  %v4120_v5 = vcombine.high %v4064_v1, %v4079_v55 }
 0xa03   : > { %v4836_v15 = vsel %vm1805_vm5, %v10067_v56, 0.0  ;;  %v4640_v35 = vrot.slane %v4633_v52, %v9242_v32  ;;  %v5349_v1 = vpop.permute.xlu0 %5348 }
 0xa04   : > { %4837 = vadd.xlane.f32.xlu1 %v4836_v15  ;;  %v4135_v2 = vcombine.low %v4071_v41, %v4086_v45  ;;  %v4136_v13 = vcombine.high %v4071_v41, %v4086_v45  ;;  %v4127_v28 = vrot.slane %v4119_v43, %v9242_v32  ;;  %v4134_v52 = vrot.slane %v4120_v5, %v9242_v32 }
 0xa05   : > { %v4645_v36 = vcombine.low %v4616_v0, %v4640_v35  ;;  %v4646_v33 = vcombine.high %v4616_v0, %v4640_v35  ;;  %v3923_v15 = vcombine.high %v3874_v58, %v8846_v40 }
 0xa06   : > { %v4143_v51 = vrot.slane %v4135_v2, %v9242_v32  ;;  %v4150_v34 = vrot.slane %v4136_v13, %v9242_v32 }
 0xa07   : > { %v4662_v39 = vpack.c.bf16 %v4645_v36, %v4645_v36  ;;  %v4664_v60 = vpack.c.bf16 %v4646_v33, %v4646_v33  ;;  %v3937_v30 = vrot.slane %v3923_v15, %v9237_v24 }
 0xa08   : > { %v7975_v35 = vcombine.low %v4143_v51, %v4150_v34  ;;  %v7977_v36 = vcombine.high %v4143_v51, %v4150_v34 }
 0xa09   : > { %8393 = vmatprep.subr.msk.bf16.mxu0 %vm1882_vm7, %v4662_v39  ;;  %8394 = vmatprep.subr.msk.bf16.mxu1 %vm1882_vm7, %v4664_v60  ;;  %v4862_v37 = vsel %vm1882_vm7, %v4662_v39, 0  ;;  %v4919_v44 = vsel %vm1882_vm7, %v4664_v60, 0  ;;  %v3930_v39 = vrot.slane %v3874_v58, %v9237_v24 }
 0xa0a   : > { %8270 = vmatpush3.bf16.msra.mxu0 %v4862_v37  ;;  %8278 = vmatpush3.bf16.msra.mxu1 %v4919_v44  ;;  %v7973_v44 = vcombine.high %v4127_v28, %v4134_v52  ;;  %v4458_v45 = vrot.slane %v7975_v35, %v9237_v24  ;;  %v4474_v41 = vrot.slane %v7977_v36, %v9237_v24 }
 0xa0c   : > { %v4442_v5 = vrot.slane %v7973_v44, %v9237_v24 }
 0xa16   : > { %5353 = vrot.lane.b32.xlu0 %v10020_v50, %s8838_s20 }
 0xa29   : > { %v4799_v46 = vpop.xlane.xlu1 %4798 }
 0xa2a   : > { %v4807_v48 = vsub.f32 %v10027_v53, %v4799_v46  ;;  %v7971_v53 = vcombine.low %v4127_v28, %v4134_v52  ;;  %v5648_v28 = vcombine.low %v10014_v47, %v5349_v1  ;;  %v5649_v52 = vcombine.high %v10014_v47, %v5349_v1 }
 0xa2c   : > { %v4817_v0 = vmul.f32 1.442695, %v4807_v48  ;;  %v4426_v43 = vrot.slane %v7971_v53, %v9237_v24 }
 0xa2d   : > { %v3883_v33 = vpop.permute.xlu1 %3882 }
 0xa2e   : > { %8607 = vpow2.f32 %v4817_v0  ;;  %v3938_v60 = vcombine.high %v3883_v33, %v8846_v40  ;;  %v3945_v37 = vrot.slane %v3883_v33, %v9237_v24  ;;  %v4515_v0 = vcombine.low %v4458_v45, %v4474_v41 }
 0xa2f   : > { %8609 = vrcp.f32 %v10045_v11 }
 0xa30   : > { %v3952_v63 = vrot.slane %v3938_v60, %v9237_v24  ;;  %v3985_v31 = vcombine.low %v3930_v39, %v3945_v37  ;;  %v3986_v49 = vcombine.high %v3930_v39, %v3945_v37 }
 0xa31   : > { %v5340_v55 = vpop.permute.xlu1 %5339 }
 0xa32   : > { %v3993_v58 = vrot.slane %v3985_v31, %v9242_v32  ;;  %v4000_v2 = vrot.slane %v3986_v49, %v9242_v32  ;;  %v4001_v13 = vcombine.low %v3937_v30, %v3952_v63  ;;  %v4002_v11 = vcombine.high %v3937_v30, %v3952_v63 }
 0xa33   : > { %v4491_v63 = vcombine.low %v4426_v43, %v4442_v5  ;;  %v5656_v31 = vrot.slane %v5648_v28, %v9237_v24  ;;  %v5663_v49 = vrot.slane %v5649_v52, %v9237_v24 }
 0xa34   : > { %v4009_v51 = vrot.slane %v4001_v13, %v9242_v32  ;;  %v4016_v34 = vrot.slane %v4002_v11, %v9242_v32  ;;  %v7963_v46 = vcombine.low %v3993_v58, %v4000_v2  ;;  %v7965_v48 = vcombine.high %v3993_v58, %v4000_v2 }
 0xa35   : > { %v5358_v15 = vpop.permute.xlu1 %5357  ;;  %v4522_v58 = vrot.slane %v4515_v0, %v9242_v32 }
 0xa36   : > { %v4308_v35 = vrot.slane %v7963_v46, %v9237_v24  ;;  %v4324_v36 = vrot.slane %v7965_v48, %v9237_v24  ;;  %v7967_v33 = vcombine.low %v4009_v51, %v4016_v34  ;;  %v7969_v39 = vcombine.high %v4009_v51, %v4016_v34 }
 0xa37   : > { %v5664_v60 = vcombine.low %v5340_v55, %v5358_v15  ;;  %v5665_v37 = vcombine.high %v5340_v55, %v5358_v15  ;;  %v4498_v48 = vrot.slane %v4491_v63, %v9242_v32 }
 0xa38   : > { %v4340_v53 = vrot.slane %v7967_v33, %v9237_v24  ;;  %v4356_v44 = vrot.slane %v7969_v39, %v9237_v24  ;;  %v4373_v30 = vcombine.low %v4308_v35, %v4324_v36 }
 0xa39   : > { %v5672_v45 = vrot.slane %v5664_v60, %v9237_v24  ;;  %v5679_v41 = vrot.slane %v5665_v37, %v9237_v24  ;;  %v4527_v36 = vcombine.low %v4498_v48, %v4522_v58  ;;  %v4528_v39 = vcombine.high %v4498_v48, %v4522_v58 }
 0xa3a   : > { %v4397_v1 = vcombine.low %v4340_v53, %v4356_v44  ;;  %v4380_v5 = vrot.slane %v4373_v30, %v9242_v32 }
 0xa3b   : > { %v10116_v2 = vpop.eup %8607  ;;  %v5710_v55 = vcombine.low %v5656_v31, %v5672_v45  ;;  %v5711_v13 = vcombine.high %v5656_v31, %v5672_v45  ;;  %v5726_v11 = vcombine.low %v5663_v49, %v5679_v41  ;;  %v5727_v51 = vcombine.high %v5663_v49, %v5679_v41 }
 0xa3c   : > { %v8610_v34 = vpop.eup %8609  ;;  %v4833_v43 = vsel %vm1805_vm5, %v10116_v2, 0.0  ;;  %v4404_v46 = vrot.slane %v4397_v1, %v9242_v32 }
 0xa3d   : > { %v5718_v28 = vrot.slane %v5710_v55, %v9242_v32  ;;  %v5725_v52 = vrot.slane %v5711_v13, %v9242_v32  ;;  %v5734_v15 = vrot.slane %v5726_v11, %v9242_v32  ;;  %v5741_v0 = vrot.slane %v5727_v51, %v9242_v32  ;;  %4834 = vadd.xlane.f32.xlu1 %v4833_v43 }
 0xa3e   : > { %v4409_v35 = vcombine.low %v4380_v5, %v4404_v46  ;;  %v4410_v33 = vcombine.high %v4380_v5, %v4404_v46  ;;  %v4847_v63 = vmul.f32 %v8610_v34, %v9997_v26 }
 0xa3f   : > { %v8016_v60 = vcombine.low %v5718_v28, %v5725_v52  ;;  %v8018_v37 = vcombine.high %v5718_v28, %v5725_v52  ;;  %v8020_v53 = vcombine.low %v5734_v15, %v5741_v0  ;;  %v8022_v44 = vcombine.high %v5734_v15, %v5741_v0 }
 0xa40   : > { %v4661_v30 = vpack.c.bf16 %v4527_v36, %v4409_v35  ;;  %v4663_v31 = vpack.c.bf16 %v4528_v39, %v4410_v33  ;;  %v4852_v11 = vpack.c.bf16 %v4847_v63, %v4847_v63  ;;  %v5336_v36 = vpop.permute.xlu0 %5335 }
 0xa41   : > { %v6026_v49 = vrot.slane %v8016_v60, %v9237_v24  ;;  %v6042_v45 = vrot.slane %v8018_v37, %v9237_v24  ;;  %v6058_v41 = vrot.slane %v8020_v53, %v9237_v24  ;;  %v6074_v1 = vrot.slane %v8022_v44, %v9237_v24  ;;  %v5338_v37 = vpop.permute.xlu1 %5337 }
 0xa42   : > { %8271 = vmatprep.subr.bf16.mxu0 %v4661_v30  ;;  %8279 = vmatprep.subr.bf16.mxu1 %v4663_v31 }
 0xa43   : > { %v6082_v55 = vcombine.low %v6026_v49, %v6042_v45  ;;  %v6106_v58 = vcombine.low %v6058_v41, %v6074_v1  ;;  %8272 = vmatpush3.bf16.msra.mxu0 %v4661_v30  ;;  %8280 = vmatpush3.bf16.msra.mxu1 %v4663_v31  ;;  %v6083_v13 = vcombine.high %v6026_v49, %v6042_v45 }
 0xa44   : > { %v6107_v51 = vcombine.high %v6058_v41, %v6074_v1  ;;  %v5345_v33 = vpop.permute.xlu0 %5344 }
 0xa45   : > { %v6097_v43 = vrot.slane %v6083_v13, %v9242_v32  ;;  %v10134_v26 = vrot.slane %v6082_v55, %v9242_v32  ;;  %v10137_v34 = vrot.slane %v6106_v58, %v9242_v32  ;;  %v5380_v30 = vcombine.low %v10020_v50, %v5345_v33  ;;  %v5347_v63 = vpop.permute.xlu1 %5346 }
 0xa46   : > { %8274 = vmatmul.mubr.msk.bf16.vlgmr.msra.gmra.mxu0 %vm1805_vm5, %v4852_v11  ;;  %v6121_v5 = vrot.slane %v6107_v51, %v9242_v32  ;;  %v5381_v31 = vcombine.high %v10020_v50, %v5345_v33 }
 0xa47   : > { %v6130_v46 = vcombine.low %v10134_v26, %v10137_v34  ;;  %v6131_v48 = vcombine.high %v10134_v26, %v10137_v34  ;;  %v5388_v41 = vrot.slane %v5380_v30, %v9237_v24 }
 0xa48   : > { %v6132_v28 = vcombine.low %v6097_v43, %v6121_v5  ;;  %v6133_v52 = vcombine.high %v6097_v43, %v6121_v5  ;;  %v5395_v1 = vrot.slane %v5381_v31, %v9237_v24 }
 0xa4a   : > { %v6147_v15 = vpack.c.bf16 %v6132_v28, %v6132_v28  ;;  %v10145_v0 = vpack.c.bf16 %v6133_v52, %v6133_v52 }
 0xa4c   : > { %8395 = vmatprep.subr.msk.bf16.mxu0 %vm1684_vm2, %v6147_v15  ;;  %8397 = vmatprep.subr.msk.bf16.mxu1 %vm1684_vm2, %v10145_v0  ;;  %v6164_v35 = vsel %vm1684_vm2, %v6147_v15, 0 }
 0xa4d   : > { %8286 = vmatpush3.bf16.xpose.msra.mxu0 %v6164_v35 }
 0xa4e   : > { %5355 = vrot.lane.b32.xlu1 %v10039_v61, %s8838_s20 }
 0xa89   : > { %v4832_v39 = vpop.xlane.xlu0 %4831 }
 0xa8d   : > { %v5354_v60 = vpop.permute.xlu0 %5353  ;;  %v4838_v51 = vpop.xlane.xlu1 %4837 }
 0xa8e   : > { %v5396_v53 = vcombine.low %v5336_v36, %v5354_v60  ;;  %v5397_v44 = vcombine.high %v5336_v36, %v5354_v60  ;;  %8611 = vrcp.f32 %v4838_v51 }
 0xa8f   : > { %8613 = vrcp.f32 %v4832_v39 }
 0xa90   : > { %v5404_v49 = vrot.slane %v5396_v53, %v9237_v24  ;;  %v5411_v45 = vrot.slane %v5397_v44, %v9237_v24  ;;  %v5514_v53 = vcombine.low %v10039_v61, %v5347_v63  ;;  %v5515_v44 = vcombine.high %v10039_v61, %v5347_v63 }
 0xa92   : > { %v5442_v55 = vcombine.low %v5388_v41, %v5404_v49  ;;  %v5443_v58 = vcombine.high %v5388_v41, %v5404_v49  ;;  %v5458_v13 = vcombine.low %v5395_v1, %v5411_v45  ;;  %v5459_v11 = vcombine.high %v5395_v1, %v5411_v45 }
 0xa94   : > { %v5450_v43 = vrot.slane %v5442_v55, %v9242_v32  ;;  %v5457_v5 = vrot.slane %v5443_v58, %v9242_v32  ;;  %v5466_v28 = vrot.slane %v5458_v13, %v9242_v32  ;;  %v5473_v52 = vrot.slane %v5459_v11, %v9242_v32 }
 0xa95   : > { %v5522_v55 = vrot.slane %v5514_v53, %v9237_v24  ;;  %v5529_v58 = vrot.slane %v5515_v44, %v9237_v24 }
 0xa96   : > { %v8000_v35 = vcombine.low %v5450_v43, %v5457_v5  ;;  %v8002_v36 = vcombine.high %v5450_v43, %v5457_v5  ;;  %v8004_v33 = vcombine.low %v5466_v28, %v5473_v52  ;;  %v8006_v60 = vcombine.high %v5466_v28, %v5473_v52 }
 0xa98   : > { %v5790_v45 = vrot.slane %v8000_v35, %v9237_v24  ;;  %v5806_v41 = vrot.slane %v8002_v36, %v9237_v24  ;;  %v5822_v1 = vrot.slane %v8004_v33, %v9237_v24  ;;  %v5838_v39 = vrot.slane %v8006_v60, %v9237_v24 }
 0xa9a   : > { %v5846_v28 = vcombine.low %v5790_v45, %v5806_v41  ;;  %v5870_v52 = vcombine.low %v5822_v1, %v5838_v39  ;;  %v5847_v60 = vcombine.high %v5790_v45, %v5806_v41  ;;  %v5871_v53 = vcombine.high %v5822_v1, %v5838_v39 }
 0xa9b   : > { %v8612_v5 = vpop.eup %8611 }
 0xa9c   : > { %v8614_v44 = vpop.eup %8613  ;;  %v5861_v39 = vrot.slane %v5847_v60, %v9242_v32  ;;  %v6224_v60 = vsel %vm1684_vm2, %v10145_v0, 0 }
 0xa9d   : > { %v4848_v41 = vmul.f32 %v8614_v44, %v10058_v12 }
 0xac6   : > { %v4835_v15 = vpop.xlane.xlu1 %4834 }
 0xac7   : > { %8615 = vrcp.f32 %v4835_v15 }
 0xaca   : > { %v5356_v30 = vpop.permute.xlu1 %5355 }
 0xacb   : > { %v5530_v31 = vcombine.low %v5338_v37, %v5356_v30  ;;  %v5531_v49 = vcombine.high %v5338_v37, %v5356_v30 }
 0xacd   : > { %v5538_v13 = vrot.slane %v5530_v31, %v9237_v24  ;;  %v5545_v11 = vrot.slane %v5531_v49, %v9237_v24 }
 0xacf   : > { %v5576_v63 = vcombine.low %v5522_v55, %v5538_v13  ;;  %v5577_v51 = vcombine.high %v5522_v55, %v5538_v13  ;;  %v5592_v43 = vcombine.low %v5529_v58, %v5545_v11  ;;  %v5593_v37 = vcombine.high %v5529_v58, %v5545_v11 }
 0xad0   : > { %v4850_v58 = vmul.f32 %v8612_v5, %v10067_v56  ;;  %v5854_v11 = vrot.slane %v5846_v28, %v9242_v32  ;;  %v5885_v56 = vrot.slane %v5871_v53, %v9242_v32 }
 0xad1   : > { %v5584_v15 = vrot.slane %v5576_v63, %v9242_v32  ;;  %v5591_v35 = vrot.slane %v5577_v51, %v9242_v32  ;;  %v5600_v36 = vrot.slane %v5592_v43, %v9242_v32  ;;  %v5607_v33 = vrot.slane %v5593_v37, %v9242_v32 }
 0xad2   : > { %v5878_v63 = vrot.slane %v5870_v52, %v9242_v32  ;;  %v5896_v53 = vcombine.low %v5861_v39, %v5885_v56  ;;  %v5897_v44 = vcombine.high %v5861_v39, %v5885_v56  ;;  %v6138_v56 = vmul.f32 0.25, %v6130_v46 }
 0xad3   : > { %v8008_v30 = vcombine.low %v5584_v15, %v5591_v35  ;;  %v8010_v31 = vcombine.high %v5584_v15, %v5591_v35  ;;  %v8012_v49 = vcombine.low %v5600_v36, %v5607_v33  ;;  %v8014_v55 = vcombine.high %v5600_v36, %v5607_v33 }
 0xad4   : > { %v8616_v13 = vpop.eup %8615  ;;  %v4854_v36 = vpack.c.bf16 %v4850_v58, %v4850_v58  ;;  %v5894_v33 = vcombine.low %v5854_v11, %v5878_v63 }
 0xad5   : > { %v5908_v51 = vrot.slane %v8008_v30, %v9237_v24  ;;  %v5924_v43 = vrot.slane %v8010_v31, %v9237_v24  ;;  %v5940_v37 = vrot.slane %v8012_v49, %v9237_v24  ;;  %v5956_v45 = vrot.slane %v8014_v55, %v9237_v24 }
 0xad6   : > { %v4849_v1 = vmul.f32 %v8616_v13, %v10116_v2  ;;  %v5895_v30 = vcombine.high %v5854_v11, %v5878_v63  ;;  %v6136_v63 = vmul.f32 0.25, %v5894_v33 }
 0xad7   : > { %v5964_v5 = vcombine.low %v5908_v51, %v5924_v43  ;;  %v5988_v28 = vcombine.low %v5940_v37, %v5956_v45  ;;  %v5965_v15 = vcombine.high %v5908_v51, %v5924_v43  ;;  %v5989_v52 = vcombine.high %v5940_v37, %v5956_v45 }
 0xad8   : > { %v4853_v35 = vpack.c.bf16 %v4849_v1, %v4848_v41  ;;  %v6139_v51 = vmul.f32 0.25, %v5895_v30 }
 0xad9   : > { %v5979_v31 = vrot.slane %v5965_v15, %v9242_v32  ;;  %v6003_v49 = vrot.slane %v5989_v52, %v9242_v32  ;;  %v5972_v12 = vrot.slane %v5964_v5, %v9242_v32  ;;  %v5996_v2 = vrot.slane %v5988_v28, %v9242_v32 }
 0xada   : > { %8281 = vmatprep.mubr.msk.bf16.mxu1 %vm1805_vm5, %v4853_v35  ;;  %v6143_v28 = vpack.c.bf16 %v6138_v56, %v6138_v56  ;;  %v6141_v15 = vmul.f32 0.25, %v6131_v48 }
 0xadb   : > { %8282 = vmatmul.mubr.msk.bf16.vlgmr.msra.gmra.mxu1 %vm1805_vm5, %v4854_v36  ;;  %v6014_v55 = vcombine.low %v5979_v31, %v6003_v49  ;;  %v6015_v13 = vcombine.high %v5979_v31, %v6003_v49  ;;  %v6012_v58 = vcombine.low %v5972_v12, %v5996_v2  ;;  %v6013_v11 = vcombine.high %v5972_v12, %v5996_v2 }
 0xadc   : > { %8294 = vmatpush3.bf16.xpose.msra.mxu1 %v6224_v60  ;;  %v6145_v52 = vpack.c.bf16 %v6141_v15, %v6141_v15 }
 0xadd   : > { %v6146_v43 = vpack.c.bf16 %v6014_v55, %v5896_v53  ;;  %v6148_v37 = vpack.c.bf16 %v6015_v13, %v5897_v44  ;;  %v6137_v45 = vmul.f32 0.25, %v6012_v58  ;;  %v6140_v41 = vmul.f32 0.25, %v6013_v11 }
 0xadf   : > { %8396 = vmatprep.subr.msk.bf16.mxu0 %vm1684_vm2, %v6146_v43  ;;  %8398 = vmatprep.subr.msk.bf16.mxu1 %vm1684_vm2, %v6148_v37  ;;  %v6161_v0 = vsel %vm1684_vm2, %v6146_v43, 0  ;;  %v6142_v1 = vpack.c.bf16 %v6137_v45, %v6136_v63  ;;  %v6144_v39 = vpack.c.bf16 %v6140_v41, %v6139_v51  ;;  %v6221_v5 = vsel %vm1684_vm2, %v6148_v37, 0 }
 0xae0   : > { %8288 = vmatpush3.bf16.xpose.msra.mxu0 %v6161_v0 }
 0xae1   : > { %8289 = vmatprep.mubr.msk.bf16.mxu0 %vm1684_vm2, %v6142_v1  ;;  %8297 = vmatprep.mubr.msk.bf16.mxu1 %vm1684_vm2, %v6144_v39 }
 0xae4   : > { %8296 = vmatpush3.bf16.xpose.msra.mxu1 %v6221_v5 }
 0xae7   : > { %8290 = vmatmul.mubr.msk.bf16.vlgmr.msra.gmra.mxu0 %vm1684_vm2, %v6143_v28 }
 0xaeb   : > { %8298 = vmatmul.mubr.msk.bf16.vlgmr.msra.gmra.mxu1 %vm1684_vm2, %v6145_v52 }
 0xb06   : > { %v8275_v35 = vpop.f32.mrf.mxu0 }
 0xb07   : > { %v5101_v30 = vcombine.high %v8275_v35, %v8846_v40  ;;  %v5108_v49 = vrot.slane %v8275_v35, %v9237_v24 }
 0xb08   : > { %v4898_v36 = vpop.f32.mrf.mxu0 }
 0xb09   : > { %v4969_v46 = vcombine.high %v4898_v36, %v8846_v40  ;;  %v5115_v34 = vrot.slane %v5101_v30, %v9237_v24  ;;  %v4976_v13 = vrot.slane %v4898_v36, %v9237_v24 }
 0xb0a   : > { %v8276_v33 = vpop.f32.mrf.mxu0 }
 0xb0b   : > { %v4983_v58 = vrot.slane %v4969_v46, %v9237_v24 }
 0xb0c   : > { %v4901_v2 = vpop.f32.mrf.mxu0 }
 0xb0d   : > { %v5035_v41 = vcombine.high %v4901_v2, %v8846_v40 }
 0xb9b   : > { %v8283_v31 = vpop.f32.mrf.mxu1 }
 0xb9c   : > { %v5116_v12 = vcombine.high %v8283_v31, %v8846_v40  ;;  %v5123_v26 = vrot.slane %v8283_v31, %v9237_v24 }
 0xb9d   : > { %v4955_v48 = vpop.f32.mrf.mxu1 }
 0xb9e   : > { %v5130_v60 = vrot.slane %v5116_v12, %v9237_v24  ;;  %v5131_v53 = vcombine.low %v5108_v49, %v5123_v26  ;;  %v5132_v44 = vcombine.high %v5108_v49, %v5123_v26  ;;  %v4984_v55 = vcombine.high %v4955_v48, %v8846_v40 }
 0xb9f   : > { %v4991_v11 = vrot.slane %v4955_v48, %v9237_v24  ;;  %v8284_v63 = vpop.f32.mrf.mxu1 }
 0xba0   : > { %v5139_v51 = vrot.slane %v5131_v53, %v9242_v32  ;;  %v5146_v43 = vrot.slane %v5132_v44, %v9242_v32  ;;  %v5147_v37 = vcombine.low %v5115_v34, %v5130_v60  ;;  %v5148_v45 = vcombine.high %v5115_v34, %v5130_v60 }
 0xba1   : > { %v4998_v0 = vrot.slane %v4984_v55, %v9237_v24  ;;  %v4999_v1 = vcombine.low %v4976_v13, %v4991_v11  ;;  %v5000_v39 = vcombine.high %v4976_v13, %v4991_v11  ;;  %v4958_v30 = vpop.f32.mrf.mxu1 }
 0xba2   : > { %v5155_v56 = vrot.slane %v5147_v37, %v9242_v32  ;;  %v5162_v5 = vrot.slane %v5148_v45, %v9242_v32  ;;  %v5267_v28 = vcombine.low %v5139_v51, %v5146_v43  ;;  %v7998_v15 = vcombine.high %v5139_v51, %v5146_v43 }
 0xba3   : > { %v5007_v52 = vrot.slane %v4999_v1, %v9242_v32  ;;  %v5014_v35 = vrot.slane %v5000_v39, %v9242_v32  ;;  %v5015_v36 = vcombine.low %v4983_v58, %v4998_v0  ;;  %v5016_v33 = vcombine.high %v4983_v58, %v4998_v0 }
 0xba4   : > { %v5274_v46 = vrot.slane %v5267_v28, %v9237_v24  ;;  %v5282_v31 = vrot.slane %v7998_v15, %v9237_v24  ;;  %v5283_v49 = vcombine.low %v5155_v56, %v5162_v5  ;;  %v7999_v12 = vcombine.high %v5155_v56, %v5162_v5 }
 0xba5   : > { %v5023_v26 = vrot.slane %v5015_v36, %v9242_v32  ;;  %v5030_v34 = vrot.slane %v5016_v33, %v9242_v32  ;;  %v5167_v48 = vcombine.low %v5007_v52, %v5014_v35  ;;  %v7994_v60 = vcombine.high %v5007_v52, %v5014_v35 }
 0xba6   : > { %v5290_v53 = vrot.slane %v5283_v49, %v9237_v24  ;;  %v5298_v44 = vrot.slane %v7999_v12, %v9237_v24  ;;  %v5299_v55 = vcombine.low %v5274_v46, %v5282_v31  ;;  %v5050_v13 = vcombine.high %v4958_v30, %v8846_v40 }
 0xba7   : > { %v5174_v58 = vrot.slane %v5167_v48, %v9237_v24  ;;  %v5182_v11 = vrot.slane %v7994_v60, %v9237_v24  ;;  %v5183_v63 = vcombine.low %v5023_v26, %v5030_v34  ;;  %v7995_v51 = vcombine.high %v5023_v26, %v5030_v34  ;;  %v8291_v43 = vpop.f32.mrf.mxu0 }
 0xba8   : > { %v5042_v37 = vrot.slane %v4901_v2, %v9237_v24  ;;  %v5049_v45 = vrot.slane %v5035_v41, %v9237_v24  ;;  %v5057_v0 = vrot.slane %v4958_v30, %v9237_v24  ;;  %v5064_v1 = vrot.slane %v5050_v13, %v9237_v24 }
 0xba9   : > { %v5190_v39 = vrot.slane %v5183_v63, %v9237_v24  ;;  %v5198_v56 = vrot.slane %v7995_v51, %v9237_v24  ;;  %v5199_v5 = vcombine.low %v5174_v58, %v5182_v11  ;;  %v6200_v28 = vpop.f32.mrf.mxu0  ;;  %v5307_v15 = vcombine.low %v5290_v53, %v5298_v44 }
 0xbaa   : > { %v5065_v52 = vcombine.low %v5042_v37, %v5057_v0  ;;  %v5066_v35 = vcombine.high %v5042_v37, %v5057_v0  ;;  %v5081_v36 = vcombine.low %v5049_v45, %v5064_v1  ;;  %v5082_v33 = vcombine.high %v5049_v45, %v5064_v1 }
 0xbab   : > { %v6209_v46 = vadd.f32 %v8291_v43, %v9340_v4  ;;  %v6201_v2 = vadd.f32 %v6200_v28, %v9342_v6  ;;  %v8299_v41 = vpop.f32.mrf.mxu1  ;;  %v8292_v31 = vpop.f32.mrf.mxu0  ;;  %v5207_v30 = vcombine.low %v5190_v39, %v5198_v56  ;;  %v10252_v44 = vrot.slane %v5199_v5, %v9242_v32 }
 0xbac   : > { %v5073_v49 = vrot.slane %v5065_v52, %v9242_v32  ;;  %v5080_v12 = vrot.slane %v5066_v35, %v9242_v32  ;;  %v5089_v26 = vrot.slane %v5081_v36, %v9242_v32  ;;  %v5096_v34 = vrot.slane %v5082_v33, %v9242_v32 }
 0xbad   : > { %v6260_v48 = vpop.f32.mrf.mxu1  ;;  %v6203_v60 = vpop.f32.mrf.mxu0  ;;  %v6274_v53 = vsel %vm1805_vm5, %v6201_v2, -inf  ;;  %v10255_v13 = vrot.slane %v5207_v30, %v9242_v32  ;;  %v10258_v58 = vrot.slane %v5307_v15, %v9242_v32  ;;  %v10267_v39 = vrot.slane %v5299_v55, %v9242_v32 }
 0xbae   : > { %v5217_v11 = vcombine.low %v5073_v49, %v5080_v12  ;;  %v7996_v63 = vcombine.high %v5073_v49, %v5080_v12  ;;  %v5233_v51 = vcombine.low %v5089_v26, %v5096_v34  ;;  %v7997_v43 = vcombine.high %v5089_v26, %v5096_v34  ;;  %6275 = vmax.xlane.f32.xlu0 %v6274_v53 }
 0xbaf   : > { %v10261_v37 = vadd.f32 %v6260_v48, %v9342_v6  ;;  %v6204_v45 = vadd.f32 %v6203_v60, %v9349_v17  ;;  %v8300_v0 = vpop.f32.mrf.mxu1  ;;  %v5216_v1 = vcombine.high %v10252_v44, %v10255_v13  ;;  %v5215_v36 = vcombine.low %v10252_v44, %v10255_v13 }
 0xbb0   : > { %v5224_v56 = vrot.slane %v5217_v11, %v9237_v24  ;;  %v5232_v5 = vrot.slane %v7996_v63, %v9237_v24  ;;  %v5240_v28 = vrot.slane %v5233_v51, %v9237_v24  ;;  %v5248_v15 = vrot.slane %v7997_v43, %v9237_v24 }
 0xbb1   : > { %v6263_v52 = vpop.f32.mrf.mxu1  ;;  %v6277_v6 = vsel %vm1805_vm5, %v6204_v45, -inf  ;;  %v6283_v35 = vsel %vm1805_vm5, %v10261_v37, -inf  ;;  %v5316_v55 = vcombine.high %v10267_v39, %v10258_v58  ;;  %v5315_v49 = vcombine.low %v10267_v39, %v10258_v58 }
 0xbb2   : > { %v5249_v33 = vcombine.low %v5224_v56, %v5232_v5  ;;  %v6264_v31 = vadd.f32 %v6263_v52, %v9349_v17  ;;  %6278 = vmax.xlane.f32.xlu1 %v6277_v6  ;;  %6284 = vmax.xlane.f32.xlu0 %v6283_v35  ;;  %v5257_v30 = vcombine.low %v5240_v28, %v5248_v15  ;;  %v6280_v48 = vsel %vm1805_vm5, %v6209_v46, -inf }
 0xbb3   : > { %v6269_v34 = vadd.f32 %v8299_v41, %v9340_v4 }
 0xbb4   : > { %v10284_v12 = vrot.slane %v5249_v33, %v9242_v32  ;;  %v10287_v26 = vrot.slane %v5257_v30, %v9242_v32  ;;  %v6286_v60 = vsel %vm1805_vm5, %v6264_v31, -inf }
 0xbb5   : > { %v6289_v63 = vsel %vm1805_vm5, %v6269_v34, -inf }
 0xbb6   : > { %6281 = vmax.xlane.f32.xlu1 %v6280_v48  ;;  %6287 = vmax.xlane.f32.xlu0 %v6286_v60  ;;  %v5266_v17 = vcombine.high %v10284_v12, %v10287_v26  ;;  %v5265_v53 = vcombine.low %v10284_v12, %v10287_v26 }
 0xbb8   : > { %v8516_v11 = vpack.i.bf16 %v5266_v17, %v5216_v1 }
 0xbba   : > { %6290 = vmax.xlane.f32.xlu0 %v6289_v63 }
 0xc37   : > { %v6276_v51 = vpop.xlane.xlu0 %6275 }
 0xc38   : > { %v6292_v43 = vsub.f32 %v6201_v2, %v6276_v51 }
 0xc3a   : > { %v6298_v0 = vmul.f32 1.442695, %v6292_v43 }
 0xc3b   : > { %v6279_v4 = vpop.xlane.xlu1 %6278 }
 0xc3c   : > { %8617 = vpow2.f32 %v6298_v0  ;;  %v6293_v41 = vsub.f32 %v6204_v45, %v6279_v4 }
 0xc3e   : > { %v6300_v56 = vmul.f32 1.442695, %v6293_v41 }
 0xc3f   : > { %v6282_v5 = vpop.xlane.xlu1 %6281 }
 0xc40   : > { %8619 = vpow2.f32 %v6300_v56  ;;  %v6294_v28 = vsub.f32 %v6209_v46, %v6282_v5  ;;  %v6285_v46 = vpop.xlane.xlu0 %6284 }
 0xc41   : > { %v6295_v51 = vsub.f32 %v10261_v37, %v6285_v46 }
 0xc42   : > { %v6302_v15 = vmul.f32 1.442695, %v6294_v28 }
 0xc43   : > { %v6304_v43 = vmul.f32 1.442695, %v6295_v51 }
 0xc44   : > { %8621 = vpow2.f32 %v6302_v15  ;;  %v6288_v33 = vpop.xlane.xlu0 %6287 }
 0xc45   : > { %v6296_v60 = vsub.f32 %v6264_v31, %v6288_v33 }
 0xc47   : > { %v6306_v63 = vmul.f32 1.442695, %v6296_v60 }
 0xc48   : > { %v6291_v30 = vpop.xlane.xlu0 %6290 }
 0xc49   : > { %v10297_v52 = vpop.eup %8617  ;;  %v6297_v48 = vsub.f32 %v6269_v34, %v6291_v30 }
 0xc4a   : > { %v6310_v1 = vsel %vm1805_vm5, %v10297_v52, 0.0 }
 0xc4b   : > { %6311 = vadd.xlane.f32.xlu1 %v6310_v1  ;;  %v6308_v17 = vmul.f32 1.442695, %v6297_v48 }
 0xc4d   : > { %v10301_v6 = vpop.eup %8619  ;;  %8623 = vpow2.f32 %v6308_v17 }
 0xc4e   : > { %v6313_v2 = vsel %vm1805_vm5, %v10301_v6, 0.0  ;;  %8625 = vpow2.f32 %v6306_v63 }
 0xc4f   : > { %6314 = vadd.xlane.f32.xlu0 %v6313_v2  ;;  %8627 = vpow2.f32 %v6304_v43 }
 0xc51   : > { %v10305_v35 = vpop.eup %8621 }
 0xc52   : > { %v6316_v45 = vsel %vm1805_vm5, %v10305_v35, 0.0 }
 0xc53   : > { %6317 = vadd.xlane.f32.xlu1 %v6316_v45 }
 0xc5a   : > { %v10318_v0 = vpop.eup %8623 }
 0xc5b   : > { %v10322_v4 = vpop.eup %8625 }
 0xc5c   : > { %v6322_v34 = vsel %vm1805_vm5, %v10322_v4, 0.0  ;;  %v10326_v31 = vpop.eup %8627 }
 0xc5d   : > { %v6319_v37 = vsel %vm1805_vm5, %v10326_v31, 0.0 }
 0xc64   : > { %5366 = vrot.lane.b32.xlu1 %v10014_v47, %s8841_s3 }
 0xc65   : > { %5375 = vrot.lane.b32.xlu0 %v10014_v47, %s8845_s12  ;;  %v6325_v47 = vsel %vm1805_vm5, %v10318_v0, 0.0 }
 0xc68   : > { %5362 = vrot.lane.b32.xlu1 %v10020_v50, %s8841_s3 }
 0xc6c   : > { %5364 = vrot.lane.b32.xlu1 %v10039_v61, %s8841_s3 }
 0xc84   : > { %6326 = vadd.xlane.f32.xlu0 %v6325_v47 }
 0xc88   : > { %6323 = vadd.xlane.f32.xlu0 %v6322_v34 }
 0xc90   : > { %6320 = vadd.xlane.f32.xlu1 %v6319_v37 }
 0xc9e   : > { %5371 = vrot.lane.b32.xlu0 %v10020_v50, %s8845_s12 }
 0xca1   : > { %5373 = vrot.lane.b32.xlu1 %v10039_v61, %s8845_s12 }
 0xca2   : > { %8502 = vrot.lane.b32.xlu0 %v9675_v7, %s8847_s30 }
 0xca5   : > { %8507 = vrot.lane.b32.xlu1 %v9968_v54, %s8847_s30 }
 0xca6   : > { %8512 = vrot.lane.b32.xlu0 %v9987_v27, %s8847_s30 }
 0xca9   : > { %8517 = vrot.lane.b32.xlu1 %v8516_v11, %s8847_s30 }
 0xcd4   : > { %v6312_v41 = vpop.xlane.xlu1 %6311 }
 0xcd5   : > { %8629 = vrcp.f32 %v6312_v41 }
 0xcd8   : > { %v6315_v56 = vpop.xlane.xlu0 %6314 }
 0xcd9   : > { %8631 = vrcp.f32 %v6315_v56 }
 0xcdc   : > { %v10341_v50 = vpop.xlane.xlu1 %6317  ;;  %v5376_v5 = vpop.permute.xlu0 %5375 }
 0xcdd   : > { %v5695_v61 = vcombine.high %v5376_v5, %v8846_v40  ;;  %v5702_v7 = vrot.slane %v5376_v5, %v9237_v24 }
 0xcdf   : > { %v5709_v27 = vrot.slane %v5695_v61, %v9237_v24 }
 0xce0   : > { %v5367_v28 = vpop.permute.xlu1 %5366 }
 0xce1   : > { %v5680_v15 = vcombine.high %v5367_v28, %v8846_v40  ;;  %v5687_v54 = vrot.slane %v5367_v28, %v9237_v24 }
 0xce2   : > { %v8630_v45 = vpop.eup %8629 }
 0xce3   : > { %v5694_v11 = vrot.slane %v5680_v15, %v9237_v24  ;;  %v5742_v1 = vcombine.low %v5687_v54, %v5702_v7  ;;  %v5743_v2 = vcombine.high %v5687_v54, %v5702_v7  ;;  %v6334_v47 = vmul.f32 %v8630_v45, %v10297_v52 }
 0xce5   : > { %v5750_v46 = vrot.slane %v5742_v1, %v9242_v32  ;;  %v5757_v33 = vrot.slane %v5743_v2, %v9242_v32  ;;  %v5758_v30 = vcombine.low %v5694_v11, %v5709_v27  ;;  %v5759_v48 = vcombine.high %v5694_v11, %v5709_v27 }
 0xce6   : > { %v8632_v60 = vpop.eup %8631 }
 0xce7   : > { %v5766_v17 = vrot.slane %v5758_v30, %v9242_v32  ;;  %v5773_v63 = vrot.slane %v5759_v48, %v9242_v32  ;;  %v8017_v51 = vcombine.low %v5750_v46, %v5757_v33  ;;  %v8019_v43 = vcombine.high %v5750_v46, %v5757_v33  ;;  %v5363_v30 = vpop.permute.xlu1 %5362 }
 0xce8   : > { %v6335_v34 = vmul.f32 %v8632_v60, %v10301_v6  ;;  %v5412_v60 = vcombine.high %v5363_v30, %v8846_v40 }
 0xce9   : > { %v6033_v37 = vrot.slane %v8017_v51, %v9237_v24  ;;  %v6049_v41 = vrot.slane %v8019_v43, %v9237_v24  ;;  %v8021_v56 = vcombine.low %v5766_v17, %v5773_v63  ;;  %v8023_v5 = vcombine.high %v5766_v17, %v5773_v63 }
 0xcea   : > { %v6340_v61 = vpack.c.bf16 %v6335_v34, %v6334_v47  ;;  %v5419_v51 = vrot.slane %v5363_v30, %v9237_v24  ;;  %v5426_v34 = vrot.slane %v5412_v60, %v9237_v24 }
 0xceb   : > { %v6065_v28 = vrot.slane %v8021_v56, %v9237_v24  ;;  %v6081_v7 = vrot.slane %v8023_v5, %v9237_v24  ;;  %v6098_v15 = vcombine.low %v6033_v37, %v6049_v41  ;;  %v5365_v17 = vpop.permute.xlu1 %5364 }
 0xcec   : > { %8305 = vmatprep.mubr.msk.bf16.mxu0 %vm1805_vm5, %v6340_v61  ;;  %v5546_v5 = vcombine.high %v5365_v17, %v8846_v40 }
 0xced   : > { %v6122_v54 = vcombine.low %v6065_v28, %v6081_v7  ;;  %v6105_v27 = vrot.slane %v6098_v15, %v9242_v32 }
 0xcef   : > { %v6129_v52 = vrot.slane %v6122_v54, %v9242_v32 }
 0xcf1   : > { %v6134_v6 = vcombine.low %v6105_v27, %v6129_v52  ;;  %v6135_v11 = vcombine.high %v6105_v27, %v6129_v52 }
 0xcf3   : > { %v6151_v1 = vpack.c.bf16 %v6134_v6, %v6134_v6  ;;  %v6153_v2 = vpack.c.bf16 %v6135_v11, %v6135_v11 }
 0xcf5   : > { %8399 = vmatprep.subr.msk.bf16.mxu0 %vm1882_vm7, %v6151_v1  ;;  %8400 = vmatprep.subr.msk.bf16.mxu1 %vm1882_vm7, %v6153_v2  ;;  %v6351_v45 = vsel %vm1882_vm7, %v6151_v1, 0  ;;  %v6408_v46 = vsel %vm1882_vm7, %v6153_v2, 0 }
 0xcf6   : > { %8302 = vmatpush3.bf16.msra.mxu0 %v6351_v45  ;;  %8310 = vmatpush3.bf16.msra.mxu1 %v6408_v46  ;;  %v5553_v45 = vrot.slane %v5365_v17, %v9237_v24 }
 0xd0d   : > { %v6327_v33 = vpop.xlane.xlu0 %6326 }
 0xd11   : > { %v6324_v48 = vpop.xlane.xlu0 %6323 }
 0xd12   : > { %8633 = vrcp.f32 %v6324_v48 }
 0xd15   : > { %v5372_v63 = vpop.permute.xlu0 %5371 }
 0xd16   : > { %v5427_v43 = vcombine.high %v5372_v63, %v8846_v40  ;;  %v5434_v47 = vrot.slane %v5372_v63, %v9237_v24  ;;  %v5560_v63 = vrot.slane %v5546_v5, %v9237_v24 }
 0xd18   : > { %v5441_v37 = vrot.slane %v5427_v43, %v9237_v24  ;;  %v5474_v41 = vcombine.low %v5419_v51, %v5434_v47  ;;  %v5475_v56 = vcombine.high %v5419_v51, %v5434_v47 }
 0xd19   : > { %v6321_v61 = vpop.xlane.xlu1 %6320  ;;  %v8503_v28 = vpop.permute.xlu0 %8502 }
 0xd1a   : > { %v5482_v7 = vrot.slane %v5474_v41, %v9242_v32  ;;  %v5489_v15 = vrot.slane %v5475_v56, %v9242_v32  ;;  %v5490_v54 = vcombine.low %v5426_v34, %v5441_v37  ;;  %v5491_v27 = vcombine.high %v5426_v34, %v5441_v37 }
 0xd1b   : > { %8635 = vrcp.f32 %v6321_v61  ;;  %v8505_v52 = vunpack.i.h.bf16 %v8503_v28  ;;  %v8504_v6 = vunpack.i.l.bf16 %v8503_v28 }
 0xd1c   : > { %v5498_v11 = vrot.slane %v5490_v54, %v9242_v32  ;;  %v5505_v1 = vrot.slane %v5491_v27, %v9242_v32  ;;  %v8001_v2 = vcombine.low %v5482_v7, %v5489_v15  ;;  %8637 = vrcp.f32 %v10341_v50 }
 0xd1d   : > { %v10383_v46 = vsel %vm1684_vm2, %v2287_v10, %v8505_v52  ;;  %v10389_v30 = vsel %vm1684_vm2, %v2237_v9, %v8504_v6  ;;  %v5374_v48 = vpop.permute.xlu1 %5373  ;;  %v8513_v60 = vpop.permute.xlu0 %8512  ;;  %8639 = vrcp.f32 %v6327_v33  ;;  %v8003_v19 = vcombine.high %v5482_v7, %v5489_v15 }
 0xd1e   : > { %v8005_v50 = vcombine.low %v5498_v11, %v5505_v1  ;;  %v8007_v51 = vcombine.high %v5498_v11, %v5505_v1  ;;  %v6821_v17 = vpack.c.bf16 %v10383_v46, %v10389_v30  ;;  %v5561_v14 = vcombine.high %v5374_v48, %v8846_v40 }
 0xd1f   : > { %v5568_v18 = vrot.slane %v5374_v48, %v9237_v24  ;;  %v8515_v10 = vunpack.i.h.bf16 %v8513_v60  ;;  %v5797_v62 = vrot.slane %v8001_v2, %v9237_v24  ;;  %v8514_v43 = vunpack.i.l.bf16 %v8513_v60 }
 0xd20   : > { %v5829_v9 = vrot.slane %v8005_v50, %v9237_v24  ;;  %v5575_v47 = vrot.slane %v5561_v14, %v9237_v24  ;;  %v5845_v56 = vrot.slane %v8007_v51, %v9237_v24  ;;  %v5813_v29 = vrot.slane %v8003_v19, %v9237_v24 }
 0xd21   : > { %v5608_v34 = vcombine.low %v5553_v45, %v5568_v18  ;;  %v5609_v33 = vcombine.high %v5553_v45, %v5568_v18  ;;  %v10403_v37 = vsel %vm1684_vm2, %v3826_v16, %v8515_v10  ;;  %v8508_v41 = vpop.permute.xlu1 %8507  ;;  %v10410_v5 = vsel %vm1684_vm2, %v3776_v22, %v8514_v43  ;;  %v8634_v22 = vpop.eup %8633 }
 0xd22   : > { %v8510_v61 = vunpack.i.h.bf16 %v8508_v41  ;;  %v8509_v28 = vunpack.i.l.bf16 %v8508_v41  ;;  %v5624_v54 = vcombine.low %v5560_v63, %v5575_v47  ;;  %v5625_v25 = vcombine.high %v5560_v63, %v5575_v47 }
 0xd23   : > { %v5616_v7 = vrot.slane %v5608_v34, %v9242_v32  ;;  %v5623_v15 = vrot.slane %v5609_v33, %v9242_v32  ;;  %v6823_v16 = vpack.c.bf16 %v10403_v37, %v10410_v5  ;;  %v5886_v60 = vcombine.low %v5829_v9, %v5845_v56  ;;  %v8533_v5 = vld [vmem:[%s8998_s22 + $0x8] sm:$0xff]  }
 0xd24   : > { %v3840_v38 = vsel %vm1684_vm2, %v3726_v59, %v8510_v61  ;;  %v2353_v23 = vsel %vm1684_vm2, %v2337_v42, %v8509_v28  ;;  %v5632_v27 = vrot.slane %v5624_v54, %v9242_v32  ;;  %v5639_v52 = vrot.slane %v5625_v25, %v9242_v32 }
 0xd25   : > { %v8009_v6 = vcombine.low %v5616_v7, %v5623_v15  ;;  %v8011_v11 = vcombine.high %v5616_v7, %v5623_v15  ;;  %v8518_v1 = vpop.permute.xlu1 %8517  ;;  %v6822_v2 = vpack.c.bf16 %v3840_v38, %v2353_v23  ;;  %v6338_v50 = vmul.f32 %v8634_v22, %v10322_v4  ;;  %v8534_v7 = vld [vmem:[%s8998_s22] sm:$0xff]   ;;  %s11038_s22 = scalar_lea.vmem [#allocation2], %s8972_s24 }
 0xd26   : > { %v8520_v45 = vunpack.i.h.bf16 %v8518_v1  ;;  %v8519_v48 = vunpack.i.l.bf16 %v8518_v1  ;;  %v8013_v59 = vcombine.low %v5632_v27, %v5639_v52  ;;  %v8015_v3 = vcombine.high %v5632_v27, %v5639_v52  ;;  %s11039_s21 = smov %s11038_s22 }
 0xd27   : > { %v5915_v21 = vrot.slane %v8009_v6, %v9237_v24  ;;  %v5931_v8 = vrot.slane %v8011_v11, %v9237_v24  ;;  %v5862_v51 = vcombine.low %v5797_v62, %v5813_v29 }
 0xd28   : > { %v8636_v57 = vpop.eup %8635  ;;  %v5330_v42 = vsel %vm1684_vm2, %v5265_v53, %v8520_v45  ;;  %v5329_v63 = vsel %vm1684_vm2, %v5215_v36, %v8519_v48  ;;  %v5947_v14 = vrot.slane %v8013_v59, %v9237_v24  ;;  %v5963_v18 = vrot.slane %v8015_v3, %v9237_v24 }
 0xd29   : > { %v6824_v10 = vpack.c.bf16 %v5330_v42, %v5329_v63  ;;  %v6337_v19 = vmul.f32 %v8636_v57, %v10326_v31  ;;  %v8638_v9 = vpop.eup %8637  ;;  %v5980_v43 = vcombine.low %v5915_v21, %v5931_v8  ;;  %v5893_v53 = vrot.slane %v5886_v60, %v9242_v32 }
 0xd2a   : > { %v8640_v12 = vpop.eup %8639  ;;  %v6004_v44 = vcombine.low %v5947_v14, %v5963_v18  ;;  %v5869_v13 = vrot.slane %v5862_v51, %v9242_v32  ;;  %v6336_v41 = vmul.f32 %v8638_v9, %v10305_v35 }
 0xd2b   : > { %v6342_v26 = vpack.c.bf16 %v6338_v50, %v6337_v19  ;;  %v5987_v36 = vrot.slane %v5980_v43, %v9242_v32  ;;  %v6339_v56 = vmul.f32 %v8640_v12, %v10318_v0 }
 0xd2c   : > { %v6011_v4 = vrot.slane %v6004_v44, %v9242_v32  ;;  %v5898_v62 = vcombine.low %v5869_v13, %v5893_v53  ;;  %v5899_v31 = vcombine.high %v5869_v13, %v5893_v53  ;;  %v6341_v61 = vpack.c.bf16 %v6336_v41, %v6336_v41 }
 0xd2d   : > { %8313 = vmatprep.mubr.msk.bf16.mxu1 %vm1805_vm5, %v6342_v26  ;;  %v6343_v28 = vpack.c.bf16 %v6339_v56, %v6339_v56 }
 0xd2e   : > { %v6016_v47 = vcombine.low %v5987_v36, %v6011_v4  ;;  %v6017_v34 = vcombine.high %v5987_v36, %v6011_v4 }
 0xd30   : > { %v6150_v33 = vpack.c.bf16 %v6016_v47, %v5898_v62  ;;  %v6152_v37 = vpack.c.bf16 %v6017_v34, %v5899_v31 }
 0xd32   : > { %8303 = vmatprep.subr.bf16.mxu0 %v6150_v33  ;;  %8311 = vmatprep.subr.bf16.mxu1 %v6152_v37 }
 0xd33   : > { %8304 = vmatpush3.bf16.msra.mxu0 %v6150_v33  ;;  %8312 = vmatpush3.bf16.msra.mxu1 %v6152_v37 }
 0xd34   : > { %8317 = vmatprep.subr.bf16.mxu0 %v8533_v5 }
 0xd36   : > { %8306 = vmatmul.mubr.msk.bf16.vlgmr.msra.gmra.mxu0 %vm1805_vm5, %v6341_v61  ;;  %8314 = vmatmul.mubr.msk.bf16.vlgmr.msra.gmra.mxu1 %vm1805_vm5, %v6343_v28 }
 0xd37   : > { %8318 = vmatpush3.bf16.msra.mxu0 %v8533_v5  ;;  %8321 = vmatprep.mubr.msk.bf16.mxu0 %vm762_vm1, %v6821_v17 }
 0xd38   : > { %8319 = vmatprep.subr.bf16.mxu0 %v8534_v7 }
 0xd3b   : > { %8320 = vmatpush3.bf16.msra.mxu0 %v8534_v7 }
 0xd3e   : > { %8322 = vmatmul.mubr.msk.bf16.vlgmr.msra.gmra.mxu0 %vm762_vm1, %v6822_v2 }
 0xd3f   : > { %8325 = vmatprep.mubr.msk.bf16.mxu0 %vm762_vm1, %v6823_v16 }
 0xd46   : > { %8326 = vmatmul.mubr.msk.bf16.gmra.mxu0 %vm762_vm1, %v6824_v10 }
 0xdf6   : > { %v8307_v35 = vpop.f32.mrf.mxu0  ;;  %v8315_v0 = vpop.f32.mrf.mxu1 }
 0xdf7   : > { %v6590_v15 = vcombine.high %v8307_v35, %v8846_v40  ;;  %v6597_v54 = vrot.slane %v8307_v35, %v9237_v24  ;;  %v6605_v25 = vcombine.high %v8315_v0, %v8846_v40  ;;  %v6612_v46 = vrot.slane %v8315_v0, %v9237_v24 }
 0xdf8   : > { %v6387_v30 = vpop.f32.mrf.mxu0  ;;  %v6444_v17 = vpop.f32.mrf.mxu1 }
 0xdf9   : > { %v6604_v29 = vrot.slane %v6590_v15, %v9237_v24  ;;  %v6619_v38 = vrot.slane %v6605_v25, %v9237_v24  ;;  %v6620_v23 = vcombine.low %v6597_v54, %v6612_v46  ;;  %v6621_v16 = vcombine.high %v6597_v54, %v6612_v46 }
 0xdfa   : > { %v6458_v22 = vcombine.high %v6387_v30, %v8846_v40  ;;  %v6465_v27 = vrot.slane %v6387_v30, %v9237_v24  ;;  %v6473_v52 = vcombine.high %v6444_v17, %v8846_v40  ;;  %v6480_v6 = vrot.slane %v6444_v17, %v9237_v24  ;;  %v8308_v11 = vpop.f32.mrf.mxu0  ;;  %v8316_v1 = vpop.f32.mrf.mxu1 }
 0xdfb   : > { %v6636_v2 = vcombine.low %v6604_v29, %v6619_v38  ;;  %v6637_v45 = vcombine.high %v6604_v29, %v6619_v38  ;;  %v6628_v59 = vrot.slane %v6620_v23, %v9242_v32  ;;  %v6635_v3 = vrot.slane %v6621_v16, %v9242_v32 }
 0xdfc   : > { %v6472_v48 = vrot.slane %v6458_v22, %v9237_v24  ;;  %v6487_v60 = vrot.slane %v6473_v52, %v9237_v24  ;;  %v6488_v21 = vcombine.low %v6465_v27, %v6480_v6  ;;  %v6489_v8 = vcombine.high %v6465_v27, %v6480_v6  ;;  %v6390_v51 = vpop.f32.mrf.mxu0  ;;  %v6447_v12 = vpop.f32.mrf.mxu1 }
 0xdfd   : > { %v6644_v14 = vrot.slane %v6636_v2, %v9242_v32  ;;  %v6651_v18 = vrot.slane %v6637_v45, %v9242_v32  ;;  %v6524_v26 = vcombine.high %v6390_v51, %v8846_v40  ;;  %v6756_v53 = vcombine.low %v6628_v59, %v6635_v3 }
 0xdfe   : > { %v6496_v57 = vrot.slane %v6488_v21, %v9242_v32  ;;  %v6503_v42 = vrot.slane %v6489_v8, %v9242_v32  ;;  %v6504_v63 = vcombine.low %v6472_v48, %v6487_v60  ;;  %v6505_v50 = vcombine.high %v6472_v48, %v6487_v60 }
 0xdff   : > { %v8036_v44 = vcombine.high %v6628_v59, %v6635_v3  ;;  %v6531_v4 = vrot.slane %v6390_v51, %v9237_v24  ;;  %v6538_v62 = vrot.slane %v6524_v26, %v9237_v24  ;;  %v6539_v47 = vcombine.high %v6447_v12, %v8846_v40 }
 0xe00   : > { %v6512_v10 = vrot.slane %v6504_v63, %v9242_v32  ;;  %v6519_v19 = vrot.slane %v6505_v50, %v9242_v32  ;;  %v6656_v9 = vcombine.low %v6496_v57, %v6503_v42  ;;  %v8032_v43 = vcombine.high %v6496_v57, %v6503_v42 }
 0xe01   : > { %v6546_v31 = vrot.slane %v6447_v12, %v9237_v24  ;;  %v6772_v34 = vcombine.low %v6644_v14, %v6651_v18  ;;  %v8037_v33 = vcombine.high %v6644_v14, %v6651_v18  ;;  %v6553_v56 = vrot.slane %v6539_v47, %v9237_v24  ;;  %v8714_v47 = vld [vmem:[#allocation5] sm:$0xff] }
 0xe02   : > { %v6672_v13 = vcombine.low %v6512_v10, %v6519_v19  ;;  %v8033_v36 = vcombine.high %v6512_v10, %v6519_v19  ;;  %v6663_v37 = vrot.slane %v6656_v9, %v9237_v24  ;;  %v6671_v41 = vrot.slane %v8032_v43, %v9237_v24  ;;  %v8323_v19 = vpop.f32.mrf.mxu0 }
 0xe03   : > { %v6554_v5 = vcombine.low %v6531_v4, %v6546_v31  ;;  %v6555_v61 = vcombine.high %v6531_v4, %v6546_v31  ;;  %v6763_v28 = vrot.slane %v6756_v53, %v9237_v24  ;;  %v6570_v15 = vcombine.low %v6538_v62, %v6553_v56  ;;  %v10538_v53 = vld [vmem:[%s9014_s17] sm:$0x3f] }
 0xe04   : > { %v6679_v7 = vrot.slane %v6672_v13, %v9237_v24  ;;  %v6687_v35 = vrot.slane %v8033_v36, %v9237_v24  ;;  %v6571_v54 = vcombine.high %v6538_v62, %v6553_v56  ;;  %v6771_v25 = vrot.slane %v8036_v44, %v9237_v24  ;;  %v6899_v9 = vpop.f32.mrf.mxu0 }
 0xe05   : > { %v6562_v40 = vrot.slane %v6554_v5, %v9242_v32  ;;  %v6569_v0 = vrot.slane %v6555_v61, %v9242_v32  ;;  %v6779_v46 = vrot.slane %v6772_v34, %v9237_v24  ;;  %v6787_v30 = vrot.slane %v8037_v33, %v9237_v24  ;;  %v8715_v33 = vld [vmem:[#allocation5 + $0x10] sm:$0xff] }
 0xe06   : > { %v6688_v17 = vcombine.low %v6663_v37, %v6671_v41  ;;  %v6578_v29 = vrot.slane %v6570_v15, %v9242_v32  ;;  %v6585_v38 = vrot.slane %v6571_v54, %v9242_v32  ;;  %v6696_v22 = vcombine.low %v6679_v7, %v6687_v35  ;;  %v8324_v43 = vpop.f32.mrf.mxu0 }
 0xe07   : > { %v6706_v23 = vcombine.low %v6562_v40, %v6569_v0  ;;  %v8034_v16 = vcombine.high %v6562_v40, %v6569_v0  ;;  %v6788_v1 = vcombine.low %v6763_v28, %v6771_v25  ;;  %v6796_v48 = vcombine.low %v6779_v46, %v6787_v30  ;;  %v8716_v28 = vld [vmem:[#allocation5 + $0x18] sm:$0xff]  ;;  %v8717_v0 = vld [vmem:[#allocation5 + $0x8] sm:$0xff] }
 0xe08   : > { %v6722_v6 = vcombine.low %v6578_v29, %v6585_v38  ;;  %v8035_v11 = vcombine.high %v6578_v29, %v6585_v38  ;;  %v10500_v2 = vrot.slane %v6688_v17, %v9242_v32  ;;  %v10503_v45 = vrot.slane %v6696_v22, %v9242_v32  ;;  %v6902_v12 = vpop.f32.mrf.mxu0  ;;  %v8718_v46 = vld [vmem:[#allocation5 + $0x28] sm:$0xff]  ;;  %v8719_v38 = vld [vmem:[#allocation5 + $0x20] sm:$0xff]  ;;  %v8720_v22 = vld [vmem:[#allocation5 + $0x38] sm:$0xff] }
 0xe09   : > { %v6713_v27 = vrot.slane %v6706_v23, %v9237_v24  ;;  %v6721_v52 = vrot.slane %v8034_v16, %v9237_v24  ;;  %v10510_v3 = vrot.slane %v6796_v48, %v9242_v32  ;;  %v10516_v63 = vrot.slane %v6788_v1, %v9242_v32 }
 0xe0a   : > { %v6729_v60 = vrot.slane %v6722_v6, %v9237_v24  ;;  %v6737_v21 = vrot.slane %v8035_v11, %v9237_v24  ;;  %v6705_v59 = vcombine.high %v10500_v2, %v10503_v45  ;;  %v6704_v51 = vcombine.low %v10500_v2, %v10503_v45  ;;  %v8327_v44 = vpop.f32.mrf.mxu0  ;;  %v8721_v6 = vld [vmem:[#allocation5 + $0x30] sm:$0xff] }
 0xe0b   : > { %v6738_v8 = vcombine.low %v6713_v27, %v6721_v52  ;;  %v6804_v14 = vcombine.low %v10516_v63, %v10510_v3  ;;  %v6805_v18 = vcombine.high %v10516_v63, %v10510_v3  ;;  %v6833_v26 = vsub.s32 0, %v9234_v20 }
 0xe0c   : > { %v6746_v57 = vcombine.low %v6729_v60, %v6737_v21  ;;  %v8521_v42 = vpack.i.bf16 %v6705_v59, %v5316_v55  ;;  %v6915_v4 = vpop.f32.mrf.mxu0 }
 0xe0d   : > { %v10519_v50 = vrot.slane %v6738_v8, %v9242_v32  ;;  %v10541_v13 = vrot.slane %v10538_v53, %v6833_v26 }
 0xe0e   : > { %v10522_v24 = vrot.slane %v6746_v57, %v9242_v32  ;;  %8522 = vrot.lane.b32.xlu0 %v8521_v42, %s8847_s30  ;;  %v8328_v34 = vpop.f32.mrf.mxu0 }
 0xe0f   : > { %v6900_v36 = vadd.f32 %v6899_v9, %v10541_v13  ;;  %v6908_v62 = vadd.f32 %v8323_v19, %v10541_v13  ;;  %v6911_v41 = vadd.f32 %v8324_v43, %v10541_v13  ;;  %v6903_v61 = vadd.f32 %v6902_v12, %v10541_v13 }
 0xe10   : > { %v6755_v55 = vcombine.high %v10519_v50, %v10522_v24  ;;  %v6754_v10 = vcombine.low %v10519_v50, %v10522_v24  ;;  %v6918_v5 = vpop.f32.mrf.mxu0  ;;  %v6916_v54 = vadd.f32 %v6915_v4, %v10541_v13  ;;  %v6927_v25 = vadd.f32 %v8328_v34, %v10541_v13 }
 0xe11   : > { %v10545_v31 = vadd.f32 %v8714_v47, %v6900_v36  ;;  %v10547_v37 = vadd.f32 %v8715_v33, %v6908_v62  ;;  %v10553_v7 = vadd.f32 %v8716_v28, %v6911_v41  ;;  %v6919_v35 = vadd.f32 %v6918_v5, %v10541_v13  ;;  %v8723_v47 = vld [vmem:[#allocation5 + $0x50] sm:$0xff]  ;;  %v8724_v5 = vld [vmem:[#allocation5 + $0x48] sm:$0xff] }
 0xe12   : > { %v8526_v32 = vpack.i.bf16 %v6805_v18, %v6755_v55  ;;  %v10558_v15 = vadd.f32 %v8717_v0, %v6903_v61  ;;  %v6924_v29 = vadd.f32 %v8327_v44, %v10541_v13  ;;  %v10567_v23 = vadd.f32 %v8719_v38, %v6916_v54  ;;  %v8722_v44 = vld [vmem:[#allocation5 + $0x40] sm:$0xff] }
 0xe13   : > { %v6958_v56 = vsel %vm762_vm1, %v10545_v31, 0.0  ;;  %v6964_v40 = vsel %vm762_vm1, %v10547_v37, 0.0  ;;  %v10562_v30 = vadd.f32 %v8718_v46, %v6919_v35  ;;  %v6967_v17 = vsel %vm762_vm1, %v10553_v7, 0.0 }
 0xe14   : > { %8527 = vrot.lane.b32.xlu1 %v8526_v32, %s8847_s30  ;;  %v6961_v16 = vsel %vm762_vm1, %v10558_v15, 0.0  ;;  %v10571_v27 = vadd.f32 %v8720_v22, %v6927_v25  ;;  %v10575_v11 = vadd.f32 %v8721_v6, %v6924_v29  ;;  %v6970_v1 = vsel %vm762_vm1, %v10567_v23, 0.0 }
 0xe15   : > { %v6973_v52 = vsel %vm762_vm1, %v10562_v30, 0.0 }
 0xe16   : > { %v6979_v2 = vsel %vm762_vm1, %v10571_v27, 0.0  ;;  %v6976_v45 = vsel %vm762_vm1, %v10575_v11, 0.0 }
 0xe2d   : > { %6959 = vadd.xlane.f32.xlu0 %v6958_v56 }
 0xe31   : > { %6965 = vadd.xlane.f32.xlu0 %v6964_v40 }
 0xe35   : > { %6968 = vadd.xlane.f32.xlu0 %v6967_v17 }
 0xe38   : > { %6962 = vadd.xlane.f32.xlu1 %v6961_v16 }
 0xe39   : > { %6974 = vadd.xlane.f32.xlu0 %v6973_v52 }
 0xe3c   : > { %6971 = vadd.xlane.f32.xlu1 %v6970_v1 }
 0xe3d   : > { %6980 = vadd.xlane.f32.xlu0 %v6979_v2 }
 0xe40   : > { %6977 = vadd.xlane.f32.xlu1 %v6976_v45 }
 0xe80   : > { %v8523_v48 = vpop.permute.xlu0 %8522 }
 0xe81   : > { %v8525_v60 = vunpack.i.h.bf16 %v8523_v48  ;;  %v8524_v21 = vunpack.i.l.bf16 %v8523_v48 }
 0xe83   : > { %v6818_v8 = vsel %vm1684_vm2, %v6704_v51, %v8525_v60  ;;  %v5331_v59 = vsel %vm1684_vm2, %v5315_v49, %v8524_v21 }
 0xe84   : > { %v6825_v57 = vpack.c.bf16 %v6818_v8, %v5331_v59 }
 0xe86   : > { %v8528_v42 = vpop.permute.xlu1 %8527  ;;  %8329 = vmatprep.mubr.msk.bf16.mxu0 %vm762_vm1, %v6825_v57 }
 0xe87   : > { %v8530_v55 = vunpack.i.h.bf16 %v8528_v42  ;;  %v8529_v18 = vunpack.i.l.bf16 %v8528_v42 }
 0xe89   : > { %v6820_v19 = vsel %vm1684_vm2, %v6804_v14, %v8530_v55  ;;  %v6819_v51 = vsel %vm1684_vm2, %v6754_v10, %v8529_v18 }
 0xe8a   : > { %v6826_v32 = vpack.c.bf16 %v6820_v19, %v6819_v51  ;;  %v8535_v51 = vld [vmem:[%s11038_s22 + $0x8] sm:$0xff]  }
 0xe8b   : > { %8333 = vmatprep.subr.bf16.mxu1 %v8535_v51 }
 0xe8c   : > { %8330 = vmatmul.mubr.msk.bf16.gmra.mxu0 %vm762_vm1, %v6826_v32  ;;  %v8536_v32 = vld [vmem:[%s11039_s21] sm:$0xff]   ;;  %8334 = vmatpush3.bf16.msra.mxu1 %v8535_v51 }
 0xe8d   : > { %8335 = vmatprep.subr.bf16.mxu1 %v8536_v32 }
 0xe90   : > { %8336 = vmatpush3.bf16.msra.mxu1 %v8536_v32 }
 0xeb6   : > { %v6960_v58 = vpop.xlane.xlu0 %6959 }
 0xeb7   : > { %v6995_v43 = vmul.f32 0.03125, %v6960_v58 }
 0xeb9   : > { %v10603_v50 = vsub.f32 %v10545_v31, %v6995_v43 }
 0xeba   : > { %v6966_v39 = vpop.xlane.xlu0 %6965 }
 0xebb   : > { %v6997_v24 = vmul.f32 0.03125, %v6966_v39  ;;  %v7019_v0 = vmul.f32 %v10603_v50, %v10603_v50 }
 0xebd   : > { %v10614_v31 = vsub.f32 %v10547_v37, %v6997_v24  ;;  %v7031_v38 = vsel %vm762_vm1, %v7019_v0, 0.0 }
 0xebe   : > { %v6969_v63 = vpop.xlane.xlu0 %6968 }
 0xebf   : > { %v6998_v28 = vmul.f32 0.03125, %v6969_v63  ;;  %v7021_v16 = vmul.f32 %v10614_v31, %v10614_v31 }
 0xec1   : > { %v6963_v49 = vpop.xlane.xlu1 %6962  ;;  %v7037_v45 = vsel %vm762_vm1, %v7021_v16, 0.0 }
 0xec2   : > { %v6996_v10 = vmul.f32 0.03125, %v6963_v49  ;;  %v6975_v40 = vpop.xlane.xlu0 %6974 }
 0xec3   : > { %v7000_v29 = vmul.f32 0.03125, %v6975_v40 }
 0xec4   : > { %v10617_v35 = vsub.f32 %v10558_v15, %v6996_v10  ;;  %v10628_v15 = vsub.f32 %v10553_v7, %v6998_v28 }
 0xec5   : > { %v6972_v4 = vpop.xlane.xlu1 %6971  ;;  %v10641_v7 = vsub.f32 %v10562_v30, %v7000_v29 }
 0xec6   : > { %v6999_v54 = vmul.f32 0.03125, %v6972_v4  ;;  %v7020_v1 = vmul.f32 %v10617_v35, %v10617_v35  ;;  %v6981_v2 = vpop.xlane.xlu0 %6980  ;;  %v7022_v48 = vmul.f32 %v10628_v15, %v10628_v15 }
 0xec7   : > { %v7024_v42 = vmul.f32 %v10641_v7, %v10641_v7 }
 0xec8   : > { %v10634_v22 = vsub.f32 %v10567_v23, %v6999_v54  ;;  %v7002_v23 = vmul.f32 0.03125, %v6981_v2  ;;  %v7034_v21 = vsel %vm762_vm1, %v7020_v1, 0.0  ;;  %v7040_v30 = vsel %vm762_vm1, %v7022_v48, 0.0 }
 0xec9   : > { %v6978_v37 = vpop.xlane.xlu1 %6977  ;;  %v7046_v18 = vsel %vm762_vm1, %v7024_v42, 0.0 }
 0xeca   : > { %v7001_v52 = vmul.f32 0.03125, %v6978_v37  ;;  %v7023_v8 = vmul.f32 %v10634_v22, %v10634_v22  ;;  %v10654_v59 = vsub.f32 %v10571_v27, %v7002_v23  ;;  %v7117_v23 = vsub.s32 1, %v9234_v20 }
 0xecc   : > { %v10647_v60 = vsub.f32 %v10575_v11, %v7001_v52  ;;  %v7043_v57 = vsel %vm762_vm1, %v7023_v8, 0.0  ;;  %v7026_v19 = vmul.f32 %v10654_v59, %v10654_v59  ;;  %v10697_v42 = vrot.slane %v10538_v53, %v7117_v23 }
 0xece   : > { %v7025_v11 = vmul.f32 %v10647_v60, %v10647_v60  ;;  %v7052_v27 = vsel %vm762_vm1, %v7026_v19, 0.0 }
 0xed0   : > { %v7049_v55 = vsel %vm762_vm1, %v7025_v11, 0.0 }
 0xf4c   : > { %v8331_v9 = vpop.f32.mrf.mxu0 }
 0xf4d   : > { %v6940_v26 = vadd.f32 %v8331_v9, %v10541_v13 }
 0xf4e   : > { %v6931_v12 = vpop.f32.mrf.mxu0 }
 0xf4f   : > { %v6932_v3 = vadd.f32 %v6931_v12, %v10541_v13  ;;  %v10605_v34 = vadd.f32 %v8723_v47, %v6940_v26 }
 0xf50   : > { %v8332_v14 = vpop.f32.mrf.mxu0 }
 0xf51   : > { %v10600_v36 = vadd.f32 %v8722_v44, %v6932_v3  ;;  %v6943_v33 = vadd.f32 %v8332_v14, %v10541_v13  ;;  %v6988_v46 = vsel %vm762_vm1, %v10605_v34, 0.0 }
 0xf52   : > { %v6934_v62 = vpop.f32.mrf.mxu0 }
 0xf53   : > { %v6935_v41 = vadd.f32 %v6934_v62, %v10541_v13  ;;  %v6982_v56 = vsel %vm762_vm1, %v10600_v36, 0.0  ;;  %v8725_v13 = vld [vmem:[#allocation5 + $0x58] sm:$0xff] }
 0xf54   : > { %6983 = vadd.xlane.f32.xlu1 %v6982_v56  ;;  %v10621_v25 = vadd.f32 %v8725_v13, %v6943_v33 }
 0xf55   : > { %v10611_v61 = vadd.f32 %v8724_v5, %v6935_v41 }
 0xf56   : > { %v6991_v6 = vsel %vm762_vm1, %v10621_v25, 0.0 }
 0xf57   : > { %v6985_v17 = vsel %vm762_vm1, %v10611_v61, 0.0 }
 0xf58   : > { %6989 = vadd.xlane.f32.xlu1 %v6988_v46  ;;  %6986 = vadd.xlane.f32.xlu0 %v6985_v17 }
 0xf5c   : > { %6992 = vadd.xlane.f32.xlu0 %v6991_v6  ;;  %7032 = vadd.xlane.f32.xlu1 %v7031_v38 }
 0xf60   : > { %7035 = vadd.xlane.f32.xlu0 %v7034_v21  ;;  %7038 = vadd.xlane.f32.xlu1 %v7037_v45 }
 0xf64   : > { %7044 = vadd.xlane.f32.xlu1 %v7043_v57  ;;  %7041 = vadd.xlane.f32.xlu0 %v7040_v30 }
 0xf68   : > { %7050 = vadd.xlane.f32.xlu1 %v7049_v55  ;;  %7047 = vadd.xlane.f32.xlu0 %v7046_v18  ;;  %v7133_v55 = vsub.s32 2, %v9234_v20 }
 0xf6a   : > { %v10702_v51 = vrot.slane %v10538_v53, %v7133_v55 }
 0xf6c   : > { %7053 = vadd.xlane.f32.xlu0 %v7052_v27 }
 0xfdd   : > { %v6984_v58 = vpop.xlane.xlu1 %6983 }
 0xfde   : > { %v7003_v39 = vmul.f32 0.03125, %v6984_v58 }
 0xfe0   : > { %v10671_v49 = vsub.f32 %v10600_v36, %v7003_v39 }
 0xfe1   : > { %v6990_v9 = vpop.xlane.xlu1 %6989  ;;  %v6987_v43 = vpop.xlane.xlu0 %6986 }
 0xfe2   : > { %v7005_v12 = vmul.f32 0.03125, %v6990_v9  ;;  %v7004_v26 = vmul.f32 0.03125, %v6987_v43  ;;  %v7027_v3 = vmul.f32 %v10671_v49, %v10671_v49 }
 0xfe4   : > { %v10676_v63 = vsub.f32 %v10605_v34, %v7005_v12  ;;  %v10679_v14 = vsub.f32 %v10611_v61, %v7004_v26  ;;  %v7055_v44 = vsel %vm762_vm1, %v7027_v3, 0.0 }
 0xfe5   : > { %v7033_v24 = vpop.xlane.xlu1 %7032  ;;  %7056 = vadd.xlane.f32.xlu1 %v7055_v44  ;;  %v6993_v10 = vpop.xlane.xlu0 %6992 }
 0xfe6   : > { %v7067_v36 = vmul.f32 0.03125, %v7033_v24  ;;  %v7006_v4 = vmul.f32 0.03125, %v6993_v10  ;;  %v7029_v62 = vmul.f32 %v10676_v63, %v10676_v63  ;;  %v7028_v47 = vmul.f32 %v10679_v14, %v10679_v14 }
 0xfe8   : > { %v7079_v33 = vadd.f32 1e-05, %v7067_v36  ;;  %v10687_v34 = vsub.f32 %v10621_v25, %v7006_v4  ;;  %v7061_v41 = vsel %vm762_vm1, %v7029_v62, 0.0  ;;  %v7058_v56 = vsel %vm762_vm1, %v7028_v47, 0.0 }
 0xfe9   : > { %7062 = vadd.xlane.f32.xlu1 %v7061_v41  ;;  %v7039_v5 = vpop.xlane.xlu1 %7038  ;;  %7059 = vadd.xlane.f32.xlu0 %v7058_v56  ;;  %v7036_v61 = vpop.xlane.xlu0 %7035 }
 0xfea   : > { %8641 = vrsqrt.f32 %v7079_v33  ;;  %v7069_v28 = vmul.f32 0.03125, %v7039_v5  ;;  %v7068_v40 = vmul.f32 0.03125, %v7036_v61  ;;  %v7030_v0 = vmul.f32 %v10687_v34, %v10687_v34 }
 0xfec   : > { %v7081_v54 = vadd.f32 1e-05, %v7069_v28  ;;  %v7080_v13 = vadd.f32 1e-05, %v7068_v40  ;;  %v7064_v46 = vsel %vm762_vm1, %v7030_v0, 0.0 }
 0xfed   : > { %v7045_v25 = vpop.xlane.xlu1 %7044  ;;  %7065 = vadd.xlane.f32.xlu0 %v7064_v46  ;;  %v7042_v17 = vpop.xlane.xlu0 %7041  ;;  %v8539_v46 = vld [vmem:[%s9008_s28 + $0x28] sm:$0xff]  }
 0xfee   : > { %8643 = vrsqrt.f32 %v7081_v54  ;;  %v7071_v37 = vmul.f32 0.03125, %v7045_v25  ;;  %v7070_v29 = vmul.f32 0.03125, %v7042_v17  ;;  %v8537_v54 = vld [vmem:[%s9008_s28 + $0x38] sm:$0xff]   ;;  %v8540_v25 = vld [vmem:[%s9008_s28 + $0x20] sm:$0xff]  }
 0xfef   : > { %8645 = vrsqrt.f32 %v7080_v13  ;;  %8349 = vmatprep.subr.bf16.mxu0 %v8537_v54  ;;  %v8538_v13 = vld [vmem:[%s9008_s28 + $0x30] sm:$0xff]   ;;  %v8541_v17 = vld [vmem:[%s9008_s28 + $0x18] sm:$0xff]  }
 0xff0   : > { %v7083_v38 = vadd.f32 1e-05, %v7071_v37  ;;  %v7082_v16 = vadd.f32 1e-05, %v7070_v29  ;;  %8350 = vmatpush3.bf16.msra.mxu0 %v8537_v54  ;;  %v8542_v37 = vld [vmem:[%s9008_s28 + $0x10] sm:$0xff]   ;;  %v8543_v29 = vld [vmem:[%s9008_s28 + $0x8] sm:$0xff]  }
 0xff1   : > { %v7051_v52 = vpop.xlane.xlu1 %7050  ;;  %v7048_v6 = vpop.xlane.xlu0 %7047  ;;  %8351 = vmatprep.subr.bf16.mxu0 %v8538_v13 }
 0xff2   : > { %8647 = vrsqrt.f32 %v7083_v38  ;;  %v7073_v1 = vmul.f32 0.03125, %v7051_v52  ;;  %v7072_v2 = vmul.f32 0.03125, %v7048_v6  ;;  %v8544_v38 = vld [vmem:[%s9008_s28] sm:$0xff]  }
 0xff3   : > { %8649 = vrsqrt.f32 %v7082_v16 }
 0xff4   : > { %v7085_v45 = vadd.f32 1e-05, %v7073_v1  ;;  %v7084_v48 = vadd.f32 1e-05, %v7072_v2  ;;  %8352 = vmatpush3.bf16.msra.mxu0 %v8538_v13 }
 0xff5   : > { %v7054_v21 = vpop.xlane.xlu0 %7053  ;;  %8353 = vmatprep.subr.bf16.mxu0 %v8539_v46 }
 0xff6   : > { %8651 = vrsqrt.f32 %v7085_v45  ;;  %v7074_v8 = vmul.f32 0.03125, %v7054_v21 }
 0xff7   : > { %v8642_v30 = vpop.eup %8641  ;;  %8653 = vrsqrt.f32 %v7084_v48 }
 0xff8   : > { %v7086_v57 = vadd.f32 1e-05, %v7074_v8  ;;  %v7103_v11 = vmul.f32 %v8642_v30, %v10603_v50  ;;  %8354 = vmatpush3.bf16.msra.mxu0 %v8539_v46 }
 0xff9   : > { %8355 = vmatprep.subr.bf16.mxu0 %v8540_v25 }
 0xffa   : > { %8655 = vrsqrt.f32 %v7086_v57  ;;  %v7119_v27 = vmul.f32 %v10697_v42, %v7103_v11 }
 0xffb   : > { %v8644_v18 = vpop.eup %8643 }
 0xffc   : > { %v8646_v19 = vpop.eup %8645  ;;  %v7105_v32 = vmul.f32 %v8644_v18, %v10614_v31  ;;  %v10708_v43 = vadd.f32 %v10702_v51, %v7119_v27  ;;  %8356 = vmatpush3.bf16.msra.mxu0 %v8540_v25 }
 0xffd   : > { %v7104_v58 = vmul.f32 %v8646_v19, %v10617_v35  ;;  %8357 = vmatprep.subr.bf16.mxu0 %v8541_v17 }
 0xffe   : > { %v7121_v3 = vmul.f32 %v10697_v42, %v7105_v32 }
 0xfff   : > { %v8648_v39 = vpop.eup %8647  ;;  %v7120_v50 = vmul.f32 %v10697_v42, %v7104_v58 }
0x1000   : > { %v8650_v9 = vpop.eup %8649  ;;  %v7107_v44 = vmul.f32 %v8648_v39, %v10634_v22  ;;  %8358 = vmatpush3.bf16.msra.mxu0 %v8541_v17 }
0x1001   : > { %v7106_v12 = vmul.f32 %v8650_v9, %v10628_v15  ;;  %v10712_v26 = vadd.f32 %v10702_v51, %v7120_v50  ;;  %v10722_v15 = vadd.f32 %v10702_v51, %v7121_v3  ;;  %8359 = vmatprep.subr.bf16.mxu0 %v8542_v37 }
0x1002   : > { %v7123_v22 = vmul.f32 %v10697_v42, %v7107_v44 }
0x1003   : > { %v8652_v24 = vpop.eup %8651  ;;  %v7147_v31 = vpack.c.bf16 %v10712_v26, %v10708_v43  ;;  %v7122_v35 = vmul.f32 %v10697_v42, %v7106_v12 }
0x1004   : > { %v8654_v10 = vpop.eup %8653  ;;  %v7109_v36 = vmul.f32 %v8652_v24, %v10647_v60  ;;  %v10736_v5 = vadd.f32 %v10702_v51, %v7123_v22  ;;  %8360 = vmatpush3.bf16.msra.mxu0 %v8542_v37 }
0x1005   : > { %8337 = vmatprep.mubr.msk.bf16.mxu1 %vm762_vm1, %v7147_v31  ;;  %v10725_v4 = vadd.f32 %v10702_v51, %v7122_v35  ;;  %v7108_v62 = vmul.f32 %v8654_v10, %v10641_v7  ;;  %8361 = vmatprep.subr.bf16.mxu0 %v8543_v29 }
0x1006   : > { %v7125_v56 = vmul.f32 %v10697_v42, %v7109_v36 }
0x1007   : > { %v8656_v47 = vpop.eup %8655  ;;  %v7148_v33 = vpack.c.bf16 %v10725_v4, %v10722_v15  ;;  %v7124_v41 = vmul.f32 %v10697_v42, %v7108_v62 }
0x1008   : > { %v7110_v60 = vmul.f32 %v8656_v47, %v10654_v59  ;;  %v10745_v40 = vadd.f32 %v10702_v51, %v7125_v56  ;;  %8362 = vmatpush3.bf16.msra.mxu0 %v8543_v29 }
0x1009   : > { %8338 = vmatmul.mubr.msk.bf16.vlgmr.msra.gmra.mxu1 %vm762_vm1, %v7148_v33  ;;  %v10739_v7 = vadd.f32 %v10702_v51, %v7124_v41  ;;  %8363 = vmatprep.subr.bf16.mxu0 %v8544_v38 }
0x100a   : > { %v7126_v61 = vmul.f32 %v10697_v42, %v7110_v60 }
0x100b   : > { %v7149_v28 = vpack.c.bf16 %v10739_v7, %v10736_v5 }
0x100c   : > { %v10748_v59 = vadd.f32 %v10702_v51, %v7126_v61  ;;  %8364 = vmatpush3.bf16.msra.mxu0 %v8544_v38 }
0x100d   : > { %8341 = vmatprep.mubr.msk.bf16.mxu1 %vm762_vm1, %v7149_v28 }
0x100e   : > { %v7150_v0 = vpack.c.bf16 %v10748_v59, %v10745_v40 }
0x1011   : > { %8342 = vmatmul.mubr.msk.bf16.gmra.mxu1 %vm762_vm1, %v7150_v0 }
0x106e   : > { %v7057_v16 = vpop.xlane.xlu1 %7056 }
0x106f   : > { %v7075_v52 = vmul.f32 0.03125, %v7057_v16 }
0x1071   : > { %v7087_v6 = vadd.f32 1e-05, %v7075_v52 }
0x1072   : > { %v7063_v1 = vpop.xlane.xlu1 %7062  ;;  %v7060_v2 = vpop.xlane.xlu0 %7059 }
0x1073   : > { %8657 = vrsqrt.f32 %v7087_v6  ;;  %v7077_v45 = vmul.f32 0.03125, %v7063_v1  ;;  %v7076_v48 = vmul.f32 0.03125, %v7060_v2 }
0x1075   : > { %v7089_v23 = vadd.f32 1e-05, %v7077_v45  ;;  %v7088_v21 = vadd.f32 1e-05, %v7076_v48 }
0x1076   : > { %v7066_v8 = vpop.xlane.xlu0 %7065 }
0x1077   : > { %8659 = vrsqrt.f32 %v7089_v23  ;;  %v7078_v30 = vmul.f32 0.03125, %v7066_v8 }
0x1078   : > { %8661 = vrsqrt.f32 %v7088_v21 }
0x1079   : > { %v7090_v57 = vadd.f32 1e-05, %v7078_v30 }
0x107b   : > { %8663 = vrsqrt.f32 %v7090_v57 }
0x1080   : > { %v8658_v11 = vpop.eup %8657 }
0x1081   : > { %v7111_v55 = vmul.f32 %v8658_v11, %v10671_v49 }
0x1083   : > { %v7127_v58 = vmul.f32 %v10697_v42, %v7111_v55 }
0x1084   : > { %v8660_v18 = vpop.eup %8659 }
0x1085   : > { %v8662_v19 = vpop.eup %8661  ;;  %v7113_v27 = vmul.f32 %v8660_v18, %v10676_v63  ;;  %v10770_v3 = vadd.f32 %v10702_v51, %v7127_v58 }
0x1086   : > { %v7112_v32 = vmul.f32 %v8662_v19, %v10679_v14 }
0x1087   : > { %v7129_v12 = vmul.f32 %v10697_v42, %v7113_v27 }
0x1088   : > { %v8664_v39 = vpop.eup %8663  ;;  %v7128_v50 = vmul.f32 %v10697_v42, %v7112_v32 }
0x1089   : > { %v7114_v9 = vmul.f32 %v8664_v39, %v10687_v34  ;;  %v10779_v44 = vadd.f32 %v10702_v51, %v7129_v12 }
0x108a   : > { %v10773_v49 = vadd.f32 %v10702_v51, %v7128_v50 }
0x108b   : > { %v7130_v63 = vmul.f32 %v10697_v42, %v7114_v9  ;;  %v10793_v42 = vld [vmem:[%s476_s25] ss:$0 sm:$0xff]  ;;  %s8848_s25 = smov [#allocation5]  }
0x108c   : > { %v7151_v14 = vpack.c.bf16 %v10773_v49, %v10770_v3  ;;  %s7713_s26 = sshll.u32 %s8848_s25, 4  ;;  %s7714_s26 = int_to_ptr.vmem [resolvable:$true] %s7713_s26 }
0x108d   : > { %v10782_v24 = vadd.f32 %v10702_v51, %v7130_v63  ;;  %s8755_s29 = scalar_lea.vmem %s7714_s26, 1536  ;;  %p8762_p13 = scmp.lt.s32.totalorder %s7714_s26, %s7714_s26 }
0x108e   : > { %8345 = vmatprep.mubr.msk.bf16.mxu1 %vm762_vm1, %v7151_v14  ;;  %p8756_p10 = scmp.ne.s32.totalorder %s7714_s26, %s8755_s29  ;;  %p8763_p0 = scmp.lt.s32.totalorder %s8755_s29, %s8755_s29 }
0x108f   : > { %v7152_v34 = vpack.c.bf16 %v10782_v24, %v10779_v44 }
0x1090   : > { %p8764_p1 = por %p8763_p0, %p8762_p13 }
0x1091   : > { %8346 = vmatmul.mubr.msk.bf16.gmra.mxu1 %vm762_vm1, %v7152_v34 }
0x10c9   : > { %v8339_v31 = vpop.f32.mrf.mxu1 }
0x10ca   : > { %v7237_v35 = vadd.f32 %v8339_v31, %v10793_v42 }
0x10cb   : > { %v7228_v10 = vpop.f32.mrf.mxu1 }
0x10cc   : > { %v7229_v51 = vadd.f32 %v10793_v42, %v7228_v10  ;;  %v7290_v36 = vmul.f32 0.70710677, %v7237_v35  ;;  %v7277_v11 = vmul.f32 0.5, %v7237_v35 }
0x10cd   : > { %v8340_v62 = vpop.f32.mrf.mxu1 }
0x10ce   : > { %v7288_v22 = vmul.f32 0.70710677, %v7229_v51  ;;  %v7240_v47 = vadd.f32 %v8340_v62, %v10793_v42  ;;  %v7275_v8 = vmul.f32 0.5, %v7229_v51 }
0x10cf   : > { %v7231_v33 = vpop.f32.mrf.mxu1 }
0x10d0   : > { %8665 = verf.f32 %v7288_v22  ;;  %v7291_v41 = vmul.f32 0.70710677, %v7240_v47  ;;  %v7232_v60 = vadd.f32 %v10793_v42, %v7231_v33  ;;  %v7278_v21 = vmul.f32 0.5, %v7240_v47 }
0x10d1   : > { %8667 = verf.f32 %v7290_v36  ;;  %v8343_v56 = vpop.f32.mrf.mxu1 }
0x10d2   : > { %8669 = verf.f32 %v7291_v41  ;;  %v7289_v61 = vmul.f32 0.70710677, %v7232_v60  ;;  %v7253_v28 = vadd.f32 %v8343_v56, %v10793_v42  ;;  %v7276_v30 = vmul.f32 0.5, %v7232_v60 }
0x10d3   : > { %v7244_v0 = vpop.f32.mrf.mxu1 }
0x10d4   : > { %8671 = verf.f32 %v7289_v61  ;;  %v7245_v54 = vadd.f32 %v10793_v42, %v7244_v0  ;;  %v7294_v13 = vmul.f32 0.70710677, %v7253_v28  ;;  %v7281_v35 = vmul.f32 0.5, %v7253_v28 }
0x10d5   : > { %v8344_v46 = vpop.f32.mrf.mxu1 }
0x10d6   : > { %v7292_v25 = vmul.f32 0.70710677, %v7245_v54  ;;  %v7256_v17 = vadd.f32 %v8344_v46, %v10793_v42  ;;  %v7279_v10 = vmul.f32 0.5, %v7245_v54 }
0x10d7   : > { %v7247_v37 = vpop.f32.mrf.mxu1 }
0x10d8   : > { %8673 = verf.f32 %v7292_v25  ;;  %v7295_v29 = vmul.f32 0.70710677, %v7256_v17  ;;  %v7248_v38 = vadd.f32 %v10793_v42, %v7247_v37  ;;  %v7282_v31 = vmul.f32 0.5, %v7256_v17 }
0x10d9   : > { %8675 = verf.f32 %v7294_v13 }
0x10da   : > { %8677 = verf.f32 %v7295_v29  ;;  %v7293_v16 = vmul.f32 0.70710677, %v7248_v38  ;;  %v7280_v51 = vmul.f32 0.5, %v7248_v38 }
0x10dc   : > { %8679 = verf.f32 %v7293_v16 }
0x10dd   : > { %v8666_v52 = vpop.eup %8665 }
0x10de   : > { %v8668_v6 = vpop.eup %8667  ;;  %v7312_v2 = vadd.f32 1.0, %v8666_v52 }
0x10df   : > { %v8670_v1 = vpop.eup %8669  ;;  %v7314_v23 = vadd.f32 1.0, %v8668_v6 }
0x10e0   : > { %v7315_v45 = vadd.f32 1.0, %v8670_v1  ;;  %v7324_v18 = vmul.f32 %v7312_v2, %v7275_v8 }
0x10e1   : > { %v8672_v48 = vpop.eup %8671  ;;  %v7326_v32 = vmul.f32 %v7314_v23, %v7277_v11 }
0x10e2   : > { %v7313_v57 = vadd.f32 1.0, %v8672_v48  ;;  %v7327_v55 = vmul.f32 %v7315_v45, %v7278_v21 }
0x10e4   : > { %v7325_v19 = vmul.f32 %v7313_v57, %v7276_v30  ;;  %v7337_v9 = vpack.c.bf16 %v7327_v55, %v7326_v32  ;;  %v7360_v32 = vsub.s32 3, %v9234_v20 }
0x10e5   : > { %v8674_v27 = vpop.eup %8673 }
0x10e6   : > { %v8676_v58 = vpop.eup %8675  ;;  %v7336_v39 = vpack.c.bf16 %v7325_v19, %v7324_v18  ;;  %v7316_v12 = vadd.f32 1.0, %v8674_v27 }
0x10e7   : > { %v8678_v50 = vpop.eup %8677  ;;  %v7318_v34 = vadd.f32 1.0, %v8676_v58  ;;  %v7361_v58 = vrot.slane %v10538_v53, %v7360_v32 }
0x10e8   : > { %v7319_v63 = vadd.f32 1.0, %v8678_v50  ;;  %8365 = vmatprep.mubr.bf16.mxu0 %v7336_v39  ;;  %v7328_v22 = vmul.f32 %v7316_v12, %v7279_v10 }
0x10e9   : > { %v8680_v14 = vpop.eup %8679  ;;  %8366 = vmatmul.mubr.bf16.vlgmr.msra.gmra.mxu0 %v7337_v9  ;;  %v7330_v33 = vmul.f32 %v7318_v34, %v7281_v35 }
0x10ea   : > { %v7317_v36 = vadd.f32 1.0, %v8680_v14  ;;  %v7331_v62 = vmul.f32 %v7319_v63, %v7282_v31 }
0x10ec   : > { %v7329_v47 = vmul.f32 %v7317_v36, %v7280_v51  ;;  %v7339_v60 = vpack.c.bf16 %v7331_v62, %v7330_v33 }
0x10ee   : > { %v7338_v41 = vpack.c.bf16 %v7329_v47, %v7328_v22 }
0x10f0   : > { %8369 = vmatprep.mubr.bf16.mxu0 %v7338_v41 }
0x10f1   : > { %8370 = vmatmul.mubr.bf16.gmra.mxu0 %v7339_v60 }
0x1151   : > { %v8347_v56 = vpop.f32.mrf.mxu1 }
0x1152   : > { %v7269_v61 = vadd.f32 %v8347_v56, %v10793_v42 }
0x1153   : > { %v7260_v0 = vpop.f32.mrf.mxu1 }
0x1154   : > { %v7261_v13 = vadd.f32 %v10793_v42, %v7260_v0  ;;  %v7298_v46 = vmul.f32 0.70710677, %v7269_v61  ;;  %v7285_v57 = vmul.f32 0.5, %v7269_v61 }
0x1155   : > { %v8348_v25 = vpop.f32.mrf.mxu1 }
0x1156   : > { %v7296_v54 = vmul.f32 0.70710677, %v7261_v13  ;;  %v7272_v17 = vadd.f32 %v8348_v25, %v10793_v42  ;;  %v7283_v21 = vmul.f32 0.5, %v7261_v13 }
0x1157   : > { %v7263_v28 = vpop.f32.mrf.mxu1 }
0x1158   : > { %8681 = verf.f32 %v7296_v54  ;;  %v7299_v37 = vmul.f32 0.70710677, %v7272_v17  ;;  %v7264_v29 = vadd.f32 %v10793_v42, %v7263_v28  ;;  %v7286_v23 = vmul.f32 0.5, %v7272_v17 }
0x1159   : > { %8683 = verf.f32 %v7298_v46 }
0x115a   : > { %8685 = verf.f32 %v7299_v37  ;;  %v7297_v38 = vmul.f32 0.70710677, %v7264_v29  ;;  %v7284_v8 = vmul.f32 0.5, %v7264_v29 }
0x115c   : > { %8687 = verf.f32 %v7297_v38 }
0x1165   : > { %v8682_v16 = vpop.eup %8681 }
0x1166   : > { %v8684_v52 = vpop.eup %8683  ;;  %v7320_v1 = vadd.f32 1.0, %v8682_v16 }
0x1167   : > { %v8686_v6 = vpop.eup %8685  ;;  %v7322_v48 = vadd.f32 1.0, %v8684_v52 }
0x1168   : > { %v7323_v2 = vadd.f32 1.0, %v8686_v6  ;;  %v7332_v55 = vmul.f32 %v7320_v1, %v7283_v21 }
0x1169   : > { %v8688_v45 = vpop.eup %8687  ;;  %v7334_v42 = vmul.f32 %v7322_v48, %v7285_v57 }
0x116a   : > { %v7321_v30 = vadd.f32 1.0, %v8688_v45  ;;  %v7335_v11 = vmul.f32 %v7323_v2, %v7286_v23 }
0x116c   : > { %v7333_v18 = vmul.f32 %v7321_v30, %v7284_v8  ;;  %v7341_v27 = vpack.c.bf16 %v7335_v11, %v7334_v42 }
0x116e   : > { %v7340_v19 = vpack.c.bf16 %v7333_v18, %v7332_v55 }
0x1170   : > { %8373 = vmatprep.mubr.bf16.mxu0 %v7340_v19 }
0x1171   : > { %8374 = vmatmul.mubr.bf16.gmra.mxu0 %v7341_v27 }
0x11a9   : > { %v8367_v39 = vpop.f32.mrf.mxu0 }
0x11aa   : > { %v7453_v9 = vadd.f32 %v8367_v39, %v7361_v58 }
0x11ab   : > { %v7444_v50 = vpop.f32.mrf.mxu0 }
0x11ac   : > { %v7445_v12 = vadd.f32 %v7444_v50, %v7361_v58  ;;  %v7493_v10 = vadd.f32 %v7453_v9, %v10722_v15 }
0x11ad   : > { %v8368_v63 = vpop.f32.mrf.mxu0 }
0x11ae   : > { %v7491_v14 = vadd.f32 %v7445_v12, %v10708_v43  ;;  %v7456_v34 = vadd.f32 %v8368_v63, %v7361_v58  ;;  %v7509_v15 = vsel %vm762_vm1, %v7493_v10, 0.0 }
0x11af   : > { %v7447_v31 = vpop.f32.mrf.mxu0 }
0x11b0   : > { %v7448_v51 = vadd.f32 %v7447_v31, %v7361_v58  ;;  %v7503_v36 = vsel %vm762_vm1, %v7491_v14, 0.0  ;;  %v10814_v53 = vadd.f32 %v7456_v34, %v10725_v4 }
0x11b1   : > { %7504 = vadd.xlane.f32.xlu1 %v7503_v36  ;;  %v8371_v35 = vpop.f32.mrf.mxu0 }
0x11b2   : > { %v7492_v62 = vadd.f32 %v7448_v51, %v10712_v26  ;;  %v7469_v22 = vadd.f32 %v8371_v35, %v7361_v58  ;;  %v7512_v26 = vsel %vm762_vm1, %v10814_v53, 0.0 }
0x11b3   : > { %v7460_v47 = vpop.f32.mrf.mxu0 }
0x11b4   : > { %v10817_v33 = vadd.f32 %v7469_v22, %v10745_v40  ;;  %v7461_v43 = vadd.f32 %v7460_v47, %v7361_v58  ;;  %v7506_v41 = vsel %vm762_vm1, %v7492_v62, 0.0 }
0x11b5   : > { %7507 = vadd.xlane.f32.xlu0 %v7506_v41  ;;  %7510 = vadd.xlane.f32.xlu1 %v7509_v15  ;;  %v8372_v60 = vpop.f32.mrf.mxu0 }
0x11b6   : > { %v7472_v56 = vadd.f32 %v8372_v60, %v7361_v58  ;;  %v7495_v4 = vadd.f32 %v7461_v43, %v10736_v5  ;;  %v7521_v13 = vsel %vm762_vm1, %v10817_v33, 0.0 }
0x11b7   : > { %v7463_v61 = vpop.f32.mrf.mxu0 }
0x11b8   : > { %v10825_v0 = vadd.f32 %v7472_v56, %v10748_v59  ;;  %v7464_v40 = vadd.f32 %v7463_v61, %v7361_v58  ;;  %v7515_v54 = vsel %vm762_vm1, %v7495_v4, 0.0 }
0x11b9   : > { %7513 = vadd.xlane.f32.xlu0 %v7512_v26  ;;  %7522 = vadd.xlane.f32.xlu1 %v7521_v13 }
0x11ba   : > { %v10830_v46 = vadd.f32 %v7464_v40, %v10739_v7  ;;  %v7524_v25 = vsel %vm762_vm1, %v10825_v0, 0.0 }
0x11bc   : > { %v7518_v5 = vsel %vm762_vm1, %v10830_v46, 0.0 }
0x11bd   : > { %7525 = vadd.xlane.f32.xlu0 %v7524_v25  ;;  %7516 = vadd.xlane.f32.xlu1 %v7515_v54 }
0x11c1   : > { %7519 = vadd.xlane.f32.xlu0 %v7518_v5 }
0x1231   : > { %v8375_v59 = vpop.f32.mrf.mxu0 }
0x1232   : > { %v7485_v28 = vadd.f32 %v8375_v59, %v7361_v58 }
0x1233   : > { %v7476_v17 = vpop.f32.mrf.mxu0 }
0x1234   : > { %v7477_v37 = vadd.f32 %v7476_v17, %v7361_v58  ;;  %v10841_v16 = vadd.f32 %v7485_v28, %v10779_v44 }
0x1235   : > { %v8376_v29 = vpop.f32.mrf.mxu0 }
0x1236   : > { %v10838_v38 = vadd.f32 %v7477_v37, %v10770_v3  ;;  %v7488_v52 = vadd.f32 %v8376_v29, %v7361_v58  ;;  %v7533_v44 = vsel %vm762_vm1, %v10841_v16, 0.0 }
0x1237   : > { %v7479_v7 = vpop.f32.mrf.mxu0 }
0x1238   : > { %v7480_v6 = vadd.f32 %v7479_v7, %v7361_v58  ;;  %v7527_v1 = vsel %vm762_vm1, %v10838_v38, 0.0  ;;  %v10849_v23 = vadd.f32 %v7488_v52, %v10782_v24 }
0x1239   : > { %7528 = vadd.xlane.f32.xlu1 %v7527_v1 }
0x123a   : > { %v10846_v2 = vadd.f32 %v7480_v6, %v10773_v49  ;;  %v7505_v45 = vpop.xlane.xlu1 %7504  ;;  %v7536_v24 = vsel %vm762_vm1, %v10849_v23, 0.0 }
0x123b   : > { %v7539_v48 = vmul.f32 0.03125, %v7505_v45 }
0x123c   : > { %v7530_v3 = vsel %vm762_vm1, %v10846_v2, 0.0 }
0x123d   : > { %v10855_v21 = vsub.f32 %v7491_v14, %v7539_v48  ;;  %7531 = vadd.xlane.f32.xlu0 %v7530_v3  ;;  %7534 = vadd.xlane.f32.xlu1 %v7533_v44 }
0x123e   : > { %v7511_v8 = vpop.xlane.xlu1 %7510  ;;  %v7508_v30 = vpop.xlane.xlu0 %7507 }
0x123f   : > { %v7541_v57 = vmul.f32 0.03125, %v7511_v8  ;;  %v7540_v49 = vmul.f32 0.03125, %v7508_v30  ;;  %v7563_v11 = vmul.f32 %v10855_v21, %v10855_v21 }
0x1241   : > { %v10861_v55 = vsub.f32 %v7493_v10, %v7541_v57  ;;  %v10863_v18 = vsub.f32 %v7492_v62, %v7540_v49  ;;  %7537 = vadd.xlane.f32.xlu0 %v7536_v24  ;;  %v7575_v42 = vsel %vm762_vm1, %v7563_v11, 0.0 }
0x1242   : > { %v7523_v19 = vpop.xlane.xlu1 %7522  ;;  %7576 = vadd.xlane.f32.xlu1 %v7575_v42  ;;  %v7514_v27 = vpop.xlane.xlu0 %7513 }
0x1243   : > { %v7542_v32 = vmul.f32 0.03125, %v7514_v27  ;;  %v7565_v58 = vmul.f32 %v10861_v55, %v10861_v55  ;;  %v7564_v39 = vmul.f32 %v10863_v18, %v10863_v18  ;;  %v7545_v50 = vmul.f32 0.03125, %v7523_v19 }
0x1245   : > { %v10871_v9 = vsub.f32 %v10814_v53, %v7542_v32  ;;  %v7581_v12 = vsel %vm762_vm1, %v7565_v58, 0.0  ;;  %v7578_v63 = vsel %vm762_vm1, %v7564_v39, 0.0  ;;  %v10878_v51 = vsub.f32 %v10817_v33, %v7545_v50 }
0x1246   : > { %v7517_v14 = vpop.xlane.xlu1 %7516  ;;  %7582 = vadd.xlane.f32.xlu1 %v7581_v12  ;;  %7579 = vadd.xlane.f32.xlu0 %v7578_v63  ;;  %v7526_v34 = vpop.xlane.xlu0 %7525  ;;  %v7661_v32 = vsub.s32 4, %v9234_v20  ;;  %v7677_v39 = vsub.s32 5, %v9234_v20 }
0x1247   : > { %v7543_v31 = vmul.f32 0.03125, %v7517_v14  ;;  %v7566_v10 = vmul.f32 %v10871_v9, %v10871_v9  ;;  %v7546_v35 = vmul.f32 0.03125, %v7526_v34  ;;  %v7569_v15 = vmul.f32 %v10878_v51, %v10878_v51  ;;  %v8726_v14 = vld [vmem:[%s9014_s17] sm:$0x3f]  ;;  %s11040_s17 = sadd.s32 4294967295, %s8833_s14  }
0x1248   : > { %v10928_v34 = vrot.slane %v8726_v14, %v7661_v32  ;;  %p10980_p9 = scmp.eq.s32.totalorder %s11040_s17, 1 }
0x1249   : > { %v10880_v36 = vsub.f32 %v7495_v4, %v7543_v31  ;;  %v7584_v62 = vsel %vm762_vm1, %v7566_v10, 0.0  ;;  %v10886_v43 = vsub.f32 %v10825_v0, %v7546_v35  ;;  %v7593_v56 = vsel %vm762_vm1, %v7569_v15, 0.0 }
0x124a   : > { %7585 = vadd.xlane.f32.xlu0 %v7584_v62  ;;  %v7520_v22 = vpop.xlane.xlu0 %7519  ;;  %v10930_v62 = vrot.slane %v8726_v14, %v7677_v39  ;;  %p8757_p11 = pnand %p8756_p10, %p10980_p9 }
0x124b   : > { %v7544_v53 = vmul.f32 0.03125, %v7520_v22  ;;  %v7567_v47 = vmul.f32 %v10880_v36, %v10880_v36  ;;  %v7570_v26 = vmul.f32 %v10886_v43, %v10886_v43 }
0x124c   : > { %p8758_p12 = pneg %p8757_p11 }
0x124d   : > { %v10889_v41 = vsub.f32 %v10830_v46, %v7544_v53  ;;  %v7587_v33 = vsel %vm762_vm1, %v7567_v47, 0.0  ;;  %v7596_v4 = vsel %vm762_vm1, %v7570_v26, 0.0 }
0x124e   : > { %7588 = vadd.xlane.f32.xlu1 %v7587_v33  ;;  %p8765_p2 = pnand %p8764_p1, %p8758_p12 }
0x124f   : > { %v7568_v60 = vmul.f32 %v10889_v41, %v10889_v41 }
0x1251   : > { %v7590_v61 = vsel %vm762_vm1, %v7568_v60, 0.0 }
0x1252   : > { %7594 = vadd.xlane.f32.xlu1 %v7593_v56  ;;  %7591 = vadd.xlane.f32.xlu0 %v7590_v61 }
0x1256   : > { %7597 = vadd.xlane.f32.xlu0 %v7596_v4 }
0x12c2   : > { %v7529_v0 = vpop.xlane.xlu1 %7528 }
0x12c3   : > { %v7547_v40 = vmul.f32 0.03125, %v7529_v0 }
0x12c5   : > { %v10902_v13 = vsub.f32 %v10838_v38, %v7547_v40 }
0x12c6   : > { %v7535_v46 = vpop.xlane.xlu1 %7534  ;;  %v7532_v25 = vpop.xlane.xlu0 %7531 }
0x12c7   : > { %v7549_v54 = vmul.f32 0.03125, %v7535_v46  ;;  %v7548_v5 = vmul.f32 0.03125, %v7532_v25  ;;  %v7571_v59 = vmul.f32 %v10902_v13, %v10902_v13 }
0x12c9   : > { %v10907_v17 = vsub.f32 %v10841_v16, %v7549_v54  ;;  %v10910_v28 = vsub.f32 %v10846_v2, %v7548_v5  ;;  %v7599_v37 = vsel %vm762_vm1, %v7571_v59, 0.0 }
0x12ca   : > { %7600 = vadd.xlane.f32.xlu1 %v7599_v37  ;;  %v7538_v29 = vpop.xlane.xlu0 %7537 }
0x12cb   : > { %v7577_v7 = vpop.xlane.xlu1 %7576  ;;  %v7550_v38 = vmul.f32 0.03125, %v7538_v29  ;;  %v7573_v52 = vmul.f32 %v10907_v17, %v10907_v17  ;;  %v7572_v6 = vmul.f32 %v10910_v28, %v10910_v28 }
0x12cc   : > { %v7611_v1 = vmul.f32 0.03125, %v7577_v7 }
0x12cd   : > { %v10918_v45 = vsub.f32 %v10849_v23, %v7550_v38  ;;  %v7605_v16 = vsel %vm762_vm1, %v7573_v52, 0.0  ;;  %v7602_v2 = vsel %vm762_vm1, %v7572_v6, 0.0 }
0x12ce   : > { %v7623_v48 = vadd.f32 1e-05, %v7611_v1  ;;  %7606 = vadd.xlane.f32.xlu1 %v7605_v16  ;;  %7603 = vadd.xlane.f32.xlu0 %v7602_v2 }
0x12cf   : > { %v7583_v3 = vpop.xlane.xlu1 %7582  ;;  %v7580_v44 = vpop.xlane.xlu0 %7579  ;;  %v7574_v8 = vmul.f32 %v10918_v45, %v10918_v45 }
0x12d0   : > { %8689 = vrsqrt.f32 %v7623_v48  ;;  %v7613_v30 = vmul.f32 0.03125, %v7583_v3  ;;  %v7612_v57 = vmul.f32 0.03125, %v7580_v44 }
0x12d1   : > { %v7608_v49 = vsel %vm762_vm1, %v7574_v8, 0.0 }
0x12d2   : > { %v7625_v11 = vadd.f32 1e-05, %v7613_v30  ;;  %v7624_v23 = vadd.f32 1e-05, %v7612_v57  ;;  %7609 = vadd.xlane.f32.xlu0 %v7608_v49 }
0x12d3   : > { %v7586_v24 = vpop.xlane.xlu0 %7585 }
0x12d4   : > { %8691 = vrsqrt.f32 %v7625_v11  ;;  %v7614_v42 = vmul.f32 0.03125, %v7586_v24 }
0x12d5   : > { %8693 = vrsqrt.f32 %v7624_v23 }
0x12d6   : > { %v7626_v19 = vadd.f32 1e-05, %v7614_v42 }
0x12d7   : > { %v7589_v27 = vpop.xlane.xlu1 %7588 }
0x12d8   : > { %8695 = vrsqrt.f32 %v7626_v19  ;;  %v7615_v58 = vmul.f32 0.03125, %v7589_v27 }
0x12da   : > { %v7627_v50 = vadd.f32 1e-05, %v7615_v58 }
0x12db   : > { %v7595_v12 = vpop.xlane.xlu1 %7594  ;;  %v7592_v63 = vpop.xlane.xlu0 %7591 }
0x12dc   : > { %8697 = vrsqrt.f32 %v7627_v50  ;;  %v7617_v31 = vmul.f32 0.03125, %v7595_v12  ;;  %v7616_v10 = vmul.f32 0.03125, %v7592_v63 }
0x12dd   : > { %v8690_v35 = vpop.eup %8689 }
0x12de   : > { %v7647_v22 = vmul.f32 %v8690_v35, %v10855_v21  ;;  %v7629_v53 = vadd.f32 1e-05, %v7617_v31  ;;  %v7628_v47 = vadd.f32 1e-05, %v7616_v10 }
0x12df   : > { %v7598_v33 = vpop.xlane.xlu0 %7597 }
0x12e0   : > { %v7663_v15 = vmul.f32 %v10928_v34, %v7647_v22  ;;  %8699 = vrsqrt.f32 %v7629_v53  ;;  %v7618_v20 = vmul.f32 0.03125, %v7598_v33 }
0x12e1   : > { %v8692_v60 = vpop.eup %8691  ;;  %8701 = vrsqrt.f32 %v7628_v47 }
0x12e2   : > { %v8694_v56 = vpop.eup %8693  ;;  %v7679_v61 = vadd.f32 %v10930_v62, %v7663_v15  ;;  %v7649_v26 = vmul.f32 %v8692_v60, %v10861_v55  ;;  %v7630_v4 = vadd.f32 1e-05, %v7618_v20 }
0x12e3   : > { %v7648_v0 = vmul.f32 %v8694_v56, %v10863_v18 }
0x12e4   : > { %7691 = vst.msk [vmem:[#allocation5] sm:$0xff] %vm762_vm1, %v7679_v61  ;;  %v7665_v21 = vmul.f32 %v10928_v34, %v7649_v26  ;;  %8703 = vrsqrt.f32 %v7630_v4 }
0x12e5   : > { %v8696_v40 = vpop.eup %8695  ;;  %v7664_v46 = vmul.f32 %v10928_v34, %v7648_v0 }
0x12e6   : > { %v7681_v25 = vadd.f32 %v10930_v62, %v7665_v21  ;;  %v7650_v54 = vmul.f32 %v8696_v40, %v10871_v9 }
0x12e7   : > { %v7680_v5 = vadd.f32 %v10930_v62, %v7664_v46 }
0x12e8   : > { %7693 = vst.msk [vmem:[#allocation5 + $0x10] sm:$0xff] %vm762_vm1, %v7681_v25  ;;  %v7666_v55 = vmul.f32 %v10928_v34, %v7650_v54 }
0x12e9   : > { %v8698_v59 = vpop.eup %8697  ;;  %7692 = vst.msk [vmem:[#allocation5 + $0x8] sm:$0xff] %vm762_vm1, %v7680_v5 }
0x12ea   : > { %v7682_v18 = vadd.f32 %v10930_v62, %v7666_v55  ;;  %v7651_v37 = vmul.f32 %v8698_v59, %v10880_v36 }
0x12ec   : > { %7694 = vst.msk [vmem:[#allocation5 + $0x18] sm:$0xff] %vm762_vm1, %v7682_v18  ;;  %v7667_v29 = vmul.f32 %v10928_v34, %v7651_v37 }
0x12ed   : > { %v8700_v7 = vpop.eup %8699 }
0x12ee   : > { %v8702_v38 = vpop.eup %8701  ;;  %v7683_v9 = vadd.f32 %v10930_v62, %v7667_v29  ;;  %v7653_v52 = vmul.f32 %v8700_v7, %v10878_v51 }
0x12ef   : > { %v7652_v6 = vmul.f32 %v8702_v38, %v10889_v41 }
0x12f0   : > { %7695 = vst.msk [vmem:[#allocation5 + $0x20] sm:$0xff] %vm762_vm1, %v7683_v9  ;;  %v7669_v1 = vmul.f32 %v10928_v34, %v7653_v52 }
0x12f1   : > { %v8704_v16 = vpop.eup %8703  ;;  %v7668_v2 = vmul.f32 %v10928_v34, %v7652_v6 }
0x12f2   : > { %v7685_v36 = vadd.f32 %v10930_v62, %v7669_v1  ;;  %v7654_v48 = vmul.f32 %v8704_v16, %v10886_v43 }
0x12f3   : > { %v7684_v3 = vadd.f32 %v10930_v62, %v7668_v2 }
0x12f4   : > { %7697 = vst.msk [vmem:[#allocation5 + $0x30] sm:$0xff] %vm762_vm1, %v7685_v36  ;;  %v7670_v44 = vmul.f32 %v10928_v34, %v7654_v48 }
0x12f5   : > { %7696 = vst.msk [vmem:[#allocation5 + $0x28] sm:$0xff] %vm762_vm1, %v7684_v3 }
0x12f6   : > { %v7686_v51 = vadd.f32 %v10930_v62, %v7670_v44 }
0x12f8   : > { %7698 = vst.msk [vmem:[#allocation5 + $0x38] sm:$0xff] %vm762_vm1, %v7686_v51 }
0x1353   : > { %v7601_v41 = vpop.xlane.xlu1 %7600 }
0x1354   : > { %v7619_v8 = vmul.f32 0.03125, %v7601_v41 }
0x1356   : > { %v7631_v30 = vadd.f32 1e-05, %v7619_v8 }
0x1357   : > { %v7607_v57 = vpop.xlane.xlu1 %7606  ;;  %v7604_v49 = vpop.xlane.xlu0 %7603 }
0x1358   : > { %8705 = vrsqrt.f32 %v7631_v30  ;;  %v7621_v11 = vmul.f32 0.03125, %v7607_v57  ;;  %v7620_v43 = vmul.f32 0.03125, %v7604_v49 }
0x135a   : > { %v7633_v23 = vadd.f32 1e-05, %v7621_v11  ;;  %v7632_v24 = vadd.f32 1e-05, %v7620_v43 }
0x135b   : > { %v7610_v42 = vpop.xlane.xlu0 %7609 }
0x135c   : > { %8707 = vrsqrt.f32 %v7633_v23  ;;  %v7622_v19 = vmul.f32 0.03125, %v7610_v42 }
0x135d   : > { %8709 = vrsqrt.f32 %v7632_v24 }
0x135e   : > { %v7634_v27 = vadd.f32 1e-05, %v7622_v19 }
0x1360   : > { %8711 = vrsqrt.f32 %v7634_v27 }
0x1365   : > { %v8706_v32 = vpop.eup %8705 }
0x1366   : > { %v7655_v58 = vmul.f32 %v8706_v32, %v10902_v13 }
0x1368   : > { %v7671_v39 = vmul.f32 %v10928_v34, %v7655_v58 }
0x1369   : > { %v8708_v50 = vpop.eup %8707 }
0x136a   : > { %v8710_v12 = vpop.eup %8709  ;;  %v7687_v63 = vadd.f32 %v10930_v62, %v7671_v39  ;;  %v7657_v14 = vmul.f32 %v8708_v50, %v10907_v17 }
0x136b   : > { %v7656_v31 = vmul.f32 %v8710_v12, %v10910_v28 }
0x136c   : > { %7699 = vst.msk [vmem:[#allocation5 + $0x40] sm:$0xff] %vm762_vm1, %v7687_v63  ;;  %v7673_v10 = vmul.f32 %v10928_v34, %v7657_v14 }
0x136d   : > { %v8712_v35 = vpop.eup %8711  ;;  %v7672_v22 = vmul.f32 %v10928_v34, %v7656_v31 }
0x136e   : > { %v7689_v13 = vadd.f32 %v10930_v62, %v7673_v10  ;;  %v7658_v53 = vmul.f32 %v8712_v35, %v10918_v45 }
0x136f   : > { %v7688_v47 = vadd.f32 %v10930_v62, %v7672_v22 }
0x1370   : > { %7701 = vst.msk [vmem:[#allocation5 + $0x50] sm:$0xff] %vm762_vm1, %v7689_v13  ;;  %v7674_v17 = vmul.f32 %v10928_v34, %v7658_v53 }
0x1371   : > { %7700 = vst.msk [vmem:[#allocation5 + $0x48] sm:$0xff] %vm762_vm1, %v7688_v47 }
0x1372   : > { %v7690_v28 = vadd.f32 %v10930_v62, %v7674_v17 }
0x1374   : > { %7702 = vst.msk [vmem:[#allocation5 + $0x58] sm:$0xff] %vm762_vm1, %v7690_v28 }
0x1375   : > { %8768 = shalt.err (!%p8765_p2)
}
0x1376   : > { %s8849_s19 = smov 128   ;;  %s8850_s27 = smov 8  }
0x1377   : > { %8404 = dma.vmem_to_hbm [thread:$0]  (%p10980_p9), %s7714_s26, 1536, %s11024_s9, [#allocation4], %s8849_s19, %s8849_s19, %s8850_s27  }
0x1378   : > { %8808 = dma.done.wait (%p10980_p9), [#allocation4], 1536  }
0x1379   : > { %8810 = vsyncadd (%p10980_p9), [#allocation4], 4294965760 }
0x137a PF: > { %s23_s14 = sadd.s32 1, %s8833_s14   ;;  %s11042_s15 = sld [smem:[#allocation10_spill]] }
0x137b   : > { %p20_p3 = scmp.ge.s32.totalorder %s23_s14, 4   ;;  %s11043_s12 = sld [smem:[#allocation8_spill]] }
0x137c   : > { %s11044_s13 = sld [smem:[#allocation9_spill]]  ;;  %s11045_s30 = smov %s8817_s10 }
0x137d   : > { %s11046_s10 = smov %s8821_s11  ;;  %22 = sbr.rel (!%p20_p3) target bundleno = 8 (0x8), region = 119 }
0x1380   : > { %s11047_s11 = smov %s11042_s15 }
0x1382   :  { %7729 = vsyncpa [#allocation3], 1 }
0x1383   :  { %7731 = vsyncpa [#allocation3 + $0x1], 1 }
0x1384   :  { %7732 = vsyncpa [#allocation4], 1 }
0x1385   :  { %7734 = vsyncpa [#allocation4 + $0x1], 1 }

</bundles_post_ra>
